<compile_context>
chip_gen: v7x
topology: tpu7x:2x2x1
jax: 0.10.0
libtpu: 0.0.40
codegen_flags: <defaults>
</compile_context>

<pallas_src>
import functools

import jax
import jax.numpy as jnp
import numpy as np
from jax import lax
from jax.experimental import pallas as pl
from jax.experimental.pallas import tpu as pltpu


# -----------------------------------------------------------------------------
# Fused Pallas kernel: whole eval forward for one TM-row batch tile.
# -----------------------------------------------------------------------------
def _fused_sdae_kernel(x_ref, m1_ref, m2_ref, m3_ref,
                       w1_ref, b1_ref, w2_ref, b2_ref, w3_ref, b3_ref,
                       wt3_ref, bt3_ref, wt2_ref, bt2_ref, wt1_ref, bt1_ref,
                       a3_ref, rec_ref):
    def enc(a_f32, m_ref, w_ref, b_ref):
        # Denoising mask (VPU), bf16 lowered-conv matmul (MXU, f32 acc), bias+ReLU.
        a = (a_f32 * m_ref[...].astype(jnp.float32)).astype(jnp.bfloat16)
        y = jnp.dot(a, w_ref[...], preferred_element_type=jnp.float32)
        return jnp.maximum(y + b_ref[...], 0.0)

    def dec(a_f32, w_ref, b_ref):
        y = jnp.dot(a_f32.astype(jnp.bfloat16), w_ref[...],
                    preferred_element_type=jnp.float32)
        return jnp.maximum(y + b_ref[...], 0.0)

    a1 = enc(x_ref[...], m1_ref, w1_ref, b1_ref)      # (TM, 1024)
    a2 = enc(a1, m2_ref, w2_ref, b2_ref)              # (TM, 512)
    a3 = enc(a2, m3_ref, w3_ref, b3_ref)              # (TM, 256)
    a3_ref[...] = a3.astype(a3_ref.dtype)

    r3 = dec(a3, wt3_ref, bt3_ref)                    # (TM, 384)  (288 padded)
    r2 = dec(r3, wt2_ref, bt2_ref)                    # (TM, 640)  (576 padded)
    r1 = dec(r2, wt1_ref, bt1_ref)                    # (TM, 256)  (144 padded)
    rec_ref[...] = r1.astype(rec_ref.dtype)


def _choose_tm(n):
    if n >= 128:
        return 128
    # int8 masks pack 32 rows per sublane tile -> keep the row tile 32-aligned.
    return max(32, ((n + 31) // 32) * 32)


def _fused_forward_call(x_flat, m1, m2, m3, pk, tm):
    n_pad = x_flat.shape[0]
    steps = n_pad // tm
    weight_keys = ("w1", "b1", "w2", "b2", "w3", "b3",
                   "wt3", "bt3", "wt2", "bt2", "wt1", "bt1")
    d_a3 = int(pk["w3"].shape[1])
    d_rec = int(pk["wt1"].shape[1])

    def row_spec(d):
        return pl.BlockSpec((tm, d), lambda i: (i, 0))

    def const_spec(shape):
        return pl.BlockSpec(tuple(int(s) for s in shape), lambda i: (0, 0))

    args = (x_flat, m1, m2, m3) + tuple(pk[k] for k in weight_keys)
    in_specs = [row_spec(int(x_flat.shape[1])), row_spec(int(m1.shape[1])),
                row_spec(int(m2.shape[1])), row_spec(int(m3.shape[1]))]
    in_specs += [const_spec(pk[k].shape) for k in weight_keys]
    out_specs = (row_spec(d_a3), row_spec(d_rec))
    out_shape = (jax.ShapeDtypeStruct((n_pad, d_a3), jnp.float32),
                 jax.ShapeDtypeStruct((n_pad, d_rec), jnp.float32))

    # Advisory cost estimate for XLA's scheduler.
    flops = 2 * n_pad * sum(int(pk[k].shape[0]) * int(pk[k].shape[1])
                            for k in ("w1", "w2", "w3", "wt3", "wt2", "wt1"))
    w_bytes = sum(int(pk[k].size) * pk[k].dtype.itemsize for k in weight_keys)
    io_bytes = (int(x_flat.size) * 4 + int(m1.size) + int(m2.size) + int(m3.size)
                + n_pad * (d_a3 + d_rec) * 4)
    cost = pl.CostEstimate(flops=int(flops), transcendentals=0,
                           bytes_accessed=int(w_bytes + io_bytes))

    # VMEM budget from the real per-step footprint (double-buffered weights and
    # per-step I/O tiles, f32 intermediate activations, headroom); cap at 64 MiB.
    step_io = tm * (int(x_flat.shape[1]) * 4
                    + int(m1.shape[1]) + int(m2.shape[1]) + int(m3.shape[1])
                    + (d_a3 + d_rec) * 4)
    inter = tm * 4 * sum(int(pk[k].shape[1])
                         for k in ("w1", "w2", "w3", "wt3", "wt2", "wt1"))
    vmem_limit = int(min(64 << 20,
                         max(24 << 20, 2 * w_bytes + 2 * step_io + 2 * inter + (8 << 20))))

    return pl.pallas_call(
        _fused_sdae_kernel,
        grid=(steps,),
        out_shape=out_shape,
        in_specs=in_specs,
        out_specs=out_specs,
        compiler_params=pltpu.CompilerParams(
            dimension_semantics=("parallel",),
            vmem_limit_bytes=vmem_limit),
        cost_estimate=cost,
    )(*args)


# -----------------------------------------------------------------------------
# One-time parameter lowering: conv / convT  ->  dense matmul on flattened NHWC
# -----------------------------------------------------------------------------
def _conv_lowered(w_torch, b, stride, in_hw, pad=1):
    """Dense matrix of Conv2d(k=3, stride, padding=1) on flattened NHWC input."""
    cout, cin = int(w_torch.shape[0]), int(w_torch.shape[1])
    h, w = in_hw
    d_in = h * w * cin
    basis = jnp.eye(d_in, dtype=jnp.float32).reshape(d_in, h, w, cin)
    w_hwio = jnp.transpose(w_torch, (2, 3, 1, 0))
    y = lax.conv_general_dilated(
        basis, w_hwio, (stride, stride), ((pad, pad), (pad, pad)),
        dimension_numbers=("NHWC", "HWIO", "NHWC"),
        precision=lax.Precision.HIGHEST)
    _, ho, wo, _ = y.shape
    mat = y.reshape(d_in, ho * wo * cout)
    bias_row = jnp.tile(b, ho * wo).reshape(1, ho * wo * cout)
    return mat, bias_row, (int(ho), int(wo), cout)


def _convT_lowered(wt_torch, b, in_hw, out_pad):
    """Dense matrix of ConvTranspose2d(k=3, s=2, p=1, op=out_pad) on flattened NHWC."""
    cin, cout = int(wt_torch.shape[0]), int(wt_torch.shape[1])
    h, w = in_hw
    d_in = h * w * cin
    basis = jnp.eye(d_in, dtype=jnp.float32).reshape(d_in, h, w, cin)
    w_conv = jnp.transpose(jnp.flip(wt_torch, axis=(2, 3)), (1, 0, 2, 3))  # (Cout,Cin,3,3)
    w_hwio = jnp.transpose(w_conv, (2, 3, 1, 0))
    y = lax.conv_general_dilated(
        basis, w_hwio, (1, 1), ((1, 1 + out_pad), (1, 1 + out_pad)),
        lhs_dilation=(2, 2), dimension_numbers=("NHWC", "HWIO", "NHWC"),
        precision=lax.Precision.HIGHEST)
    _, ho, wo, _ = y.shape
    mat = y.reshape(d_in, ho * wo * cout)
    bias_row = jnp.tile(b, ho * wo).reshape(1, ho * wo * cout)
    return mat, bias_row, (int(ho), int(wo), cout)


def _round_up(v, m=128):
    return ((v + m - 1) // m) * m


def _pad_lane(mat, bias, din_pad):
    """Pad Din to din_pad (zero rows) and Dout up to the next 128-multiple (zero cols/bias)."""
    dout_pad = _round_up(int(mat.shape[1]))
    mat = jnp.pad(mat, ((0, din_pad - int(mat.shape[0])), (0, dout_pad - int(mat.shape[1]))))
    bias = jnp.pad(bias, ((0, 0), (0, dout_pad - int(bias.shape[1]))))
    return mat, bias, dout_pad


def prepare_packed_params(params, in_hw=(16, 16)):
    """One-time lowering of all conv / convT weights to lane-dense bf16 matmul form."""
    w1, b1, s1 = _conv_lowered(params["w1"], params["b1"], 2, in_hw)
    w2, b2, s2 = _conv_lowered(params["w2"], params["b2"], 2, s1[:2])
    w3, b3, s3 = _conv_lowered(params["w3"], params["b3"], 2, s2[:2])
    wt3, bt3, t3 = _convT_lowered(params["wt3"], params["bt3"], s3[:2], 0)
    wt2, bt2, t2 = _convT_lowered(params["wt2"], params["bt2"], t3[:2], 1)
    wt1, bt1, t1 = _convT_lowered(params["wt1"], params["bt1"], t2[:2], 1)

    d_a3_true = s3[0] * s3[1] * s3[2]
    d_rec_true = t1[0] * t1[1] * t1[2]

    # Chain lane-padding: every layer's Dout -> next 128-multiple, next layer's
    # Din padded with matching zero rows (ReLU keeps padded lanes at exactly 0).
    din = _round_up(in_hw[0] * in_hw[1] * int(params["w1"].shape[1]))
    w1, b1, din = _pad_lane(w1, b1, din)
    w2, b2, din = _pad_lane(w2, b2, din)
    w3, b3, din = _pad_lane(w3, b3, din)
    wt3, bt3, din = _pad_lane(wt3, bt3, din)
    wt2, bt2, din = _pad_lane(wt2, bt2, din)
    wt1, bt1, din = _pad_lane(wt1, bt1, din)

    def bf16(m):
        return m.astype(jnp.bfloat16)

    return dict(
        w1=bf16(w1), b1=b1, w2=bf16(w2), b2=b2, w3=bf16(w3), b3=b3,
        wt3=bf16(wt3), bt3=bt3, wt2=bf16(wt2), bt2=bt2, wt1=bf16(wt1), bt1=bt1,
        in_hw=(int(in_hw[0]), int(in_hw[1])), in_c=int(params["w1"].shape[1]),
        d_a3=int(d_a3_true), d_rec=int(d_rec_true),
        shapes=dict(a1=s1, a2=s2, a3=s3, r3=t3, r2=t2, r1=t1))


# -----------------------------------------------------------------------------
# Parameters (deterministic, PyTorch-like fan-in uniform init)
# -----------------------------------------------------------------------------
def init_params(key):
    ks = jax.random.split(key, 12)

    def u(k, shape, fan_in):
        bound = 1.0 / np.sqrt(fan_in)
        return jax.random.uniform(k, shape, jnp.float32, -bound, bound)

    p = {}
    # forward convs: (Cout, Cin, 3, 3)
    p["w1"] = u(ks[0], (16, 1, 3, 3), 1 * 9)
    p["b1"] = u(ks[1], (16,), 1 * 9)
    p["w2"] = u(ks[2], (32, 16, 3, 3), 16 * 9)
    p["b2"] = u(ks[3], (32,), 16 * 9)
    p["w3"] = u(ks[4], (64, 32, 3, 3), 32 * 9)
    p["b3"] = u(ks[5], (64,), 32 * 9)
    # transposed convs: (Cin, Cout, 3, 3)
    p["wt1"] = u(ks[6], (16, 1, 3, 3), 1 * 9)    # ae1.backward: 16 -> 1
    p["bt1"] = u(ks[7], (1,), 1 * 9)
    p["wt2"] = u(ks[8], (32, 16, 3, 3), 16 * 9)  # ae2.backward: 32 -> 16
    p["bt2"] = u(ks[9], (16,), 16 * 9)
    p["wt3"] = u(ks[10], (64, 32, 3, 3), 32 * 9)  # ae3.backward: 64 -> 32
    p["bt3"] = u(ks[11], (32,), 32 * 9)
    return p


# -----------------------------------------------------------------------------
# Stacked DAE forward (eval mode): returns (a3, reconstruct(a3)) in NCHW
# -----------------------------------------------------------------------------
def _pad2d(a, rows, cols):
    return jnp.pad(a, ((0, rows - a.shape[0]), (0, cols - a.shape[1])))


def stacked_dae_forward(x_nchw, packed, noise_key):
    n = x_nchw.shape[0]
    x = jnp.transpose(x_nchw, (0, 2, 3, 1)).astype(jnp.float32)  # NCHW -> NHWC
    h, w = packed["in_hw"]
    cin = packed["in_c"]
    s1, s2 = packed["shapes"]["a1"], packed["shapes"]["a2"]
    s3, sr = packed["shapes"]["a3"], packed["shapes"]["r1"]

    # Noise drawn with jax.random (same stream as the reference); only the 0/1
    # mask is shipped to the kernel, as int8 (4x less DMA than f32 noise).
    k1, k2, k3 = jax.random.split(noise_key, 3)
    m1 = (0.1 * jax.random.normal(k1, (n, h, w, cin), jnp.float32) > -0.1).astype(jnp.int8)
    m2 = (0.1 * jax.random.normal(k2, (n,) + s1, jnp.float32) > -0.1).astype(jnp.int8)
    m3 = (0.1 * jax.random.normal(k3, (n,) + s2, jnp.float32) > -0.1).astype(jnp.int8)

    tm = _choose_tm(n)
    n_pad = ((n + tm - 1) // tm) * tm

    x_flat = _pad2d(x.reshape(n, -1), n_pad, int(packed["w1"].shape[0]))
    m1f = _pad2d(m1.reshape(n, -1), n_pad, int(packed["w1"].shape[0]))
    m2f = _pad2d(m2.reshape(n, -1), n_pad, int(packed["w2"].shape[0]))
    m3f = _pad2d(m3.reshape(n, -1), n_pad, int(packed["w3"].shape[0]))

    a3_flat, rec_flat = _fused_forward_call(x_flat, m1f, m2f, m3f, packed, tm)

    a3 = a3_flat[:n, :packed["d_a3"]].reshape((n,) + s3)
    rec = rec_flat[:n, :packed["d_rec"]].reshape((n,) + sr)
    return jnp.transpose(a3, (0, 3, 1, 2)), jnp.transpose(rec, (0, 3, 1, 2))


# -----------------------------------------------------------------------------
# Pure-JAX f32 reference (lax.conv_general_dilated) for a correctness check
# -----------------------------------------------------------------------------
def _ref_conv(x, w_torch, b, stride):
    w = jnp.transpose(w_torch, (2, 3, 1, 0))  # HWIO
    y = lax.conv_general_dilated(
        x, w, (stride, stride), ((1, 1), (1, 1)),
        dimension_numbers=("NHWC", "HWIO", "NHWC"),
        precision=lax.Precision.HIGHEST)
    return jnp.maximum(y + b, 0.0)


def _ref_convT(x, wt_torch, b, out_pad):
    w_conv = jnp.transpose(jnp.flip(wt_torch, axis=(2, 3)), (1, 0, 2, 3))
    w = jnp.transpose(w_conv, (2, 3, 1, 0))  # HWIO
    y = lax.conv_general_dilated(
        x, w, (1, 1), ((1, 1 + out_pad), (1, 1 + out_pad)),
        lhs_dilation=(2, 2), dimension_numbers=("NHWC", "HWIO", "NHWC"),
        precision=lax.Precision.HIGHEST)
    return jnp.maximum(y + b, 0.0)


def ref_forward(x_nchw, params, noise_key):
    x = jnp.transpose(x_nchw, (0, 2, 3, 1))
    k1, k2, k3 = jax.random.split(noise_key, 3)
    xn = x * (0.1 * jax.random.normal(k1, x.shape, x.dtype) > -0.1).astype(x.dtype)
    a1 = _ref_conv(xn, params["w1"], params["b1"], 2)
    a1n = a1 * (0.1 * jax.random.normal(k2, a1.shape, a1.dtype) > -0.1).astype(x.dtype)
    a2 = _ref_conv(a1n, params["w2"], params["b2"], 2)
    a2n = a2 * (0.1 * jax.random.normal(k3, a2.shape, a2.dtype) > -0.1).astype(x.dtype)
    a3 = _ref_conv(a2n, params["w3"], params["b3"], 2)
    r3 = _ref_convT(a3, params["wt3"], params["bt3"], 0)
    r2 = _ref_convT(r3, params["wt2"], params["bt2"], 1)
    r1 = _ref_convT(r2, params["wt1"], params["bt1"], 1)
    return jnp.transpose(a3, (0, 3, 1, 2)), jnp.transpose(r1, (0, 3, 1, 2))


# -----------------------------------------------------------------------------
if __name__ == "__main__":
    key = jax.random.PRNGKey(0)
    pkey, xkey, nkey = jax.random.split(key, 3)

    params = init_params(pkey)
    packed = prepare_packed_params(params, in_hw=(16, 16))   # one-time lowering
    x = jax.random.normal(xkey, (2, 1, 16, 16), jnp.float32)  # NCHW like PyTorch

    fwd = jax.jit(functools.partial(stacked_dae_forward, packed=packed))
    a3, recon = fwd(x, noise_key=nkey)
    jax.block_until_ready((a3, recon))

    assert a3.shape == (2, 64, 2, 2), a3.shape
    assert recon.shape == (2, 1, 12, 12), recon.shape

    # Reference is full f32; kernel runs the 6-matmul chain with bf16 operands
    # (f32 accumulation), so compare at bf16-appropriate tolerance.
    a3_ref, recon_ref = ref_forward(x, params, nkey)
    np.testing.assert_allclose(np.asarray(a3), np.asarray(a3_ref), rtol=2e-2, atol=2e-2)
    np.testing.assert_allclose(np.asarray(recon), np.asarray(recon_ref), rtol=2e-2, atol=2e-2)

    print("KERNEL_OK")
</pallas_src>

<mosaic_0001>
module attributes {stable_mosaic.version = 11 : i64} {
  func.func @_fused_sdae_kernel(%arg0: i32, %arg1: memref<32x256xf32, #tpu.memory_space<vmem>>, %arg2: memref<32x256xi8, #tpu.memory_space<vmem>>, %arg3: memref<32x1024xi8, #tpu.memory_space<vmem>>, %arg4: memref<32x512xi8, #tpu.memory_space<vmem>>, %arg5: memref<256x1024xbf16, #tpu.memory_space<vmem>>, %arg6: memref<1x1024xf32, #tpu.memory_space<vmem>>, %arg7: memref<1024x512xbf16, #tpu.memory_space<vmem>>, %arg8: memref<1x512xf32, #tpu.memory_space<vmem>>, %arg9: memref<512x256xbf16, #tpu.memory_space<vmem>>, %arg10: memref<1x256xf32, #tpu.memory_space<vmem>>, %arg11: memref<256x384xbf16, #tpu.memory_space<vmem>>, %arg12: memref<1x384xf32, #tpu.memory_space<vmem>>, %arg13: memref<384x640xbf16, #tpu.memory_space<vmem>>, %arg14: memref<1x640xf32, #tpu.memory_space<vmem>>, %arg15: memref<640x256xbf16, #tpu.memory_space<vmem>>, %arg16: memref<1x256xf32, #tpu.memory_space<vmem>>, %arg17: memref<32x256xf32, #tpu.memory_space<vmem>>, %arg18: memref<32x256xf32, #tpu.memory_space<vmem>>) attributes {dimension_semantics = [#tpu.dimension_semantics<parallel>], iteration_bounds = array<i64: 1>, scalar_prefetch = 0 : i64, scratch_operands = 0 : i64, tpu.core_type = #tpu.core_type<tc>, window_params = [{transform_indices = @transform_0, window_bounds = array<i64: 32, 256>}, {transform_indices = @transform_1, window_bounds = array<i64: 32, 256>}, {transform_indices = @transform_2, window_bounds = array<i64: 32, 1024>}, {transform_indices = @transform_3, window_bounds = array<i64: 32, 512>}, {pipeline_mode = #tpu.pipeline_mode<synchronous>, transform_indices = @transform_4, window_bounds = array<i64: 256, 1024>}, {pipeline_mode = #tpu.pipeline_mode<synchronous>, transform_indices = @transform_5, window_bounds = array<i64: 1, 1024>}, {pipeline_mode = #tpu.pipeline_mode<synchronous>, transform_indices = @transform_6, window_bounds = array<i64: 1024, 512>}, {pipeline_mode = #tpu.pipeline_mode<synchronous>, transform_indices = @transform_7, window_bounds = array<i64: 1, 512>}, {pipeline_mode = #tpu.pipeline_mode<synchronous>, transform_indices = @transform_8, window_bounds = array<i64: 512, 256>}, {pipeline_mode = #tpu.pipeline_mode<synchronous>, transform_indices = @transform_9, window_bounds = array<i64: 1, 256>}, {pipeline_mode = #tpu.pipeline_mode<synchronous>, transform_indices = @transform_10, window_bounds = array<i64: 256, 384>}, {pipeline_mode = #tpu.pipeline_mode<synchronous>, transform_indices = @transform_11, window_bounds = array<i64: 1, 384>}, {pipeline_mode = #tpu.pipeline_mode<synchronous>, transform_indices = @transform_12, window_bounds = array<i64: 384, 640>}, {pipeline_mode = #tpu.pipeline_mode<synchronous>, transform_indices = @transform_13, window_bounds = array<i64: 1, 640>}, {pipeline_mode = #tpu.pipeline_mode<synchronous>, transform_indices = @transform_14, window_bounds = array<i64: 640, 256>}, {pipeline_mode = #tpu.pipeline_mode<synchronous>, transform_indices = @transform_15, window_bounds = array<i64: 1, 256>}, {transform_indices = @transform_16, window_bounds = array<i64: 32, 256>}, {transform_indices = @transform_17, window_bounds = array<i64: 32, 256>}]} {
    %c0 = arith.constant 0 : index
    %c0_0 = arith.constant 0 : index
    %0 = vector.load %arg1[%c0, %c0_0] : memref<32x256xf32, #tpu.memory_space<vmem>>, vector<32x256xf32>
    %c0_1 = arith.constant 0 : index
    %c0_2 = arith.constant 0 : index
    %1 = vector.load %arg2[%c0_1, %c0_2] : memref<32x256xi8, #tpu.memory_space<vmem>>, vector<32x256xi8>
    %2 = arith.sitofp %1 : vector<32x256xi8> to vector<32x256xf32>
    %3 = arith.mulf %0, %2 : vector<32x256xf32>
    %4 = arith.truncf %3 : vector<32x256xf32> to vector<32x256xbf16>
    %c0_3 = arith.constant 0 : index
    %c0_4 = arith.constant 0 : index
    %5 = vector.load %arg5[%c0_3, %c0_4] : memref<256x1024xbf16, #tpu.memory_space<vmem>>, vector<256x1024xbf16>
    %cst = arith.constant dense<0.000000e+00> : vector<32x1024xf32>
    %6 = tpu.matmul %4, %5, %cst {dimension_numbers = #tpu.dot_dimension_numbers<[1], [0], [0], [1], [0, 0, 1, 1], [], []>} : vector<32x256xbf16>, vector<256x1024xbf16>, vector<32x1024xf32> -> vector<32x1024xf32>
    %c0_5 = arith.constant 0 : index
    %c0_6 = arith.constant 0 : index
    %7 = vector.load %arg6[%c0_5, %c0_6] : memref<1x1024xf32, #tpu.memory_space<vmem>>, vector<1x1024xf32>
    %8 = vector.broadcast %7 : vector<1x1024xf32> to vector<32x1024xf32>
    %9 = arith.addf %6, %8 : vector<32x1024xf32>
    %cst_7 = arith.constant 0.000000e+00 : f32
    %10 = vector.broadcast %cst_7 : f32 to vector<32x1024xf32>
    %11 = arith.maximumf %9, %10 : vector<32x1024xf32>
    %c0_8 = arith.constant 0 : index
    %c0_9 = arith.constant 0 : index
    %12 = vector.load %arg3[%c0_8, %c0_9] : memref<32x1024xi8, #tpu.memory_space<vmem>>, vector<32x1024xi8>
    %13 = arith.sitofp %12 : vector<32x1024xi8> to vector<32x1024xf32>
    %14 = arith.mulf %11, %13 : vector<32x1024xf32>
    %15 = arith.truncf %14 : vector<32x1024xf32> to vector<32x1024xbf16>
    %c0_10 = arith.constant 0 : index
    %c0_11 = arith.constant 0 : index
    %16 = vector.load %arg7[%c0_10, %c0_11] : memref<1024x512xbf16, #tpu.memory_space<vmem>>, vector<1024x512xbf16>
    %cst_12 = arith.constant dense<0.000000e+00> : vector<32x512xf32>
    %17 = tpu.matmul %15, %16, %cst_12 {dimension_numbers = #tpu.dot_dimension_numbers<[1], [0], [0], [1], [0, 0, 1, 1], [], []>} : vector<32x1024xbf16>, vector<1024x512xbf16>, vector<32x512xf32> -> vector<32x512xf32>
    %c0_13 = arith.constant 0 : index
    %c0_14 = arith.constant 0 : index
    %18 = vector.load %arg8[%c0_13, %c0_14] : memref<1x512xf32, #tpu.memory_space<vmem>>, vector<1x512xf32>
    %19 = vector.broadcast %18 : vector<1x512xf32> to vector<32x512xf32>
    %20 = arith.addf %17, %19 : vector<32x512xf32>
    %cst_15 = arith.constant 0.000000e+00 : f32
    %21 = vector.broadcast %cst_15 : f32 to vector<32x512xf32>
    %22 = arith.maximumf %20, %21 : vector<32x512xf32>
    %c0_16 = arith.constant 0 : index
    %c0_17 = arith.constant 0 : index
    %23 = vector.load %arg4[%c0_16, %c0_17] : memref<32x512xi8, #tpu.memory_space<vmem>>, vector<32x512xi8>
    %24 = arith.sitofp %23 : vector<32x512xi8> to vector<32x512xf32>
    %25 = arith.mulf %22, %24 : vector<32x512xf32>
    %26 = arith.truncf %25 : vector<32x512xf32> to vector<32x512xbf16>
    %c0_18 = arith.constant 0 : index
    %c0_19 = arith.constant 0 : index
    %27 = vector.load %arg9[%c0_18, %c0_19] : memref<512x256xbf16, #tpu.memory_space<vmem>>, vector<512x256xbf16>
    %cst_20 = arith.constant dense<0.000000e+00> : vector<32x256xf32>
    %28 = tpu.matmul %26, %27, %cst_20 {dimension_numbers = #tpu.dot_dimension_numbers<[1], [0], [0], [1], [0, 0, 1, 1], [], []>} : vector<32x512xbf16>, vector<512x256xbf16>, vector<32x256xf32> -> vector<32x256xf32>
    %c0_21 = arith.constant 0 : index
    %c0_22 = arith.constant 0 : index
    %29 = vector.load %arg10[%c0_21, %c0_22] : memref<1x256xf32, #tpu.memory_space<vmem>>, vector<1x256xf32>
    %30 = vector.broadcast %29 : vector<1x256xf32> to vector<32x256xf32>
    %31 = arith.addf %28, %30 : vector<32x256xf32>
    %cst_23 = arith.constant 0.000000e+00 : f32
    %32 = vector.broadcast %cst_23 : f32 to vector<32x256xf32>
    %33 = arith.maximumf %31, %32 : vector<32x256xf32>
    %c0_24 = arith.constant 0 : index
    %c0_25 = arith.constant 0 : index
    %34 = vector.load %arg17[%c0_24, %c0_25] : memref<32x256xf32, #tpu.memory_space<vmem>>, vector<32x256xf32>
    tpu.vector_store %arg17[%c0_24, %c0_25], %33 {strides = array<i32>} : memref<32x256xf32, #tpu.memory_space<vmem>>, vector<32x256xf32>,
    %35 = arith.truncf %33 : vector<32x256xf32> to vector<32x256xbf16>
    %c0_26 = arith.constant 0 : index
    %c0_27 = arith.constant 0 : index
    %36 = vector.load %arg11[%c0_26, %c0_27] : memref<256x384xbf16, #tpu.memory_space<vmem>>, vector<256x384xbf16>
    %cst_28 = arith.constant dense<0.000000e+00> : vector<32x384xf32>
    %37 = tpu.matmul %35, %36, %cst_28 {dimension_numbers = #tpu.dot_dimension_numbers<[1], [0], [0], [1], [0, 0, 1, 1], [], []>} : vector<32x256xbf16>, vector<256x384xbf16>, vector<32x384xf32> -> vector<32x384xf32>
    %c0_29 = arith.constant 0 : index
    %c0_30 = arith.constant 0 : index
    %38 = vector.load %arg12[%c0_29, %c0_30] : memref<1x384xf32, #tpu.memory_space<vmem>>, vector<1x384xf32>
    %39 = vector.broadcast %38 : vector<1x384xf32> to vector<32x384xf32>
    %40 = arith.addf %37, %39 : vector<32x384xf32>
    %cst_31 = arith.constant 0.000000e+00 : f32
    %41 = vector.broadcast %cst_31 : f32 to vector<32x384xf32>
    %42 = arith.maximumf %40, %41 : vector<32x384xf32>
    %43 = arith.truncf %42 : vector<32x384xf32> to vector<32x384xbf16>
    %c0_32 = arith.constant 0 : index
    %c0_33 = arith.constant 0 : index
    %44 = vector.load %arg13[%c0_32, %c0_33] : memref<384x640xbf16, #tpu.memory_space<vmem>>, vector<384x640xbf16>
    %cst_34 = arith.constant dense<0.000000e+00> : vector<32x640xf32>
    %45 = tpu.matmul %43, %44, %cst_34 {dimension_numbers = #tpu.dot_dimension_numbers<[1], [0], [0], [1], [0, 0, 1, 1], [], []>} : vector<32x384xbf16>, vector<384x640xbf16>, vector<32x640xf32> -> vector<32x640xf32>
    %c0_35 = arith.constant 0 : index
    %c0_36 = arith.constant 0 : index
    %46 = vector.load %arg14[%c0_35, %c0_36] : memref<1x640xf32, #tpu.memory_space<vmem>>, vector<1x640xf32>
    %47 = vector.broadcast %46 : vector<1x640xf32> to vector<32x640xf32>
    %48 = arith.addf %45, %47 : vector<32x640xf32>
    %cst_37 = arith.constant 0.000000e+00 : f32
    %49 = vector.broadcast %cst_37 : f32 to vector<32x640xf32>
    %50 = arith.maximumf %48, %49 : vector<32x640xf32>
    %51 = arith.truncf %50 : vector<32x640xf32> to vector<32x640xbf16>
    %c0_38 = arith.constant 0 : index
    %c0_39 = arith.constant 0 : index
    %52 = vector.load %arg15[%c0_38, %c0_39] : memref<640x256xbf16, #tpu.memory_space<vmem>>, vector<640x256xbf16>
    %cst_40 = arith.constant dense<0.000000e+00> : vector<32x256xf32>
    %53 = tpu.matmul %51, %52, %cst_40 {dimension_numbers = #tpu.dot_dimension_numbers<[1], [0], [0], [1], [0, 0, 1, 1], [], []>} : vector<32x640xbf16>, vector<640x256xbf16>, vector<32x256xf32> -> vector<32x256xf32>
    %c0_41 = arith.constant 0 : index
    %c0_42 = arith.constant 0 : index
    %54 = vector.load %arg16[%c0_41, %c0_42] : memref<1x256xf32, #tpu.memory_space<vmem>>, vector<1x256xf32>
    %55 = vector.broadcast %54 : vector<1x256xf32> to vector<32x256xf32>
    %56 = arith.addf %53, %55 : vector<32x256xf32>
    %cst_43 = arith.constant 0.000000e+00 : f32
    %57 = vector.broadcast %cst_43 : f32 to vector<32x256xf32>
    %58 = arith.maximumf %56, %57 : vector<32x256xf32>
    %c0_44 = arith.constant 0 : index
    %c0_45 = arith.constant 0 : index
    %59 = vector.load %arg18[%c0_44, %c0_45] : memref<32x256xf32, #tpu.memory_space<vmem>>, vector<32x256xf32>
    tpu.vector_store %arg18[%c0_44, %c0_45], %58 {strides = array<i32>} : memref<32x256xf32, #tpu.memory_space<vmem>>, vector<32x256xf32>,
    return
  }
  func.func @transform_0(%arg0: i32) -> (i32, i32) {
    %c0_i32 = arith.constant 0 : i32
    %c0_i32_0 = arith.constant 0 : i32
    return %arg0, %c0_i32 : i32, i32
  }
  func.func @transform_1(%arg0: i32) -> (i32, i32) {
    %c0_i32 = arith.constant 0 : i32
    %c0_i32_0 = arith.constant 0 : i32
    return %arg0, %c0_i32 : i32, i32
  }
  func.func @transform_2(%arg0: i32) -> (i32, i32) {
    %c0_i32 = arith.constant 0 : i32
    %c0_i32_0 = arith.constant 0 : i32
    return %arg0, %c0_i32 : i32, i32
  }
  func.func @transform_3(%arg0: i32) -> (i32, i32) {
    %c0_i32 = arith.constant 0 : i32
    %c0_i32_0 = arith.constant 0 : i32
    return %arg0, %c0_i32 : i32, i32
  }
  func.func @transform_4(%arg0: i32) -> (i32, i32) {
    %c0_i32 = arith.constant 0 : i32
    %c0_i32_0 = arith.constant 0 : i32
    %c0_i32_1 = arith.constant 0 : i32
    return %c0_i32, %c0_i32_0 : i32, i32
  }
  func.func @transform_5(%arg0: i32) -> (i32, i32) {
    %c0_i32 = arith.constant 0 : i32
    %c0_i32_0 = arith.constant 0 : i32
    %c0_i32_1 = arith.constant 0 : i32
    return %c0_i32, %c0_i32_0 : i32, i32
  }
  func.func @transform_6(%arg0: i32) -> (i32, i32) {
    %c0_i32 = arith.constant 0 : i32
    %c0_i32_0 = arith.constant 0 : i32
    %c0_i32_1 = arith.constant 0 : i32
    return %c0_i32, %c0_i32_0 : i32, i32
  }
  func.func @transform_7(%arg0: i32) -> (i32, i32) {
    %c0_i32 = arith.constant 0 : i32
    %c0_i32_0 = arith.constant 0 : i32
    %c0_i32_1 = arith.constant 0 : i32
    return %c0_i32, %c0_i32_0 : i32, i32
  }
  func.func @transform_8(%arg0: i32) -> (i32, i32) {
    %c0_i32 = arith.constant 0 : i32
    %c0_i32_0 = arith.constant 0 : i32
    %c0_i32_1 = arith.constant 0 : i32
    return %c0_i32, %c0_i32_0 : i32, i32
  }
  func.func @transform_9(%arg0: i32) -> (i32, i32) {
    %c0_i32 = arith.constant 0 : i32
    %c0_i32_0 = arith.constant 0 : i32
    %c0_i32_1 = arith.constant 0 : i32
    return %c0_i32, %c0_i32_0 : i32, i32
  }
  func.func @transform_10(%arg0: i32) -> (i32, i32) {
    %c0_i32 = arith.constant 0 : i32
    %c0_i32_0 = arith.constant 0 : i32
    %c0_i32_1 = arith.constant 0 : i32
    return %c0_i32, %c0_i32_0 : i32, i32
  }
  func.func @transform_11(%arg0: i32) -> (i32, i32) {
    %c0_i32 = arith.constant 0 : i32
    %c0_i32_0 = arith.constant 0 : i32
    %c0_i32_1 = arith.constant 0 : i32
    return %c0_i32, %c0_i32_0 : i32, i32
  }
  func.func @transform_12(%arg0: i32) -> (i32, i32) {
    %c0_i32 = arith.constant 0 : i32
    %c0_i32_0 = arith.constant 0 : i32
    %c0_i32_1 = arith.constant 0 : i32
    return %c0_i32, %c0_i32_0 : i32, i32
  }
  func.func @transform_13(%arg0: i32) -> (i32, i32) {
    %c0_i32 = arith.constant 0 : i32
    %c0_i32_0 = arith.constant 0 : i32
    %c0_i32_1 = arith.constant 0 : i32
    return %c0_i32, %c0_i32_0 : i32, i32
  }
  func.func @transform_14(%arg0: i32) -> (i32, i32) {
    %c0_i32 = arith.constant 0 : i32
    %c0_i32_0 = arith.constant 0 : i32
    %c0_i32_1 = arith.constant 0 : i32
    return %c0_i32, %c0_i32_0 : i32, i32
  }
  func.func @transform_15(%arg0: i32) -> (i32, i32) {
    %c0_i32 = arith.constant 0 : i32
    %c0_i32_0 = arith.constant 0 : i32
    %c0_i32_1 = arith.constant 0 : i32
    return %c0_i32, %c0_i32_0 : i32, i32
  }
  func.func @transform_16(%arg0: i32) -> (i32, i32) {
    %c0_i32 = arith.constant 0 : i32
    %c0_i32_0 = arith.constant 0 : i32
    return %arg0, %c0_i32 : i32, i32
  }
  func.func @transform_17(%arg0: i32) -> (i32, i32) {
    %c0_i32 = arith.constant 0 : i32
    %c0_i32_0 = arith.constant 0 : i32
    return %arg0, %c0_i32 : i32, i32
  }
}

</mosaic_0001>

<bundles_post_ra>
// kernel: stacked_dae_forward.3
= control target key start
LH: loop header
LB: loop body
LE: loop exit
PB: predicated region body
PF: predicated region fallthrough
CT: control target
= control target key end

     0   :  { %s10504_s4 = inlined_call_operand.vmem [shape: bf16[256,1024], index: 4, kind: input, shape index: {}]   ;;  %s10505_s1 = inlined_call_operand.vmem [shape: s8[32,256], index: 1, kind: input, shape index: {}]   ;;  %s10506_s0 = inlined_call_operand.vmem [shape: f32[32,256], index: 0, kind: input, shape index: {}]   ;;  %s10507_s6 = inlined_call_operand.vmem [shape: bf16[1024,512], index: 6, kind: input, shape index: {}]   ;;  %s10508_s5 = inlined_call_operand.vmem [shape: f32[1,1024], index: 5, kind: input, shape index: {}]   ;;  %s10509_s2 = inlined_call_operand.vmem [shape: s8[32,1024], index: 2, kind: input, shape index: {}]   ;;  %s10510_s8 = inlined_call_operand.vmem [shape: bf16[512,256], index: 8, kind: input, shape index: {}]   ;;  %s10511_s10 = inlined_call_operand.vmem [shape: bf16[256,384], index: 10, kind: input, shape index: {}]   ;;  %s10512_s3 = inlined_call_operand.vmem [shape: s8[32,512], index: 3, kind: input, shape index: {}]   ;;  %s10513_s7 = inlined_call_operand.vmem [shape: f32[1,512], index: 7, kind: input, shape index: {}]   ;;  %s10514_s12 = inlined_call_operand.vmem [shape: bf16[384,640], index: 12, kind: input, shape index: {}]   ;;  %s10515_s9 = inlined_call_operand.vmem [shape: f32[1,256], index: 9, kind: input, shape index: {}]   ;;  %s10516_s16 = inlined_call_operand.vmem [shape: f32[32,256], index: 16, kind: output, shape index: {0}]   ;;  %s10517_s14 = inlined_call_operand.vmem [shape: bf16[640,256], index: 14, kind: input, shape index: {}]   ;;  %s10518_s11 = inlined_call_operand.vmem [shape: f32[1,384], index: 11, kind: input, shape index: {}]   ;;  %s10519_s13 = inlined_call_operand.vmem [shape: f32[1,640], index: 13, kind: input, shape index: {}]   ;;  %s10520_s15 = inlined_call_operand.vmem [shape: f32[1,256], index: 15, kind: input, shape index: {}]   ;;  %s10521_s17 = inlined_call_operand.vmem [shape: f32[32,256], index: 17, kind: output, shape index: {1}]  }
   0x1   :  { %10524 = sst [smem:[#allocation2_spill]] %s10504_s4  ;;  %v57_v22 = vld [vmem:[%s10506_s0 + $0x8] sm:$0xff]  ;;  %v59_v23 = vld [vmem:[%s10506_s0 + $0x18] sm:$0xff] }
   0x2   :  { %10525 = sst [smem:[#allocation3_spill]] %s10505_s1  ;;  %s10526_s26 = sld [smem:[#allocation2_spill]] }
   0x3   :  { %s10527_s19 = sld [smem:[#allocation3_spill]] }
   0x8   :  { %v94_v0 = vld [vmem:[%s10526_s26] sm:$0xff]  ;;  %v97_v47 = vld [vmem:[%s10526_s26 + $0x18] sm:$0xff] }
   0x9   :  { %v98_v1 = vld [vmem:[%s10526_s26 + $0x20] sm:$0xff]  ;;  %v7990_v17 = vld [vmem:[%s10527_s19 + $0x8] sm:$0xff]  ;;  %v101_v48 = vld [vmem:[%s10526_s26 + $0x38] sm:$0xff] }
   0xa   :  { %v102_v2 = vld [vmem:[%s10526_s26 + $0x40] sm:$0xff]  ;;  %v6116_v3 = vcombine.high %v94_v0, %v98_v1  ;;  %v6115_v4 = vcombine.low %v94_v0, %v98_v1  ;;  %v67_v19 = vunpack.c.0.s8 %v7990_v17  ;;  %v69_v20 = vunpack.c.1.s8 %v7990_v17  ;;  %v105_v55 = vld [vmem:[%s10526_s26 + $0x58] sm:$0xff] }
   0xb   :  { %v106_v5 = vld [vmem:[%s10526_s26 + $0x60] sm:$0xff]  ;;  %v6122_v50 = vcombine.high %v97_v47, %v101_v48  ;;  %v6121_v52 = vcombine.low %v97_v47, %v101_v48  ;;  %v109_v56 = vld [vmem:[%s10526_s26 + $0x78] sm:$0xff]  ;;  %v61_v48 = vld [vmem:[%s10506_s0 + $0x28] sm:$0xff] }
   0xc   :  { %v6124_v6 = vcombine.high %v102_v2, %v106_v5  ;;  %v110_v7 = vld [vmem:[%s10526_s26 + $0x80] sm:$0xff]  ;;  %904 = vmatprep.subr.bf16.mxu0 %v6116_v3  ;;  %v6123_v9 = vcombine.low %v102_v2, %v106_v5  ;;  %v75_v26 = vcvt.s32.f32 %v67_v19  ;;  %v77_v27 = vcvt.s32.f32 %v69_v20  ;;  %v113_v63 = vld [vmem:[%s10526_s26 + $0x98] sm:$0xff] }
   0xd   :  { %v114_v8 = vld [vmem:[%s10526_s26 + $0xa0] sm:$0xff]  ;;  %905 = vmatpush1.bf16.msra.mxu0 %v6115_v4  ;;  %1063 = vmatprep.subr.bf16.mxu1 %v6122_v50  ;;  %v6130_v58 = vcombine.high %v105_v55, %v109_v56  ;;  %v6129_v60 = vcombine.low %v105_v55, %v109_v56  ;;  %v117_v0 = vld [vmem:[%s10526_s26 + $0xb8] sm:$0xff] }
   0xe   :  { %906 = vmatprep.subr.bf16.mxu0 %v6124_v6  ;;  %v6132_v10 = vcombine.high %v110_v7, %v114_v8  ;;  %v118_v11 = vld [vmem:[%s10526_s26 + $0xc0] sm:$0xff]  ;;  %v6131_v13 = vcombine.low %v110_v7, %v114_v8  ;;  %v83_v29 = vmul.f32 %v75_v26, %v57_v22  ;;  %v85_v30 = vmul.f32 %v77_v27, %v59_v23  ;;  %v121_v7 = vld [vmem:[%s10526_s26 + $0xd8] sm:$0xff] }
   0xf   :  { %v122_v12 = vld [vmem:[%s10526_s26 + $0xe0] sm:$0xff]  ;;  %1064 = vmatpush1.bf16.msra.mxu1 %v6121_v52  ;;  %v6138_v2 = vcombine.high %v113_v63, %v117_v0  ;;  %v6137_v4 = vcombine.low %v113_v63, %v117_v0  ;;  %v125_v8 = vld [vmem:[%s10526_s26 + $0xf8] sm:$0xff]  ;;  %v99_v52 = vld [vmem:[%s10526_s26 + $0x28] sm:$0xff] }
  0x10   :  { %v6140_v14 = vcombine.high %v118_v11, %v122_v12  ;;  %v126_v15 = vld [vmem:[%s10526_s26 + $0x100] sm:$0xff]  ;;  %v6139_v18 = vcombine.low %v118_v11, %v122_v12  ;;  %v8012_v34 = vpack.c.bf16 %v85_v30, %v83_v29  ;;  %1065 = vmatprep.subr.bf16.mxu1 %v6130_v58  ;;  %v6145_v12 = vcombine.low %v121_v7, %v125_v8  ;;  %v137_v27 = vld [vmem:[%s10526_s26 + $0x158] sm:$0xff] }
  0x11   :  { %907 = vmatpush1.bf16.msra.mxu0 %v6123_v9  ;;  %v130_v16 = vld [vmem:[%s10526_s26 + $0x120] sm:$0xff]  ;;  %v71_v30 = vunpack.c.2.s8 %v7990_v17  ;;  %v157_v58 = vld [vmem:[%s10526_s26 + $0x1f8] sm:$0xff] }
  0x12   :  { %908 = vmatprep.subr.bf16.mxu0 %v6132_v10  ;;  %v6148_v21 = vcombine.high %v126_v15, %v130_v16  ;;  %v134_v24 = vld [vmem:[%s10526_s26 + $0x140] sm:$0xff]  ;;  %v6147_v28 = vcombine.low %v126_v15, %v130_v16  ;;  %936 = vmatprep.mubr.bf16.mxu0 %v8012_v34  ;;  %v6146_v10 = vcombine.high %v121_v7, %v125_v8  ;;  %v129_v15 = vld [vmem:[%s10526_s26 + $0x118] sm:$0xff] }
  0x13   :  { %v138_v25 = vld [vmem:[%s10526_s26 + $0x160] sm:$0xff]  ;;  %1095 = vmatprep.mubr.bf16.mxu1 %v8012_v34  ;;  %1066 = vmatpush1.bf16.msra.mxu1 %v6129_v60  ;;  %v133_v16 = vld [vmem:[%s10526_s26 + $0x138] sm:$0xff] }
  0x14   :  { %v6156_v31 = vcombine.high %v134_v24, %v138_v25  ;;  %v142_v32 = vld [vmem:[%s10526_s26 + $0x180] sm:$0xff]  ;;  %v6155_v35 = vcombine.low %v134_v24, %v138_v25  ;;  %1067 = vmatprep.subr.bf16.mxu1 %v6138_v2  ;;  %v6154_v20 = vcombine.high %v129_v15, %v133_v16  ;;  %v6153_v22 = vcombine.low %v129_v15, %v133_v16  ;;  %v107_v2 = vld [vmem:[%s10526_s26 + $0x68] sm:$0xff]  ;;  %v165_v7 = vld [vmem:[%s10526_s26 + $0x238] sm:$0xff] }
  0x15   :  { %909 = vmatpush1.bf16.msra.mxu0 %v6131_v13  ;;  %v146_v33 = vld [vmem:[%s10526_s26 + $0x1a0] sm:$0xff]  ;;  %v111_v15 = vld [vmem:[%s10526_s26 + $0x88] sm:$0xff] }
  0x16   :  { %910 = vmatprep.subr.bf16.mxu0 %v6140_v14  ;;  %v6164_v36 = vcombine.high %v142_v32, %v146_v33  ;;  %v150_v37 = vld [vmem:[%s10526_s26 + $0x1c0] sm:$0xff]  ;;  %v6163_v39 = vcombine.low %v142_v32, %v146_v33  ;;  %v115_v16 = vld [vmem:[%s10526_s26 + $0xa8] sm:$0xff] }
  0x17   :  { %v154_v38 = vld [vmem:[%s10526_s26 + $0x1e0] sm:$0xff]  ;;  %1068 = vmatpush1.bf16.msra.mxu1 %v6137_v4 }
  0x18   :  { %v6172_v40 = vcombine.high %v150_v37, %v154_v38  ;;  %v158_v41 = vld [vmem:[%s10526_s26 + $0x200] sm:$0xff]  ;;  %v6171_v43 = vcombine.low %v150_v37, %v154_v38  ;;  %1069 = vmatprep.subr.bf16.mxu1 %v6146_v10 }
  0x19   :  { %911 = vmatpush1.bf16.msra.mxu0 %v6139_v18  ;;  %v162_v42 = vld [vmem:[%s10526_s26 + $0x220] sm:$0xff] }
  0x1a   :  { %912 = vmatprep.subr.bf16.mxu0 %v6148_v21  ;;  %v6180_v44 = vcombine.high %v158_v41, %v162_v42  ;;  %v166_v45 = vld [vmem:[%s10526_s26 + $0x240] sm:$0xff]  ;;  %v6179_v49 = vcombine.low %v158_v41, %v162_v42 }
  0x1b   :  { %v170_v46 = vld [vmem:[%s10526_s26 + $0x260] sm:$0xff]  ;;  %1070 = vmatpush1.bf16.msra.mxu1 %v6145_v12 }
  0x1c   :  { %v6188_v51 = vcombine.high %v166_v45, %v170_v46  ;;  %v174_v53 = vld [vmem:[%s10526_s26 + $0x280] sm:$0xff]  ;;  %v6187_v57 = vcombine.low %v166_v45, %v170_v46  ;;  %1071 = vmatprep.subr.bf16.mxu1 %v6154_v20  ;;  %v169_v20 = vld [vmem:[%s10526_s26 + $0x258] sm:$0xff] }
  0x1d   :  { %913 = vmatpush1.bf16.msra.mxu0 %v6147_v28  ;;  %v178_v54 = vld [vmem:[%s10526_s26 + $0x2a0] sm:$0xff]  ;;  %v141_v28 = vld [vmem:[%s10526_s26 + $0x178] sm:$0xff] }
  0x1e   :  { %914 = vmatprep.subr.bf16.mxu0 %v6156_v31  ;;  %v6196_v59 = vcombine.high %v174_v53, %v178_v54  ;;  %v182_v61 = vld [vmem:[%s10526_s26 + $0x2c0] sm:$0xff]  ;;  %v6195_v1 = vcombine.low %v174_v53, %v178_v54  ;;  %v73_v31 = vunpack.c.3.s8 %v7990_v17  ;;  %v6162_v32 = vcombine.high %v137_v27, %v141_v28  ;;  %v145_v17 = vld [vmem:[%s10526_s26 + $0x198] sm:$0xff] }
  0x1f   :  { %v186_v62 = vld [vmem:[%s10526_s26 + $0x2e0] sm:$0xff]  ;;  %1072 = vmatpush1.bf16.msra.mxu1 %v6153_v22  ;;  %v177_v22 = vld [vmem:[%s10526_s26 + $0x298] sm:$0xff] }
  0x20   :  { %v6204_v3 = vcombine.high %v182_v61, %v186_v62  ;;  %v190_v5 = vld [vmem:[%s10526_s26 + $0x300] sm:$0xff]  ;;  %v6203_v9 = vcombine.low %v182_v61, %v186_v62  ;;  %1073 = vmatprep.subr.bf16.mxu1 %v6162_v32  ;;  %v81_v45 = vcvt.s32.f32 %v73_v31  ;;  %v185_v31 = vld [vmem:[%s10526_s26 + $0x2d8] sm:$0xff] }
  0x21   :  { %915 = vmatpush1.bf16.msra.mxu0 %v6155_v35  ;;  %v194_v6 = vld [vmem:[%s10526_s26 + $0x320] sm:$0xff]  ;;  %v6161_v35 = vcombine.low %v137_v27, %v141_v28  ;;  %v6134_v27 = vcombine.high %v111_v15, %v115_v16  ;;  %v119_v28 = vld [vmem:[%s10526_s26 + $0xc8] sm:$0xff]  ;;  %v189_v32 = vld [vmem:[%s10526_s26 + $0x2f8] sm:$0xff] }
  0x22   :  { %916 = vmatprep.subr.bf16.mxu0 %v6164_v36  ;;  %v6212_v11 = vcombine.high %v190_v5, %v194_v6  ;;  %v198_v13 = vld [vmem:[%s10526_s26 + $0x340] sm:$0xff]  ;;  %v6211_v18 = vcombine.low %v190_v5, %v194_v6  ;;  %v161_v6 = vld [vmem:[%s10526_s26 + $0x218] sm:$0xff] }
  0x23   :  { %v202_v14 = vld [vmem:[%s10526_s26 + $0x360] sm:$0xff]  ;;  %1074 = vmatpush1.bf16.msra.mxu1 %v6161_v35  ;;  %v6186_v12 = vcombine.high %v161_v6, %v165_v7 }
  0x24   :  { %v8091_v19 = vld [vmem:[%s10527_s19] sm:$0xff]  ;;  %v6220_v21 = vcombine.high %v198_v13, %v202_v14  ;;  %v6219_v29 = vcombine.low %v198_v13, %v202_v14  ;;  %v6185_v14 = vcombine.low %v161_v6, %v165_v7  ;;  %v159_v7 = vld [vmem:[%s10526_s26 + $0x208] sm:$0xff] }
  0x25   :  { %917 = vmatpush1.bf16.msra.mxu0 %v6163_v39  ;;  %v206_v23 = vld [vmem:[%s10526_s26 + $0x380] sm:$0xff]  ;;  %v66_v25 = vunpack.c.0.s8 %v8091_v19  ;;  %v68_v26 = vunpack.c.1.s8 %v8091_v19  ;;  %v70_v55 = vunpack.c.2.s8 %v8091_v19  ;;  %v72_v56 = vunpack.c.3.s8 %v8091_v19 }
  0x26   :  { %918 = vmatprep.subr.bf16.mxu0 %v6172_v40  ;;  %v210_v24 = vld [vmem:[%s10526_s26 + $0x3a0] sm:$0xff]  ;;  %v149_v40 = vld [vmem:[%s10526_s26 + $0x1b8] sm:$0xff] }
  0x27   :  { %v6228_v33 = vcombine.high %v206_v23, %v210_v24  ;;  %v214_v36 = vld [vmem:[%s10526_s26 + $0x3c0] sm:$0xff]  ;;  %v74_v38 = vcvt.s32.f32 %v66_v25  ;;  %v76_v39 = vcvt.s32.f32 %v68_v26  ;;  %v6227_v41 = vcombine.low %v206_v23, %v210_v24  ;;  %v181_v26 = vld [vmem:[%s10526_s26 + $0x2b8] sm:$0xff] }
  0x28   :  { %v218_v37 = vld [vmem:[%s10526_s26 + $0x3e0] sm:$0xff]  ;;  %v6170_v46 = vcombine.high %v145_v17, %v149_v40  ;;  %v6169_v50 = vcombine.low %v145_v17, %v149_v40  ;;  %v78_v4 = vcvt.s32.f32 %v70_v55  ;;  %v80_v5 = vcvt.s32.f32 %v72_v56  ;;  %v197_v40 = vld [vmem:[%s10526_s26 + $0x338] sm:$0xff] }
  0x29   :  { %919 = vmatpush1.bf16.msra.mxu0 %v6171_v43  ;;  %v56_v42 = vld [vmem:[%s10506_s0] sm:$0xff]  ;;  %v58_v43 = vld [vmem:[%s10506_s0 + $0x10] sm:$0xff]  ;;  %v6236_v47 = vcombine.high %v214_v36, %v218_v37  ;;  %v6201_v35 = vcombine.low %v177_v22, %v181_v26  ;;  %v6210_v17 = vcombine.high %v185_v31, %v189_v32  ;;  %v213_v56 = vld [vmem:[%s10526_s26 + $0x3b8] sm:$0xff] }
  0x2a   :  { %920 = vmatprep.subr.bf16.mxu0 %v6180_v44  ;;  %v79_v44 = vcvt.s32.f32 %v71_v30  ;;  %1075 = vmatprep.subr.bf16.mxu1 %v6170_v46  ;;  %v82_v53 = vmul.f32 %v74_v38, %v56_v42  ;;  %v84_v54 = vmul.f32 %v76_v39, %v58_v43  ;;  %v60_v10 = vld [vmem:[%s10506_s0 + $0x20] sm:$0xff]  ;;  %v123_v30 = vld [vmem:[%s10526_s26 + $0xe8] sm:$0xff]  ;;  %v193_v38 = vld [vmem:[%s10526_s26 + $0x318] sm:$0xff]  ;;  %v6209_v42 = vcombine.low %v185_v31, %v189_v32 }
  0x2b   :  { %1076 = vmatpush1.bf16.msra.mxu1 %v6169_v50  ;;  %v6142_v39 = vcombine.high %v119_v28, %v123_v30  ;;  %v6141_v43 = vcombine.low %v119_v28, %v123_v30  ;;  %v201_v46 = vld [vmem:[%s10526_s26 + $0x358] sm:$0xff]  ;;  %v6217_v50 = vcombine.low %v193_v38, %v197_v40  ;;  %v187_v28 = vld [vmem:[%s10526_s26 + $0x2e8] sm:$0xff] }
  0x2c   :  { %v87_v60 = vmul.f32 %v79_v44, %v61_v48  ;;  %v135_v44 = vld [vmem:[%s10526_s26 + $0x148] sm:$0xff]  ;;  %v205_v48 = vld [vmem:[%s10526_s26 + $0x378] sm:$0xff] }
  0x2d   :  { %921 = vmatpush1.bf16.msra.mxu0 %v6179_v49  ;;  %v63_v49 = vld [vmem:[%s10506_s0 + $0x38] sm:$0xff]  ;;  %v191_v31 = vld [vmem:[%s10526_s26 + $0x308] sm:$0xff] }
  0x2e   :  { %922 = vmatprep.subr.bf16.mxu0 %v6188_v51  ;;  %v95_v51 = vld [vmem:[%s10526_s26 + $0x8] sm:$0xff]  ;;  %v89_v61 = vmul.f32 %v81_v45, %v63_v49  ;;  %v6218_v45 = vcombine.high %v193_v38, %v197_v40 }
  0x2f   :  { %v6118_v63 = vcombine.high %v95_v51, %v99_v52  ;;  %v6117_v8 = vcombine.low %v95_v51, %v99_v52  ;;  %v139_v49 = vld [vmem:[%s10526_s26 + $0x168] sm:$0xff] }
  0x30   :  { %v143_v52 = vld [vmem:[%s10526_s26 + $0x188] sm:$0xff]  ;;  %v6158_v55 = vcombine.high %v135_v44, %v139_v49 }
  0x31   :  { %923 = vmatpush1.bf16.msra.mxu0 %v6187_v57  ;;  %v153_v57 = vld [vmem:[%s10526_s26 + $0x1d8] sm:$0xff] }
  0x32   :  { %924 = vmatprep.subr.bf16.mxu0 %v6196_v59  ;;  %v6235_v59 = vcombine.low %v214_v36, %v218_v37  ;;  %v6178_v62 = vcombine.high %v153_v57, %v157_v58  ;;  %v6177_v0 = vcombine.low %v153_v57, %v157_v58  ;;  %v6133_v36 = vcombine.low %v111_v15, %v115_v16  ;;  %v127_v37 = vld [vmem:[%s10526_s26 + $0x108] sm:$0xff] }
  0x33   :  { %v147_v57 = vld [vmem:[%s10526_s26 + $0x1a8] sm:$0xff]  ;;  %v6225_v58 = vcombine.low %v201_v46, %v205_v48 }
  0x34   :  { %1077 = vmatprep.subr.bf16.mxu1 %v6178_v62  ;;  %v217_v62 = vld [vmem:[%s10526_s26 + $0x3d8] sm:$0xff]  ;;  %v171_v15 = vld [vmem:[%s10526_s26 + $0x268] sm:$0xff] }
  0x35   :  { %925 = vmatpush1.bf16.msra.mxu0 %v6195_v1  ;;  %v103_v1 = vld [vmem:[%s10526_s26 + $0x48] sm:$0xff]  ;;  %1078 = vmatpush1.bf16.msra.mxu1 %v6177_v0  ;;  %v221_v0 = vld [vmem:[%s10526_s26 + $0x3f8] sm:$0xff] }
  0x36   :  { %926 = vmatprep.subr.bf16.mxu0 %v6204_v3  ;;  %v8153_v3 = vpack.c.bf16 %v84_v54, %v82_v53  ;;  %v6126_v13 = vcombine.high %v103_v1, %v107_v2  ;;  %1079 = vmatprep.subr.bf16.mxu1 %v6186_v12  ;;  %v6125_v23 = vcombine.low %v103_v1, %v107_v2  ;;  %v209_v54 = vld [vmem:[%s10526_s26 + $0x398] sm:$0xff]  ;;  %v155_v1 = vld [vmem:[%s10526_s26 + $0x1e8] sm:$0xff] }
  0x37   :  { %v6226_v53 = vcombine.high %v201_v46, %v205_v48  ;;  %v6233_v2 = vcombine.low %v209_v54, %v213_v56  ;;  %v167_v12 = vld [vmem:[%s10526_s26 + $0x248] sm:$0xff] }
  0x38   :  { %v7037_v16 = vld [vmem:[%s10507_s6 + $0x8] ss:$16 sps:$4 sm:$0xff]   ;;  %v7057_v32 = vld [vmem:[%s10507_s6 + $0x6c] ss:$16 sps:$4 sm:$0xff]  }
  0x39   :  { %927 = vmatpush1.bf16.msra.mxu0 %v6203_v9  ;;  %v8161_v9 = vpack.c.bf16 %v89_v61, %v87_v60  ;;  %1080 = vmatpush1.bf16.msra.mxu1 %v6185_v14  ;;  %v151_v60 = vld [vmem:[%s10526_s26 + $0x1c8] sm:$0xff]  ;;  %v6234_v61 = vcombine.high %v209_v54, %v213_v56 }
  0x3a   :  { %928 = vmatprep.subr.bf16.mxu0 %v6212_v11  ;;  %v62_v11 = vld [vmem:[%s10506_s0 + $0x30] sm:$0xff]  ;;  %v6174_v6 = vcombine.high %v151_v60, %v155_v1  ;;  %v7067_v48 = vld [vmem:[%s10507_s6 + $0xa8] ss:$16 sps:$4 sm:$0xff]  }
  0x3b   :  { %v88_v19 = vmul.f32 %v80_v5, %v62_v11  ;;  %v6242_v5 = vcombine.high %v217_v62, %v221_v0  ;;  %v6173_v11 = vcombine.low %v151_v60, %v155_v1  ;;  %v7073_v54 = vld [vmem:[%s10507_s6 + $0xc8] ss:$16 sps:$4 sm:$0xff]  }
  0x3c   :  { %v7079_v60 = vld [vmem:[%s10507_s6 + $0xe8] ss:$16 sps:$4 sm:$0xff]  }
  0x3d   :  { %929 = vmatpush1.bf16.msra.mxu0 %v6211_v18  ;;  %v86_v18 = vmul.f32 %v78_v4, %v60_v10  ;;  %v6165_v4 = vcombine.low %v143_v52, %v147_v57  ;;  %v6241_v10 = vcombine.low %v217_v62, %v221_v0  ;;  %v108_v0 = vld [vmem:[%s10526_s26 + $0x70] sm:$0xff] }
  0x3e   :  { %930 = vmatprep.subr.bf16.mxu0 %v6220_v21  ;;  %v173_v21 = vld [vmem:[%s10526_s26 + $0x278] sm:$0xff] }
  0x3f   :  { %v6194_v24 = vcombine.high %v169_v20, %v173_v21  ;;  %v6193_v25 = vcombine.low %v169_v20, %v173_v21  ;;  %v7045_v20 = vld [vmem:[%s10507_s6 + $0x2c] ss:$16 sps:$4 sm:$0xff]   ;;  %v6190_v21 = vcombine.high %v167_v12, %v171_v15 }
  0x41   :  { %931 = vmatpush1.bf16.msra.mxu0 %v6219_v29  ;;  %v6202_v29 = vcombine.high %v177_v22, %v181_v26  ;;  %1081 = vmatprep.subr.bf16.mxu1 %v6194_v24  ;;  %v179_v22 = vld [vmem:[%s10526_s26 + $0x2a8] sm:$0xff]  ;;  %v6189_v24 = vcombine.low %v167_v12, %v171_v15 }
  0x42   :  { %932 = vmatprep.subr.bf16.mxu0 %v6228_v33  ;;  %v8201_v33 = vpack.c.bf16 %v88_v19, %v86_v18  ;;  %1082 = vmatpush1.bf16.msra.mxu1 %v6193_v25  ;;  %v175_v19 = vld [vmem:[%s10526_s26 + $0x288] sm:$0xff] }
  0x43   :  { %1083 = vmatprep.subr.bf16.mxu1 %v6202_v29  ;;  %v183_v25 = vld [vmem:[%s10526_s26 + $0x2c8] sm:$0xff]  ;;  %v6197_v30 = vcombine.low %v175_v19, %v179_v22 }
  0x44   :  { %v7051_v26 = vld [vmem:[%s10507_s6 + $0x4c] ss:$16 sps:$4 sm:$0xff]   ;;  %v7049_v29 = vld [vmem:[%s10507_s6 + $0x48] ss:$16 sps:$4 sm:$0xff]   ;;  %v6205_v38 = vcombine.low %v183_v25, %v187_v28 }
  0x45   :  { %933 = vmatpush1.bf16.msra.mxu0 %v6227_v41  ;;  %v131_v41 = vld [vmem:[%s10526_s26 + $0x128] sm:$0xff] }
  0x46   :  { %934 = vmatprep.subr.bf16.mxu0 %v6236_v47  ;;  %1084 = vmatpush1.bf16.msra.mxu1 %v6201_v35  ;;  %v6150_v47 = vcombine.high %v127_v37, %v131_v41  ;;  %v6149_v51 = vcombine.low %v127_v37, %v131_v41  ;;  %v6206_v35 = vcombine.high %v183_v25, %v187_v28  ;;  %v7055_v37 = vld [vmem:[%s10507_s6 + $0x68] ss:$16 sps:$4 sm:$0xff]  }
  0x47   :  { %1085 = vmatprep.subr.bf16.mxu1 %v6210_v17  ;;  %v7063_v17 = vld [vmem:[%s10507_s6 + $0x8c] ss:$16 sps:$4 sm:$0xff]  }
  0x48   :  { %v203_v41 = vld [vmem:[%s10526_s26 + $0x368] sm:$0xff] }
  0x49   :  { %935 = vmatpush1.bf16.msra.mxu0 %v6235_v59  ;;  %v6157_v59 = vcombine.low %v135_v44, %v139_v49  ;;  %v207_v44 = vld [vmem:[%s10526_s26 + $0x388] sm:$0xff] }
  0x4a   :  { %957 = vmatprep.subr.bf16.mxu0 %v6118_v63  ;;  %1086 = vmatpush1.bf16.msra.mxu1 %v6209_v42  ;;  %v6166_v63 = vcombine.high %v143_v52, %v147_v57  ;;  %v7061_v42 = vld [vmem:[%s10507_s6 + $0x88] ss:$16 sps:$4 sm:$0xff]   ;;  %v7075_v49 = vld [vmem:[%s10507_s6 + $0xcc] ss:$16 sps:$4 sm:$0xff]   ;;  %v96_v57 = vld [vmem:[%s10526_s26 + $0x10] sm:$0xff] }
  0x4b   :  { %1087 = vmatprep.subr.bf16.mxu1 %v6218_v45  ;;  %v7069_v45 = vld [vmem:[%s10507_s6 + $0xac] ss:$16 sps:$4 sm:$0xff]  }
  0x4c   :  { %937 = vmatmul.mubr.bf16.vlgmr.msra.gmra.mrb[0].mxu0 %v8153_v3  ;;  %v219_v52 = vld [vmem:[%s10526_s26 + $0x3e8] sm:$0xff] }
  0x4d   :  { %958 = vmatpush1.bf16.msra.mxu0 %v6117_v8  ;;  %946 = vmatprep.mubr.bf16.mxu0 %v8161_v9  ;;  %v163_v8 = vld [vmem:[%s10526_s26 + $0x228] sm:$0xff] }
  0x4e   :  { %959 = vmatprep.subr.bf16.mxu0 %v6126_v13  ;;  %1088 = vmatpush1.bf16.msra.mxu1 %v6217_v50  ;;  %v7039_v13 = vld [vmem:[%s10507_s6 + $0xc] ss:$16 sps:$4 sm:$0xff]   ;;  %v6182_v14 = vcombine.high %v159_v7, %v163_v8  ;;  %v6181_v18 = vcombine.low %v159_v7, %v163_v8  ;;  %v116_v7 = vld [vmem:[%s10526_s26 + $0xb0] sm:$0xff] }
  0x4f   :  { %1089 = vmatprep.subr.bf16.mxu1 %v6226_v53 }
  0x51   :  { %960 = vmatpush1.bf16.msra.mxu0 %v6125_v23  ;;  %v7043_v23 = vld [vmem:[%s10507_s6 + $0x28] ss:$16 sps:$4 sm:$0xff]  }
  0x52   :  { %961 = vmatprep.subr.bf16.mxu0 %v6134_v27  ;;  %1090 = vmatpush1.bf16.msra.mxu1 %v6225_v58  ;;  %v6198_v27 = vcombine.high %v175_v19, %v179_v22  ;;  %v100_v58 = vld [vmem:[%s10526_s26 + $0x30] sm:$0xff] }
  0x53   :  { %1091 = vmatprep.subr.bf16.mxu1 %v6234_v61  ;;  %v7087_v61 = vld [vmem:[%s10507_s6 + $0x10c] ss:$16 sps:$4 sm:$0xff]   ;;  %v6120_v1 = vcombine.high %v96_v57, %v100_v58 }
  0x54   :  { %947 = vmatmul.mubr.bf16.gmra.mrb[4].mxu0 %v8201_v33 }
  0x55   :  { %962 = vmatpush1.bf16.msra.mxu0 %v6133_v36  ;;  %989 = vmatprep.mubr.bf16.mxu0 %v8012_v34  ;;  %v195_v36 = vld [vmem:[%s10526_s26 + $0x328] sm:$0xff] }
  0x56   :  { %963 = vmatprep.subr.bf16.mxu0 %v6142_v39  ;;  %1092 = vmatpush1.bf16.msra.mxu1 %v6233_v2  ;;  %v199_v39 = vld [vmem:[%s10526_s26 + $0x348] sm:$0xff]  ;;  %v6214_v40 = vcombine.high %v191_v31, %v195_v36 }
  0x57   :  { %1093 = vmatprep.subr.bf16.mxu1 %v6242_v5  ;;  %v6222_v46 = vcombine.high %v199_v39, %v203_v41  ;;  %v6221_v50 = vcombine.low %v199_v39, %v203_v41  ;;  %v7085_v2 = vld [vmem:[%s10507_s6 + $0x108] ss:$16 sps:$4 sm:$0xff]   ;;  %v6119_v5 = vcombine.low %v96_v57, %v100_v58  ;;  %v160_v41 = vld [vmem:[%s10526_s26 + $0x210] sm:$0xff] }
  0x58   :  { %v7115_v39 = vld [vmem:[%s10507_s6 + $0x1a8] ss:$16 sps:$4 sm:$0xff]  }
  0x59   :  { %964 = vmatpush1.bf16.msra.mxu0 %v6141_v43  ;;  %v6213_v43 = vcombine.low %v191_v31, %v195_v36  ;;  %v144_v31 = vld [vmem:[%s10526_s26 + $0x190] sm:$0xff]  ;;  %v7117_v36 = vld [vmem:[%s10507_s6 + $0x1ac] ss:$16 sps:$4 sm:$0xff]  }
  0x5a   :  { %965 = vmatprep.subr.bf16.mxu0 %v6150_v47  ;;  %1094 = vmatpush1.bf16.msra.mxu1 %v6241_v10  ;;  %v211_v47 = vld [vmem:[%s10526_s26 + $0x3a8] sm:$0xff] }
  0x5b   :  { %3038 = vmatprep.subr.bf16.mxu1 %v7039_v13  ;;  %v6230_v53 = vcombine.high %v207_v44, %v211_v47  ;;  %v6229_v56 = vcombine.low %v207_v44, %v211_v47  ;;  %v7091_v10 = vld [vmem:[%s10507_s6 + $0x128] ss:$16 sps:$4 sm:$0xff]   ;;  %v120_v13 = vld [vmem:[%s10526_s26 + $0xd0] sm:$0xff] }
  0x5c   :  { %v164_v44 = vld [vmem:[%s10526_s26 + $0x230] sm:$0xff] }
  0x5d   :  { %966 = vmatpush1.bf16.msra.mxu0 %v6149_v51  ;;  %1096 = vmatmul.mubr.bf16.vlgmr.msra.gmra.mrb[0].mxu1 %v8153_v3  ;;  %v215_v51 = vld [vmem:[%s10526_s26 + $0x3c8] sm:$0xff]  ;;  %v168_v47 = vld [vmem:[%s10526_s26 + $0x250] sm:$0xff] }
  0x5e   :  { %967 = vmatprep.subr.bf16.mxu0 %v6158_v55  ;;  %3039 = vmatpush1.bf16.msra.mxu1 %v7037_v16  ;;  %v7081_v55 = vld [vmem:[%s10507_s6 + $0xec] ss:$16 sps:$4 sm:$0xff]   ;;  %v6237_v62 = vcombine.low %v215_v51, %v219_v52  ;;  %v7097_v16 = vld [vmem:[%s10507_s6 + $0x148] ss:$16 sps:$4 sm:$0xff]  }
  0x5f   :  { %1105 = vmatprep.mubr.bf16.mxu1 %v8161_v9  ;;  %3040 = vmatprep.subr.bf16.mxu1 %v7045_v20  ;;  %v128_v20 = vld [vmem:[%s10526_s26 + $0x110] sm:$0xff] }
  0x61   :  { %968 = vmatpush1.bf16.msra.mxu0 %v6157_v59  ;;  %v6238_v59 = vcombine.high %v215_v51, %v219_v52  ;;  %v7127_v51 = vld [vmem:[%s10507_s6 + $0x1e8] ss:$16 sps:$4 sm:$0xff]   ;;  %v6183_v52 = vcombine.low %v160_v41, %v164_v44 }
  0x62   :  { %969 = vmatprep.subr.bf16.mxu0 %v6166_v63  ;;  %3041 = vmatpush1.bf16.msra.mxu1 %v7043_v23  ;;  %v104_v63 = vld [vmem:[%s10526_s26 + $0x50] sm:$0xff]  ;;  %v7103_v23 = vld [vmem:[%s10507_s6 + $0x168] ss:$16 sps:$4 sm:$0xff]  }
  0x63   :  { %3042 = vmatprep.subr.bf16.mxu1 %v7051_v26  ;;  %v6128_v8 = vcombine.high %v104_v63, %v108_v0  ;;  %v6127_v12 = vcombine.low %v104_v63, %v108_v0  ;;  %v136_v26 = vld [vmem:[%s10526_s26 + $0x150] sm:$0xff] }
  0x64   :  { %v192_v63 = vld [vmem:[%s10526_s26 + $0x310] sm:$0xff] }
  0x65   :  { %970 = vmatpush1.bf16.msra.mxu0 %v6165_v4  ;;  %1106 = vmatmul.mubr.bf16.gmra.mrb[4].mxu1 %v8201_v33  ;;  %v7093_v4 = vld [vmem:[%s10507_s6 + $0x12c] ss:$16 sps:$4 sm:$0xff]   ;;  %v196_v0 = vld [vmem:[%s10526_s26 + $0x330] sm:$0xff] }
  0x66   :  { %971 = vmatprep.subr.bf16.mxu0 %v6174_v6  ;;  %3043 = vmatpush1.bf16.msra.mxu1 %v7049_v29  ;;  %v112_v6 = vld [vmem:[%s10526_s26 + $0x90] sm:$0xff]  ;;  %v7109_v29 = vld [vmem:[%s10507_s6 + $0x188] ss:$16 sps:$4 sm:$0xff]  }
  0x67   :  { %3044 = vmatprep.subr.bf16.mxu1 %v7057_v32  ;;  %v6136_v15 = vcombine.high %v112_v6, %v116_v7  ;;  %v6135_v19 = vcombine.low %v112_v6, %v116_v7  ;;  %v148_v32 = vld [vmem:[%s10526_s26 + $0x1b0] sm:$0xff]  ;;  %v6215_v6 = vcombine.low %v192_v63, %v196_v0 }
  0x69   :  { %972 = vmatpush1.bf16.msra.mxu0 %v6173_v11  ;;  %v7099_v11 = vld [vmem:[%s10507_s6 + $0x14c] ss:$16 sps:$4 sm:$0xff]  }
  0x6a   :  { %973 = vmatprep.subr.bf16.mxu0 %v6182_v14  ;;  %3045 = vmatpush1.bf16.msra.mxu1 %v7055_v37  ;;  %v124_v14 = vld [vmem:[%s10526_s26 + $0xf0] sm:$0xff]  ;;  %v6168_v37 = vcombine.high %v144_v31, %v148_v32 }
  0x6b   :  { %3046 = vmatprep.subr.bf16.mxu1 %v7063_v17  ;;  %v6144_v22 = vcombine.high %v120_v13, %v124_v14  ;;  %v6143_v25 = vcombine.low %v120_v13, %v124_v14  ;;  %v156_v17 = vld [vmem:[%s10526_s26 + $0x1f0] sm:$0xff] }
  0x6c   :  { %v216_v13 = vld [vmem:[%s10526_s26 + $0x3d0] sm:$0xff] }
  0x6d   :  { %974 = vmatpush1.bf16.msra.mxu0 %v6181_v18  ;;  %v7105_v18 = vld [vmem:[%s10507_s6 + $0x16c] ss:$16 sps:$4 sm:$0xff]   ;;  %v220_v14 = vld [vmem:[%s10526_s26 + $0x3f0] sm:$0xff] }
  0x6e   :  { %975 = vmatprep.subr.bf16.mxu0 %v6190_v21  ;;  %3047 = vmatpush1.bf16.msra.mxu1 %v7061_v42  ;;  %v132_v21 = vld [vmem:[%s10526_s26 + $0x130] sm:$0xff]  ;;  %v7123_v42 = vld [vmem:[%s10507_s6 + $0x1cc] ss:$16 sps:$4 sm:$0xff]  }
  0x6f   :  { %3048 = vmatprep.subr.bf16.mxu1 %v7069_v45  ;;  %v6152_v28 = vcombine.high %v128_v20, %v132_v21  ;;  %v7121_v45 = vld [vmem:[%s10507_s6 + $0x1c8] ss:$16 sps:$4 sm:$0xff]  }
  0x71   :  { %976 = vmatpush1.bf16.msra.mxu0 %v6189_v24  ;;  %v7111_v24 = vld [vmem:[%s10507_s6 + $0x18c] ss:$16 sps:$4 sm:$0xff]  }
  0x72   :  { %977 = vmatprep.subr.bf16.mxu0 %v6198_v27  ;;  %3049 = vmatpush1.bf16.msra.mxu1 %v7067_v48  ;;  %v140_v27 = vld [vmem:[%s10526_s26 + $0x170] sm:$0xff]  ;;  %v7129_v48 = vld [vmem:[%s10507_s6 + $0x1ec] ss:$16 sps:$4 sm:$0xff]  }
  0x73   :  { %3050 = vmatprep.subr.bf16.mxu1 %v7075_v49  ;;  %v6184_v49 = vcombine.high %v160_v41, %v164_v44  ;;  %v7106_v41 = vld [vmem:[%s10507_s6 + $0x180] ss:$16 sps:$4 sm:$0xff]   ;;  %v7120_v44 = vld [vmem:[%s10507_s6 + $0x1c4] ss:$16 sps:$4 sm:$0xff]  }
  0x75   :  { %978 = vmatpush1.bf16.msra.mxu0 %v6197_v30  ;;  %v6151_v30 = vcombine.low %v128_v20, %v132_v21  ;;  %v7034_v20 = vld [vmem:[%s10507_s6] ss:$16 sps:$4 sm:$0xff]   ;;  %v7042_v21 = vld [vmem:[%s10507_s6 + $0x24] ss:$16 sps:$4 sm:$0xff]  }
  0x76   :  { %979 = vmatprep.subr.bf16.mxu0 %v6206_v35  ;;  %3051 = vmatpush1.bf16.msra.mxu1 %v7073_v54  ;;  %v6159_v35 = vcombine.low %v136_v26, %v140_v27 }
  0x77   :  { %3052 = vmatprep.subr.bf16.mxu1 %v7081_v55  ;;  %v176_v55 = vld [vmem:[%s10526_s26 + $0x290] sm:$0xff] }
  0x79   :  { %980 = vmatpush1.bf16.msra.mxu0 %v6205_v38  ;;  %v152_v38 = vld [vmem:[%s10526_s26 + $0x1d0] sm:$0xff] }
  0x7a   :  { %981 = vmatprep.subr.bf16.mxu0 %v6214_v40  ;;  %3053 = vmatpush1.bf16.msra.mxu1 %v7079_v60  ;;  %v6167_v40 = vcombine.low %v144_v31, %v148_v32  ;;  %v188_v60 = vld [vmem:[%s10526_s26 + $0x2f0] sm:$0xff] }
  0x7b   :  { %3054 = vmatprep.subr.bf16.mxu1 %v7087_v61  ;;  %v7076_v31 = vld [vmem:[%s10507_s6 + $0xe0] ss:$16 sps:$4 sm:$0xff]   ;;  %v7084_v32 = vld [vmem:[%s10507_s6 + $0x104] ss:$16 sps:$4 sm:$0xff]  }
  0x7d   :  { %982 = vmatpush1.bf16.msra.mxu0 %v6213_v43  ;;  %v6176_v43 = vcombine.high %v152_v38, %v156_v17 }
  0x7e   :  { %983 = vmatprep.subr.bf16.mxu0 %v6222_v46  ;;  %3055 = vmatpush1.bf16.msra.mxu1 %v7085_v2  ;;  %v6175_v46 = vcombine.low %v152_v38, %v156_v17  ;;  %v6216_v2 = vcombine.high %v192_v63, %v196_v0  ;;  %v7094_v38 = vld [vmem:[%s10507_s6 + $0x140] ss:$16 sps:$4 sm:$0xff]  }
  0x7f   :  { %3056 = vmatprep.subr.bf16.mxu1 %v7093_v4  ;;  %v200_v4 = vld [vmem:[%s10526_s26 + $0x350] sm:$0xff] }
  0x80   :  { %v7100_v17 = vld [vmem:[%s10507_s6 + $0x160] ss:$16 sps:$4 sm:$0xff]  }
  0x81   :  { %984 = vmatpush1.bf16.msra.mxu0 %v6221_v50  ;;  %v172_v50 = vld [vmem:[%s10526_s26 + $0x270] sm:$0xff] }
  0x82   :  { %985 = vmatprep.subr.bf16.mxu0 %v6230_v53  ;;  %3057 = vmatpush1.bf16.msra.mxu1 %v7091_v10  ;;  %v7135_v53 = vld [vmem:[%s10507_s6 + $0x20c] ss:$16 sps:$4 sm:$0xff]   ;;  %v6192_v54 = vcombine.high %v168_v47, %v172_v50  ;;  %v6191_v57 = vcombine.low %v168_v47, %v172_v50  ;;  %v212_v10 = vld [vmem:[%s10526_s26 + $0x3b0] sm:$0xff] }
  0x83   :  { %3058 = vmatprep.subr.bf16.mxu1 %v7099_v11  ;;  %v7124_v47 = vld [vmem:[%s10507_s6 + $0x1e0] ss:$16 sps:$4 sm:$0xff]  }
  0x85   :  { %986 = vmatpush1.bf16.msra.mxu0 %v6229_v56  ;;  %v180_v56 = vld [vmem:[%s10526_s26 + $0x2b0] sm:$0xff] }
  0x86   :  { %987 = vmatprep.subr.bf16.mxu0 %v6238_v59  ;;  %3059 = vmatpush1.bf16.msra.mxu1 %v7097_v16  ;;  %v6200_v58 = vcombine.high %v176_v55, %v180_v56  ;;  %v184_v59 = vld [vmem:[%s10526_s26 + $0x2d0] sm:$0xff]  ;;  %v6199_v61 = vcombine.low %v176_v55, %v180_v56  ;;  %v6240_v16 = vcombine.high %v216_v13, %v220_v14  ;;  %v1149_v56 = vld [vmem:[%s10509_s2 + $0x8] sm:$0xff] }
  0x87   :  { %3060 = vmatprep.subr.bf16.mxu1 %v7105_v18  ;;  %v6239_v18 = vcombine.low %v216_v13, %v220_v14 }
  0x89   :  { %988 = vmatpush1.bf16.msra.mxu0 %v6237_v62  ;;  %v6208_v62 = vcombine.high %v184_v59, %v188_v60 }
  0x8a   :  { %1010 = vmatprep.subr.bf16.mxu0 %v6120_v1  ;;  %3061 = vmatpush1.bf16.msra.mxu1 %v7103_v23  ;;  %v6207_v1 = vcombine.low %v184_v59, %v188_v60  ;;  %v7048_v23 = vld [vmem:[%s10507_s6 + $0x44] ss:$16 sps:$4 sm:$0xff]  }
  0x8b   :  { %3062 = vmatprep.subr.bf16.mxu1 %v7111_v24  ;;  %v7046_v24 = vld [vmem:[%s10507_s6 + $0x40] ss:$16 sps:$4 sm:$0xff]  }
  0x8c   :  { %990 = vmatmul.mubr.bf16.vlgmr.msra.gmra.mrb[8].mxu0 %v8153_v3 }
  0x8d   :  { %1011 = vmatpush1.bf16.msra.mxu0 %v6119_v5  ;;  %999 = vmatprep.mubr.bf16.mxu0 %v8161_v9  ;;  %v204_v5 = vld [vmem:[%s10526_s26 + $0x370] sm:$0xff] }
  0x8e   :  { %1012 = vmatprep.subr.bf16.mxu0 %v6128_v8  ;;  %3063 = vmatpush1.bf16.msra.mxu1 %v7109_v29  ;;  %v6224_v7 = vcombine.high %v200_v4, %v204_v5  ;;  %v208_v8 = vld [vmem:[%s10526_s26 + $0x390] sm:$0xff]  ;;  %v6223_v11 = vcombine.low %v200_v4, %v204_v5 }
  0x8f   :  { %3064 = vmatprep.subr.bf16.mxu1 %v7117_v36  ;;  %v7070_v29 = vld [vmem:[%s10507_s6 + $0xc0] ss:$16 sps:$4 sm:$0xff]  }
  0x90   :  { %v7088_v36 = vld [vmem:[%s10507_s6 + $0x120] ss:$16 sps:$4 sm:$0xff]  }
  0x91   :  { %1013 = vmatpush1.bf16.msra.mxu0 %v6127_v12  ;;  %v6232_v12 = vcombine.high %v208_v8, %v212_v10 }
  0x92   :  { %1014 = vmatprep.subr.bf16.mxu0 %v6136_v15  ;;  %3065 = vmatpush1.bf16.msra.mxu1 %v7115_v39  ;;  %v6231_v15 = vcombine.low %v208_v8, %v212_v10  ;;  %v7102_v39 = vld [vmem:[%s10507_s6 + $0x164] ss:$16 sps:$4 sm:$0xff]  }
  0x93   :  { %3066 = vmatprep.subr.bf16.mxu1 %v7123_v42  ;;  %v7114_v42 = vld [vmem:[%s10507_s6 + $0x1a4] ss:$16 sps:$4 sm:$0xff]  }
  0x94   :  { %1000 = vmatmul.mubr.bf16.gmra.mrb[12].mxu0 %v8201_v33 }
  0x95   :  { %1015 = vmatpush1.bf16.msra.mxu0 %v6135_v19  ;;  %1042 = vmatprep.mubr.bf16.mxu0 %v8012_v34  ;;  %v6160_v34 = vcombine.high %v136_v26, %v140_v27  ;;  %v7036_v19 = vld [vmem:[%s10507_s6 + $0x4] ss:$16 sps:$4 sm:$0xff]   ;;  %v7058_v26 = vld [vmem:[%s10507_s6 + $0x80] ss:$16 sps:$4 sm:$0xff]  }
  0x96   :  { %1016 = vmatprep.subr.bf16.mxu0 %v6144_v22  ;;  %3067 = vmatpush1.bf16.msra.mxu1 %v7121_v45  ;;  %v7040_v22 = vld [vmem:[%s10507_s6 + $0x20] ss:$16 sps:$4 sm:$0xff]  }
  0x97   :  { %3068 = vmatprep.subr.bf16.mxu1 %v7129_v48  ;;  %v7064_v27 = vld [vmem:[%s10507_s6 + $0xa0] ss:$16 sps:$4 sm:$0xff]   ;;  %v7132_v48 = vld [vmem:[%s10507_s6 + $0x204] ss:$16 sps:$4 sm:$0xff]  }
  0x98   :  { %v7118_v45 = vld [vmem:[%s10507_s6 + $0x1c0] ss:$16 sps:$4 sm:$0xff]  }
  0x99   :  { %1017 = vmatpush1.bf16.msra.mxu0 %v6143_v25  ;;  %v7060_v25 = vld [vmem:[%s10507_s6 + $0x84] ss:$16 sps:$4 sm:$0xff]  }
  0x9a   :  { %1018 = vmatprep.subr.bf16.mxu0 %v6152_v28  ;;  %3069 = vmatpush1.bf16.msra.mxu1 %v7127_v51  ;;  %v7072_v28 = vld [vmem:[%s10507_s6 + $0xc4] ss:$16 sps:$4 sm:$0xff]  }
  0x9b   :  { %3091 = vmatprep.subr.bf16.mxu1 %v7135_v53 }
  0x9d   :  { %1019 = vmatpush1.bf16.msra.mxu0 %v6151_v30  ;;  %v7078_v30 = vld [vmem:[%s10507_s6 + $0xe4] ss:$16 sps:$4 sm:$0xff]  }
  0x9e   :  { %1020 = vmatprep.subr.bf16.mxu0 %v6160_v34  ;;  %v7082_v34 = vld [vmem:[%s10507_s6 + $0x100] ss:$16 sps:$4 sm:$0xff]  }
  0xa1   :  { %1021 = vmatpush1.bf16.msra.mxu0 %v6159_v35  ;;  %v7090_v35 = vld [vmem:[%s10507_s6 + $0x124] ss:$16 sps:$4 sm:$0xff]  }
  0xa2   :  { %1022 = vmatprep.subr.bf16.mxu0 %v6168_v37  ;;  %v7096_v37 = vld [vmem:[%s10507_s6 + $0x144] ss:$16 sps:$4 sm:$0xff]  }
  0xa5   :  { %1023 = vmatpush1.bf16.msra.mxu0 %v6167_v40  ;;  %v7108_v40 = vld [vmem:[%s10507_s6 + $0x184] ss:$16 sps:$4 sm:$0xff]  }
  0xa6   :  { %1024 = vmatprep.subr.bf16.mxu0 %v6176_v43  ;;  %v7112_v43 = vld [vmem:[%s10507_s6 + $0x1a0] ss:$16 sps:$4 sm:$0xff]  }
  0xa9   :  { %1025 = vmatpush1.bf16.msra.mxu0 %v6175_v46  ;;  %v7126_v46 = vld [vmem:[%s10507_s6 + $0x1e4] ss:$16 sps:$4 sm:$0xff]  }
  0xaa   :  { %1026 = vmatprep.subr.bf16.mxu0 %v6184_v49  ;;  %v224_v49 = vlaneseq }
  0xac   :  { %v8605_v50 = vshrl.u32 %v224_v49, 7  ;;  %v7147_v49 = vld [vmem:[%s10507_s6 + $0x24c] ss:$16 sps:$4 sm:$0xff]  }
  0xad   :  { %1027 = vmatpush1.bf16.msra.mxu0 %v6183_v52  ;;  %v8613_v52 = vld [vmem:[%s10508_s5] sm:$0xff] }
  0xae   :  { %1028 = vmatprep.subr.bf16.mxu0 %v6192_v54  ;;  %v8608_v51 = vsub.s32 0, %v8605_v50  ;;  %v8616_v53 = vsub.s32 1, %v8605_v50  ;;  %v1148_v54 = vld [vmem:[%s10509_s2] sm:$0xff] }
  0xaf   :  { %v1164_v59 = vunpack.c.1.s8 %v1148_v54 }
  0xb0   :  { %v227_v55 = vrot.slane %v8613_v52, %v8608_v51 }
  0xb1   :  { %1029 = vmatpush1.bf16.msra.mxu0 %v6191_v57  ;;  %v231_v57 = vrot.slane %v8613_v52, %v8616_v53 }
  0xb2   :  { %1030 = vmatprep.subr.bf16.mxu0 %v6200_v58  ;;  %v1156_v58 = vunpack.c.0.s8 %v1148_v54 }
  0xb4   :  { %v1188_v5 = vcvt.s32.f32 %v1156_v58  ;;  %v7145_v58 = vld [vmem:[%s10507_s6 + $0x248] ss:$16 sps:$4 sm:$0xff]  }
  0xb5   :  { %1031 = vmatpush1.bf16.msra.mxu0 %v6199_v61  ;;  %v1157_v61 = vunpack.c.0.s8 %v1149_v56 }
  0xb6   :  { %1032 = vmatprep.subr.bf16.mxu0 %v6208_v62  ;;  %v1165_v62 = vunpack.c.1.s8 %v1149_v56 }
  0xb8   :  { %v1197_v13 = vcvt.s32.f32 %v1165_v62  ;;  %v7148_v62 = vld [vmem:[%s10507_s6 + $0x260] ss:$16 sps:$4 sm:$0xff]  }
  0xb9   :  { %1033 = vmatpush1.bf16.msra.mxu0 %v6207_v1 }
  0xba   :  { %1034 = vmatprep.subr.bf16.mxu0 %v6216_v2 }
  0xbd   :  { %1035 = vmatpush1.bf16.msra.mxu0 %v6215_v6 }
  0xbe   :  { %1036 = vmatprep.subr.bf16.mxu0 %v6224_v7  ;;  %v1196_v7 = vcvt.s32.f32 %v1164_v59 }
  0xc1   :  { %1037 = vmatpush1.bf16.msra.mxu0 %v6223_v11  ;;  %v1189_v11 = vcvt.s32.f32 %v1157_v61  ;;  %v7153_v61 = vld [vmem:[%s10507_s6 + $0x26c] ss:$16 sps:$4 sm:$0xff]  }
  0xc2   :  { %1038 = vmatprep.subr.bf16.mxu0 %v6232_v12 }
  0xc5   :  { %1039 = vmatpush1.bf16.msra.mxu0 %v6231_v15  ;;  %v1172_v15 = vunpack.c.2.s8 %v1148_v54 }
  0xc6   :  { %1040 = vmatprep.subr.bf16.mxu0 %v6240_v16 }
  0xc9   :  { %1041 = vmatpush1.bf16.msra.mxu0 %v6239_v18  ;;  %v1173_v18 = vunpack.c.2.s8 %v1149_v56 }
  0xca   :  { %2826 = vmatprep.subr.bf16.mxu0 %v7036_v19 }
  0xcc   :  { %1043 = vmatmul.mubr.bf16.vlgmr.msra.gmra.mrb[16].mxu0 %v8153_v3  ;;  %v7054_v3 = vld [vmem:[%s10507_s6 + $0x64] ss:$16 sps:$4 sm:$0xff]  }
  0xcd   :  { %2827 = vmatpush1.bf16.msra.mxu0 %v7034_v20  ;;  %1052 = vmatprep.mubr.bf16.mxu0 %v8161_v9  ;;  %v7052_v9 = vld [vmem:[%s10507_s6 + $0x60] ss:$16 sps:$4 sm:$0xff]  }
  0xce   :  { %2828 = vmatprep.subr.bf16.mxu0 %v7042_v21  ;;  %v1180_v21 = vunpack.c.3.s8 %v1148_v54 }
  0xd1   :  { %2829 = vmatpush1.bf16.msra.mxu0 %v7040_v22 }
  0xd2   :  { %2830 = vmatprep.subr.bf16.mxu0 %v7048_v23 }
  0xd4   :  { %1053 = vmatmul.mubr.bf16.gmra.mrb[20].mxu0 %v8201_v33  ;;  %v7066_v33 = vld [vmem:[%s10507_s6 + $0xa4] ss:$16 sps:$4 sm:$0xff]  }
  0xd5   :  { %2831 = vmatpush1.bf16.msra.mxu0 %v7046_v24 }
  0xd6   :  { %2832 = vmatprep.subr.bf16.mxu0 %v7054_v3  ;;  %v1181_v3 = vunpack.c.3.s8 %v1149_v56 }
  0xd9   :  { %2833 = vmatpush1.bf16.msra.mxu0 %v7052_v9 }
  0xda   :  { %2834 = vmatprep.subr.bf16.mxu0 %v7060_v25 }
  0xdd   :  { %2835 = vmatpush1.bf16.msra.mxu0 %v7058_v26  ;;  %v1204_v26 = vcvt.s32.f32 %v1172_v15  ;;  %v7177_v15 = vld [vmem:[%s10507_s6 + $0x2ec] ss:$16 sps:$4 sm:$0xff]  }
  0xde   :  { %2836 = vmatprep.subr.bf16.mxu0 %v7066_v33 }
  0xe1   :  { %2837 = vmatpush1.bf16.msra.mxu0 %v7064_v27 }
  0xe2   :  { %2838 = vmatprep.subr.bf16.mxu0 %v7072_v28  ;;  %v7130_v28 = vld [vmem:[%s10507_s6 + $0x200] ss:$16 sps:$4 sm:$0xff]  }
  0xe5   :  { %2839 = vmatpush1.bf16.msra.mxu0 %v7070_v29  ;;  %v7133_v29 = vld [vmem:[%s10507_s6 + $0x208] ss:$16 sps:$4 sm:$0xff]  }
  0xe6   :  { %2840 = vmatprep.subr.bf16.mxu0 %v7078_v30 }
  0xe9   :  { %2841 = vmatpush1.bf16.msra.mxu0 %v7076_v31  ;;  %v1205_v31 = vcvt.s32.f32 %v1173_v18  ;;  %v7175_v18 = vld [vmem:[%s10507_s6 + $0x2e8] ss:$16 sps:$4 sm:$0xff]  }
  0xea   :  { %2842 = vmatprep.subr.bf16.mxu0 %v7084_v32 }
  0xed   :  { %2843 = vmatpush1.bf16.msra.mxu0 %v7082_v34  ;;  %v7138_v34 = vld [vmem:[%s10507_s6 + $0x224] ss:$16 sps:$4 sm:$0xff]  }
  0xee   :  { %2844 = vmatprep.subr.bf16.mxu0 %v7090_v35  ;;  %v7141_v35 = vld [vmem:[%s10507_s6 + $0x22c] ss:$16 sps:$4 sm:$0xff]  }
  0xf1   :  { %2845 = vmatpush1.bf16.msra.mxu0 %v7088_v36 }
  0xf2   :  { %2846 = vmatprep.subr.bf16.mxu0 %v7096_v37 }
  0xf5   :  { %2847 = vmatpush1.bf16.msra.mxu0 %v7094_v38  ;;  %v1212_v38 = vcvt.s32.f32 %v1180_v21  ;;  %v7178_v21 = vld [vmem:[%s10507_s6 + $0x300] ss:$16 sps:$4 sm:$0xff]  }
  0xf6   :  { %2848 = vmatprep.subr.bf16.mxu0 %v7102_v39 }
  0xf9   :  { %2849 = vmatpush1.bf16.msra.mxu0 %v7100_v17 }
  0xfa   :  { %2850 = vmatprep.subr.bf16.mxu0 %v7108_v40 }
  0xfd   :  { %2851 = vmatpush1.bf16.msra.mxu0 %v7106_v41  ;;  %v1213_v41 = vcvt.s32.f32 %v1181_v3  ;;  %v7184_v3 = vld [vmem:[%s10507_s6 + $0x320] ss:$16 sps:$4 sm:$0xff]  }
  0xfe   :  { %2852 = vmatprep.subr.bf16.mxu0 %v7114_v42 }
 0x101   :  { %2853 = vmatpush1.bf16.msra.mxu0 %v7112_v43 }
 0x102   :  { %2854 = vmatprep.subr.bf16.mxu0 %v7120_v44  ;;  %v7136_v44 = vld [vmem:[%s10507_s6 + $0x220] ss:$16 sps:$4 sm:$0xff]  }
 0x105   :  { %2855 = vmatpush1.bf16.msra.mxu0 %v7118_v45  ;;  %v7139_v45 = vld [vmem:[%s10507_s6 + $0x228] ss:$16 sps:$4 sm:$0xff]  }
 0x106   :  { %2856 = vmatprep.subr.bf16.mxu0 %v7126_v46 }
 0x109   :  { %2857 = vmatpush1.bf16.msra.mxu0 %v7124_v47 }
 0x10a   :  { %2879 = vmatprep.subr.bf16.mxu0 %v7132_v48  ;;  %v7144_v48 = vld [vmem:[%s10507_s6 + $0x244] ss:$16 sps:$4 sm:$0xff]  }
 0x11f   :  { %v938_v60 = vpop.f32.mrb[0].mxu0 }
 0x120   :  { %v939_v63 = vadd.f32 %v938_v60, %v227_v55  ;;  %v940_v0 = vpop.f32.mrb[1].mxu0  ;;  %v7150_v60 = vld [vmem:[%s10507_s6 + $0x264] ss:$16 sps:$4 sm:$0xff]  }
 0x121   :  { %v941_v1 = vadd.f32 %v940_v0, %v231_v57  ;;  %v942_v2 = vpop.f32.mrb[2].mxu0  ;;  %v7156_v0 = vld [vmem:[%s10507_s6 + $0x284] ss:$16 sps:$4 sm:$0xff]  }
 0x122   :  { %v1116_v4 = vmax.f32 %v939_v63, 0.0  ;;  %v943_v6 = vadd.f32 %v942_v2, %v227_v55  ;;  %v944_v8 = vpop.f32.mrb[3].mxu0  ;;  %v7151_v63 = vld [vmem:[%s10507_s6 + $0x268] ss:$16 sps:$4 sm:$0xff]   ;;  %v7154_v2 = vld [vmem:[%s10507_s6 + $0x280] ss:$16 sps:$4 sm:$0xff]  }
 0x123   :  { %v1117_v10 = vmax.f32 %v941_v1, 0.0  ;;  %v945_v12 = vadd.f32 %v944_v8, %v231_v57  ;;  %v7159_v1 = vld [vmem:[%s10507_s6 + $0x28c] ss:$16 sps:$4 sm:$0xff]   ;;  %v7163_v8 = vld [vmem:[%s10507_s6 + $0x2a8] ss:$16 sps:$4 sm:$0xff]  }
 0x124   :  { %v1124_v14 = vmax.f32 %v943_v6, 0.0  ;;  %v1220_v19 = vmul.f32 %v1188_v5, %v1116_v4  ;;  %v7157_v4 = vld [vmem:[%s10507_s6 + $0x288] ss:$16 sps:$4 sm:$0xff]   ;;  %v7162_v5 = vld [vmem:[%s10507_s6 + $0x2a4] ss:$16 sps:$4 sm:$0xff]  }
 0x125   :  { %v1125_v16 = vmax.f32 %v945_v12, 0.0  ;;  %v1221_v22 = vmul.f32 %v1189_v11, %v1117_v10  ;;  %v7165_v6 = vld [vmem:[%s10507_s6 + $0x2ac] ss:$16 sps:$4 sm:$0xff]   ;;  %v7168_v10 = vld [vmem:[%s10507_s6 + $0x2c4] ss:$16 sps:$4 sm:$0xff]  }
 0x126   :  { %v1228_v20 = vmul.f32 %v1196_v7, %v1124_v14  ;;  %v7160_v7 = vld [vmem:[%s10507_s6 + $0x2a0] ss:$16 sps:$4 sm:$0xff]   ;;  %v7171_v11 = vld [vmem:[%s10507_s6 + $0x2cc] ss:$16 sps:$4 sm:$0xff]   ;;  %v7174_v14 = vld [vmem:[%s10507_s6 + $0x2e4] ss:$16 sps:$4 sm:$0xff]  }
 0x127   :  { %v1229_v23 = vmul.f32 %v1197_v13, %v1125_v16  ;;  %v948_v24 = vpop.f32.mrb[4].mxu0  ;;  %v7166_v12 = vld [vmem:[%s10507_s6 + $0x2c0] ss:$16 sps:$4 sm:$0xff]   ;;  %v7169_v13 = vld [vmem:[%s10507_s6 + $0x2c8] ss:$16 sps:$4 sm:$0xff]  }
 0x128   :  { %v1252_v9 = vpack.c.bf16 %v1228_v20, %v1220_v19  ;;  %v949_v25 = vadd.f32 %v948_v24, %v227_v55  ;;  %v950_v33 = vpop.f32.mrb[5].mxu0  ;;  %v7172_v16 = vld [vmem:[%s10507_s6 + $0x2e0] ss:$16 sps:$4 sm:$0xff]   ;;  %v7180_v19 = vld [vmem:[%s10507_s6 + $0x304] ss:$16 sps:$4 sm:$0xff]  }
 0x129   :  { %v1253_v27 = vpack.c.bf16 %v1229_v23, %v1221_v22  ;;  %v951_v30 = vadd.f32 %v950_v33, %v231_v57  ;;  %v952_v32 = vpop.f32.mrb[6].mxu0  ;;  %v7183_v20 = vld [vmem:[%s10507_s6 + $0x30c] ss:$16 sps:$4 sm:$0xff]   ;;  %v7181_v22 = vld [vmem:[%s10507_s6 + $0x308] ss:$16 sps:$4 sm:$0xff]  }
 0x12a   :  { %v1132_v36 = vmax.f32 %v949_v25, 0.0  ;;  %v953_v37 = vadd.f32 %v952_v32, %v227_v55  ;;  %v954_v39 = vpop.f32.mrb[7].mxu0  ;;  %v7186_v23 = vld [vmem:[%s10507_s6 + $0x324] ss:$16 sps:$4 sm:$0xff]   ;;  %v7189_v24 = vld [vmem:[%s10507_s6 + $0x32c] ss:$16 sps:$4 sm:$0xff]  }
 0x12b   :  { %2858 = vmatprep.mubr.bf16.mxu0 %v1253_v27  ;;  %3070 = vmatprep.mubr.bf16.mxu1 %v1253_v27  ;;  %v1133_v17 = vmax.f32 %v951_v30, 0.0  ;;  %v955_v40 = vadd.f32 %v954_v39, %v231_v57  ;;  %v7142_v57 = vld [vmem:[%s10507_s6 + $0x240] ss:$16 sps:$4 sm:$0xff]   ;;  %v7192_v25 = vld [vmem:[%s10507_s6 + $0x344] ss:$16 sps:$4 sm:$0xff]  }
 0x12c   :  { %2859 = vmatmul.mubr.bf16.vlgmr.msra.gmra.mrb[24].mxu0 %v1252_v9  ;;  %3071 = vmatmul.mubr.bf16.vlgmr.msra.gmra.mrb[8].mxu1 %v1252_v9  ;;  %v1236_v42 = vmul.f32 %v1204_v26, %v1132_v36  ;;  %v1140_v43 = vmax.f32 %v953_v37, 0.0  ;;  %v7187_v9 = vld [vmem:[%s10507_s6 + $0x328] ss:$16 sps:$4 sm:$0xff]   ;;  %v7195_v26 = vld [vmem:[%s10507_s6 + $0x34c] ss:$16 sps:$4 sm:$0xff]   ;;  %v8763_v30 = vld [vmem:[%s10509_s2 + $0x10] sm:$0xff] }
 0x12d   :  { %2880 = vmatpush1.bf16.msra.mxu0 %v7130_v28  ;;  %3092 = vmatpush1.bf16.msra.mxu1 %v7133_v29  ;;  %v1237_v46 = vmul.f32 %v1205_v31, %v1133_v17  ;;  %v1141_v47 = vmax.f32 %v955_v40, 0.0  ;;  %v7190_v33 = vld [vmem:[%s10507_s6 + $0x340] ss:$16 sps:$4 sm:$0xff]   ;;  %v7193_v27 = vld [vmem:[%s10507_s6 + $0x348] ss:$16 sps:$4 sm:$0xff]   ;;  %v1158_v39 = vunpack.c.0.s8 %v8763_v30 }
 0x12e   :  { %2881 = vmatprep.subr.bf16.mxu0 %v7138_v34  ;;  %3093 = vmatprep.subr.bf16.mxu1 %v7141_v35  ;;  %v1244_v54 = vmul.f32 %v1212_v38, %v1140_v43  ;;  %v7198_v28 = vld [vmem:[%s10507_s6 + $0x364] ss:$16 sps:$4 sm:$0xff]   ;;  %v7201_v29 = vld [vmem:[%s10507_s6 + $0x36c] ss:$16 sps:$4 sm:$0xff]   ;;  %v7196_v32 = vld [vmem:[%s10507_s6 + $0x360] ss:$16 sps:$4 sm:$0xff]  }
 0x12f   :  { %v1245_v55 = vmul.f32 %v1213_v41, %v1141_v47  ;;  %v8768_v31 = vld [vmem:[%s10509_s2 + $0x18] sm:$0xff]  ;;  %v8777_v35 = vsub.s32 2, %v8605_v50  ;;  %v7204_v36 = vld [vmem:[%s10507_s6 + $0x384] ss:$16 sps:$4 sm:$0xff]   ;;  %v8786_v38 = vsub.s32 3, %v8605_v50  ;;  %v1166_v41 = vunpack.c.1.s8 %v8763_v30 }
 0x130   :  { %v1260_v56 = vpack.c.bf16 %v1244_v54, %v1236_v42  ;;  %v7199_v34 = vld [vmem:[%s10507_s6 + $0x368] ss:$16 sps:$4 sm:$0xff]   ;;  %v7207_v37 = vld [vmem:[%s10507_s6 + $0x38c] ss:$16 sps:$4 sm:$0xff]   ;;  %v1159_v17 = vunpack.c.0.s8 %v8768_v31  ;;  %v7202_v40 = vld [vmem:[%s10507_s6 + $0x380] ss:$16 sps:$4 sm:$0xff]   ;;  %v1167_v42 = vunpack.c.1.s8 %v8768_v31 }
 0x131   :  { %2882 = vmatpush1.bf16.msra.mxu0 %v7136_v44  ;;  %3094 = vmatpush1.bf16.msra.mxu1 %v7139_v45  ;;  %v1261_v59 = vpack.c.bf16 %v1245_v55, %v1237_v46  ;;  %v7205_v43 = vld [vmem:[%s10507_s6 + $0x388] ss:$16 sps:$4 sm:$0xff]   ;;  %v8800_v44 = vrot.slane %v8613_v52, %v8777_v35  ;;  %v250_v45 = vsub.s32 6, %v8605_v50  ;;  %v1097_v46 = vpop.f32.mrb[0].mxu1  ;;  %v8806_v47 = vld [vmem:[%s10509_s2 + $0x30] sm:$0xff]  ;;  %v8816_v54 = vrot.slane %v8613_v52, %v8786_v38 }
 0x132   :  { %2883 = vmatprep.subr.bf16.mxu0 %v7144_v48  ;;  %3095 = vmatprep.subr.bf16.mxu1 %v7147_v49  ;;  %v7210_v48 = vld [vmem:[%s10507_s6 + $0x3a4] ss:$16 sps:$4 sm:$0xff]   ;;  %v7213_v49 = vld [vmem:[%s10507_s6 + $0x3ac] ss:$16 sps:$4 sm:$0xff]   ;;  %v1174_v55 = vunpack.c.2.s8 %v8763_v30 }
 0x133   :  { %2868 = vmatprep.mubr.bf16.mxu0 %v1261_v59  ;;  %3080 = vmatprep.mubr.bf16.mxu1 %v1261_v59  ;;  %v8821_v59 = vcvt.s32.f32 %v1159_v17 }
 0x134   :  { %2869 = vmatmul.mubr.bf16.gmra.mrb[28].mxu0 %v1260_v56  ;;  %3081 = vmatmul.mubr.bf16.gmra.mrb[12].mxu1 %v1260_v56  ;;  %v1175_v56 = vunpack.c.2.s8 %v8768_v31 }
 0x135   :  { %2884 = vmatpush1.bf16.msra.mxu0 %v7142_v57  ;;  %3096 = vmatpush1.bf16.msra.mxu1 %v7145_v58  ;;  %v1162_v57 = vunpack.c.0.s8 %v8806_v47  ;;  %v1190_v58 = vcvt.s32.f32 %v1158_v39 }
 0x136   :  { %2885 = vmatprep.subr.bf16.mxu0 %v7150_v60  ;;  %3097 = vmatprep.subr.bf16.mxu1 %v7153_v61  ;;  %v8824_v60 = vrot.slane %v8613_v52, %v250_v45  ;;  %v254_v61 = vsub.s32 7, %v8605_v50 }
 0x139   :  { %2886 = vmatpush1.bf16.msra.mxu0 %v7148_v62  ;;  %3098 = vmatpush1.bf16.msra.mxu1 %v7151_v63  ;;  %v1099_v62 = vpop.f32.mrb[1].mxu1  ;;  %v8830_v63 = vld [vmem:[%s10509_s2 + $0x38] sm:$0xff] }
 0x13a   :  { %2887 = vmatprep.subr.bf16.mxu0 %v7156_v0  ;;  %3099 = vmatprep.subr.bf16.mxu1 %v7159_v1  ;;  %v8832_v0 = vcvt.s32.f32 %v1166_v41  ;;  %v8834_v1 = vcvt.s32.f32 %v1167_v42  ;;  %v7225_v42 = vld [vmem:[%s10507_s6 + $0x3ec] ss:$16 sps:$4 sm:$0xff]  }
 0x13d   :  { %2888 = vmatpush1.bf16.msra.mxu0 %v7154_v2  ;;  %3100 = vmatpush1.bf16.msra.mxu1 %v7157_v4  ;;  %v1194_v2 = vcvt.s32.f32 %v1162_v57  ;;  %v1163_v4 = vunpack.c.0.s8 %v8830_v63 }
 0x13e   :  { %2889 = vmatprep.subr.bf16.mxu0 %v7162_v5  ;;  %3101 = vmatprep.subr.bf16.mxu1 %v7165_v6  ;;  %v7208_v5 = vld [vmem:[%s10507_s6 + $0x3a0] ss:$16 sps:$4 sm:$0xff]   ;;  %v7211_v6 = vld [vmem:[%s10507_s6 + $0x3a8] ss:$16 sps:$4 sm:$0xff]  }
 0x141   :  { %2890 = vmatpush1.bf16.msra.mxu0 %v7160_v7  ;;  %3102 = vmatpush1.bf16.msra.mxu1 %v7163_v8  ;;  %v1098_v7 = vadd.f32 %v1097_v46, %v8824_v60  ;;  %v8845_v8 = vrot.slane %v8613_v52, %v254_v61 }
 0x142   :  { %2891 = vmatprep.subr.bf16.mxu0 %v7168_v10  ;;  %3103 = vmatprep.subr.bf16.mxu1 %v7171_v11  ;;  %v1101_v10 = vpop.f32.mrb[2].mxu1  ;;  %v1170_v11 = vunpack.c.1.s8 %v8806_v47 }
 0x145   :  { %2892 = vmatpush1.bf16.msra.mxu0 %v7166_v12  ;;  %3104 = vmatpush1.bf16.msra.mxu1 %v7169_v13  ;;  %v1171_v12 = vunpack.c.1.s8 %v8830_v63  ;;  %v7216_v13 = vld [vmem:[%s10507_s6 + $0x3c4] ss:$16 sps:$4 sm:$0xff]  }
 0x146   :  { %2893 = vmatprep.subr.bf16.mxu0 %v7174_v14  ;;  %3105 = vmatprep.subr.bf16.mxu1 %v7177_v15  ;;  %v7219_v14 = vld [vmem:[%s10507_s6 + $0x3cc] ss:$16 sps:$4 sm:$0xff]   ;;  %v8855_v15 = vcvt.s32.f32 %v1174_v55 }
 0x149   :  { %2894 = vmatpush1.bf16.msra.mxu0 %v7172_v16  ;;  %3106 = vmatpush1.bf16.msra.mxu1 %v7175_v18  ;;  %v8857_v16 = vcvt.s32.f32 %v1175_v56  ;;  %v1195_v18 = vcvt.s32.f32 %v1163_v4 }
 0x14a   :  { %2895 = vmatprep.subr.bf16.mxu0 %v7180_v19  ;;  %3107 = vmatprep.subr.bf16.mxu1 %v7183_v20  ;;  %v1102_v19 = vadd.f32 %v1101_v10, %v8824_v60  ;;  %v1103_v20 = vpop.f32.mrb[3].mxu1 }
 0x14d   :  { %2896 = vmatpush1.bf16.msra.mxu0 %v7178_v21  ;;  %3108 = vmatpush1.bf16.msra.mxu1 %v7181_v22  ;;  %v1122_v22 = vmax.f32 %v1098_v7, 0.0  ;;  %v1179_v7 = vunpack.c.2.s8 %v8830_v63 }
 0x14e   :  { %2897 = vmatprep.subr.bf16.mxu0 %v7186_v23  ;;  %3109 = vmatprep.subr.bf16.mxu1 %v7189_v24  ;;  %v1100_v23 = vadd.f32 %v1099_v62, %v8845_v8  ;;  %v1202_v24 = vcvt.s32.f32 %v1170_v11  ;;  %v7231_v11 = vld [vmem:[%s10507_s6 + $0x40c] ss:$16 sps:$4 sm:$0xff]  }
 0x151   :  { %2898 = vmatpush1.bf16.msra.mxu0 %v7184_v3  ;;  %3110 = vmatpush1.bf16.msra.mxu1 %v7187_v9  ;;  %v1104_v3 = vadd.f32 %v1103_v20, %v8845_v8 }
 0x152   :  { %2899 = vmatprep.subr.bf16.mxu0 %v7192_v25  ;;  %3111 = vmatprep.subr.bf16.mxu1 %v7195_v26  ;;  %v7214_v26 = vld [vmem:[%s10507_s6 + $0x3c0] ss:$16 sps:$4 sm:$0xff]  }
 0x153   :  { %v1131_v39 = vmax.f32 %v1104_v3, 0.0  ;;  %v7226_v3 = vld [vmem:[%s10507_s6 + $0x400] ss:$16 sps:$4 sm:$0xff]  }
 0x155   :  { %2900 = vmatpush1.bf16.msra.mxu0 %v7190_v33  ;;  %3112 = vmatpush1.bf16.msra.mxu1 %v7193_v27  ;;  %v1182_v33 = vunpack.c.3.s8 %v8763_v30  ;;  %v1130_v27 = vmax.f32 %v1102_v19, 0.0  ;;  %v7222_v30 = vld [vmem:[%s10507_s6 + $0x3e4] ss:$16 sps:$4 sm:$0xff]  }
 0x156   :  { %2901 = vmatprep.subr.bf16.mxu0 %v7198_v28  ;;  %3113 = vmatprep.subr.bf16.mxu1 %v7201_v29  ;;  %v1203_v28 = vcvt.s32.f32 %v1171_v12 }
 0x157   :  { %v1234_v45 = vmul.f32 %v1202_v24, %v1130_v27  ;;  %v8880_v61 = vcvt.s32.f32 %v1182_v33  ;;  %v7234_v27 = vld [vmem:[%s10507_s6 + $0x424] ss:$16 sps:$4 sm:$0xff]  }
 0x158   :  { %v1235_v55 = vmul.f32 %v1203_v28, %v1131_v39 }
 0x159   :  { %2902 = vmatpush1.bf16.msra.mxu0 %v7196_v32  ;;  %3114 = vmatpush1.bf16.msra.mxu1 %v7199_v34  ;;  %v7217_v34 = vld [vmem:[%s10507_s6 + $0x3c8] ss:$16 sps:$4 sm:$0xff]  }
 0x15a   :  { %2903 = vmatprep.subr.bf16.mxu0 %v7204_v36  ;;  %3115 = vmatprep.subr.bf16.mxu1 %v7207_v37  ;;  %v1226_v36 = vmul.f32 %v1194_v2, %v1122_v22  ;;  %v1123_v37 = vmax.f32 %v1100_v23, 0.0  ;;  %v1211_v22 = vcvt.s32.f32 %v1179_v7  ;;  %v7238_v7 = vld [vmem:[%s10507_s6 + $0x440] ss:$16 sps:$4 sm:$0xff]  }
 0x15c   :  { %v8882_v62 = vpack.c.bf16 %v1234_v45, %v1226_v36 }
 0x15d   :  { %2904 = vmatpush1.bf16.msra.mxu0 %v7202_v40  ;;  %3116 = vmatpush1.bf16.msra.mxu1 %v7205_v43  ;;  %v1183_v43 = vunpack.c.3.s8 %v8768_v31  ;;  %v7220_v31 = vld [vmem:[%s10507_s6 + $0x3e0] ss:$16 sps:$4 sm:$0xff]  }
 0x15e   :  { %2905 = vmatprep.subr.bf16.mxu0 %v7210_v48  ;;  %3117 = vmatprep.subr.bf16.mxu1 %v7213_v49  ;;  %v1227_v49 = vmul.f32 %v1195_v18, %v1123_v37  ;;  %v1186_v18 = vunpack.c.3.s8 %v8806_v47  ;;  %v7237_v37 = vld [vmem:[%s10507_s6 + $0x42c] ss:$16 sps:$4 sm:$0xff]  }
 0x15f   :  { %v991_v21 = vpop.f32.mrb[8].mxu0  ;;  %v1215_v45 = vcvt.s32.f32 %v1183_v43 }
 0x160   :  { %v992_v9 = vadd.f32 %v991_v21, %v8800_v44  ;;  %v993_v25 = vpop.f32.mrb[9].mxu0 }
 0x161   :  { %v994_v29 = vadd.f32 %v993_v25, %v8816_v54  ;;  %2906 = vmatpush1.bf16.msra.mxu0 %v7208_v5  ;;  %3118 = vmatpush1.bf16.msra.mxu1 %v7211_v6  ;;  %v995_v32 = vpop.f32.mrb[10].mxu0  ;;  %v7223_v5 = vld [vmem:[%s10507_s6 + $0x3e8] ss:$16 sps:$4 sm:$0xff]   ;;  %v1107_v6 = vpop.f32.mrb[4].mxu1 }
 0x162   :  { %v1118_v17 = vmax.f32 %v992_v9, 0.0  ;;  %v996_v40 = vadd.f32 %v995_v32, %v8800_v44  ;;  %v997_v41 = vpop.f32.mrb[11].mxu0  ;;  %2907 = vmatprep.subr.bf16.mxu0 %v7216_v13  ;;  %3119 = vmatprep.subr.bf16.mxu1 %v7219_v14  ;;  %v1108_v12 = vadd.f32 %v1107_v6, %v8824_v60  ;;  %v1109_v13 = vpop.f32.mrb[5].mxu1  ;;  %v8901_v14 = vpack.c.bf16 %v1235_v55, %v1227_v49  ;;  %v7229_v9 = vld [vmem:[%s10507_s6 + $0x408] ss:$16 sps:$4 sm:$0xff]  }
 0x163   :  { %v1119_v46 = vmax.f32 %v994_v29, 0.0  ;;  %v998_v48 = vadd.f32 %v997_v41, %v8816_v54  ;;  %v1110_v21 = vadd.f32 %v1109_v13, %v8845_v8  ;;  %v1111_v23 = vpop.f32.mrb[6].mxu1  ;;  %v7244_v13 = vld [vmem:[%s10507_s6 + $0x460] ss:$16 sps:$4 sm:$0xff]  }
 0x164   :  { %v1222_v56 = vmul.f32 %v1190_v58, %v1118_v17  ;;  %v1126_v57 = vmax.f32 %v996_v40, 0.0  ;;  %v1178_v58 = vunpack.c.2.s8 %v8806_v47  ;;  %v1113_v36 = vpop.f32.mrb[7].mxu1 }
 0x165   :  { %v1223_v2 = vmul.f32 %v8821_v59, %v1119_v46  ;;  %v1127_v4 = vmax.f32 %v998_v48, 0.0  ;;  %2908 = vmatpush1.bf16.msra.mxu0 %v7214_v26  ;;  %3120 = vmatpush1.bf16.msra.mxu1 %v7217_v34  ;;  %v7228_v59 = vld [vmem:[%s10507_s6 + $0x404] ss:$16 sps:$4 sm:$0xff]   ;;  %v1138_v26 = vmax.f32 %v1108_v12, 0.0  ;;  %v1139_v32 = vmax.f32 %v1110_v21, 0.0 }
 0x166   :  { %v1230_v10 = vmul.f32 %v8832_v0, %v1126_v57  ;;  %2909 = vmatprep.subr.bf16.mxu0 %v7222_v30  ;;  %3121 = vmatprep.subr.bf16.mxu1 %v7225_v42  ;;  %v1210_v20 = vcvt.s32.f32 %v1178_v58  ;;  %v1218_v34 = vcvt.s32.f32 %v1186_v18  ;;  %v1114_v46 = vadd.f32 %v1113_v36, %v8845_v8  ;;  %v7247_v18 = vld [vmem:[%s10507_s6 + $0x468] ss:$16 sps:$4 sm:$0xff]  }
 0x167   :  { %v1231_v19 = vmul.f32 %v8834_v1, %v1127_v4  ;;  %v1001_v0 = vpop.f32.mrb[12].mxu0  ;;  %v1112_v1 = vadd.f32 %v1111_v23, %v8824_v60  ;;  %v1243_v4 = vmul.f32 %v1211_v22, %v1139_v32  ;;  %v7253_v21 = vld [vmem:[%s10507_s6 + $0x488] ss:$16 sps:$4 sm:$0xff]   ;;  %v7258_v22 = vld [vmem:[%s10507_s6 + $0x4a4] ss:$16 sps:$4 sm:$0xff]  }
 0x168   :  { %v1254_v24 = vpack.c.bf16 %v1230_v10, %v1222_v56  ;;  %v1002_v25 = vadd.f32 %v1001_v0, %v8800_v44  ;;  %v1003_v47 = vpop.f32.mrb[13].mxu0  ;;  %v1242_v40 = vmul.f32 %v1210_v20, %v1138_v26  ;;  %v1187_v56 = vunpack.c.3.s8 %v8830_v63  ;;  %v7240_v63 = vld [vmem:[%s10507_s6 + $0x444] ss:$16 sps:$4 sm:$0xff]   ;;  %v7241_v10 = vld [vmem:[%s10507_s6 + $0x448] ss:$16 sps:$4 sm:$0xff]  }
 0x169   :  { %2910 = vmatpush1.bf16.msra.mxu0 %v7220_v31  ;;  %3122 = vmatpush1.bf16.msra.mxu1 %v7223_v5  ;;  %v1255_v33 = vpack.c.bf16 %v1231_v19, %v1223_v2  ;;  %v1004_v28 = vadd.f32 %v1003_v47, %v8816_v54  ;;  %v1005_v29 = vpop.f32.mrb[14].mxu0  ;;  %v1146_v41 = vmax.f32 %v1112_v1, 0.0  ;;  %v1147_v57 = vmax.f32 %v1114_v46, 0.0  ;;  %v7252_v19 = vld [vmem:[%s10507_s6 + $0x484] ss:$16 sps:$4 sm:$0xff]  }
 0x16a   :  { %2932 = vmatprep.subr.bf16.mxu0 %v7228_v59  ;;  %3144 = vmatprep.subr.bf16.mxu1 %v7231_v11  ;;  %v1134_v60 = vmax.f32 %v1002_v25, 0.0  ;;  %v1006_v39 = vadd.f32 %v1005_v29, %v8800_v44  ;;  %v1007_v17 = vpop.f32.mrb[15].mxu0  ;;  %v7232_v44 = vld [vmem:[%s10507_s6 + $0x420] ss:$16 sps:$4 sm:$0xff]   ;;  %v1219_v31 = vcvt.s32.f32 %v1187_v56  ;;  %v7249_v11 = vld [vmem:[%s10507_s6 + $0x46c] ss:$16 sps:$4 sm:$0xff]  }
 0x16b   :  { %2911 = vmatprep.mubr.bf16.mxu0 %v1255_v33  ;;  %3123 = vmatprep.mubr.bf16.mxu1 %v1255_v33  ;;  %v1135_v30 = vmax.f32 %v1004_v28, 0.0  ;;  %v1008_v42 = vadd.f32 %v1007_v17, %v8816_v54  ;;  %v1250_v55 = vmul.f32 %v1218_v34, %v1146_v41  ;;  %v7235_v54 = vld [vmem:[%s10507_s6 + $0x428] ss:$16 sps:$4 sm:$0xff]   ;;  %v7255_v0 = vld [vmem:[%s10507_s6 + $0x48c] ss:$16 sps:$4 sm:$0xff]  }
 0x16c   :  { %2912 = vmatmul.mubr.bf16.vlgmr.msra.gmra.mrb[24].mxu0 %v1254_v24  ;;  %3124 = vmatmul.mubr.bf16.vlgmr.msra.gmra.mrb[8].mxu1 %v1254_v24  ;;  %v1238_v48 = vmul.f32 %v8855_v15, %v1134_v60  ;;  %v1142_v49 = vmax.f32 %v1006_v39, 0.0  ;;  %v7243_v15 = vld [vmem:[%s10507_s6 + $0x44c] ss:$16 sps:$4 sm:$0xff]   ;;  %v1251_v58 = vmul.f32 %v1219_v31, %v1147_v57  ;;  %v7250_v20 = vld [vmem:[%s10507_s6 + $0x480] ss:$16 sps:$4 sm:$0xff]  }
 0x16d   :  { %2933 = vmatpush1.bf16.msra.mxu0 %v7226_v3  ;;  %3145 = vmatpush1.bf16.msra.mxu1 %v7229_v9  ;;  %v1239_v8 = vmul.f32 %v8857_v16, %v1135_v30  ;;  %v1143_v43 = vmax.f32 %v1008_v42, 0.0  ;;  %v8940_v5 = vpack.c.bf16 %v1250_v55, %v1242_v40  ;;  %v7261_v23 = vld [vmem:[%s10507_s6 + $0x4ac] ss:$16 sps:$4 sm:$0xff]   ;;  %v7256_v24 = vld [vmem:[%s10507_s6 + $0x4a0] ss:$16 sps:$4 sm:$0xff]  }
 0x16e   :  { %2934 = vmatprep.subr.bf16.mxu0 %v7234_v27  ;;  %3146 = vmatprep.subr.bf16.mxu1 %v7237_v37  ;;  %v1246_v2 = vmul.f32 %v8880_v61, %v1142_v49  ;;  %v7246_v61 = vld [vmem:[%s10507_s6 + $0x464] ss:$16 sps:$4 sm:$0xff]   ;;  %v8954_v12 = vpack.c.bf16 %v1251_v58, %v1243_v4  ;;  %v7259_v3 = vld [vmem:[%s10507_s6 + $0x4a8] ss:$16 sps:$4 sm:$0xff]   ;;  %v7267_v25 = vld [vmem:[%s10507_s6 + $0x4cc] ss:$16 sps:$4 sm:$0xff]  }
 0x16f   :  { %v1247_v6 = vmul.f32 %v1215_v45, %v1143_v43  ;;  %v7264_v9 = vld [vmem:[%s10507_s6 + $0x4c4] ss:$16 sps:$4 sm:$0xff]   ;;  %v7262_v47 = vld [vmem:[%s10507_s6 + $0x4c0] ss:$16 sps:$4 sm:$0xff]   ;;  %v7265_v26 = vld [vmem:[%s10507_s6 + $0x4c8] ss:$16 sps:$4 sm:$0xff]  }
 0x170   :  { %v1262_v16 = vpack.c.bf16 %v1246_v2, %v1238_v48  ;;  %v7270_v1 = vld [vmem:[%s10507_s6 + $0x4e4] ss:$16 sps:$4 sm:$0xff]   ;;  %v7273_v33 = vld [vmem:[%s10507_s6 + $0x4ec] ss:$16 sps:$4 sm:$0xff]   ;;  %v7268_v27 = vld [vmem:[%s10507_s6 + $0x4e0] ss:$16 sps:$4 sm:$0xff]  }
 0x171   :  { %2935 = vmatpush1.bf16.msra.mxu0 %v7232_v44  ;;  %3147 = vmatpush1.bf16.msra.mxu1 %v7235_v54  ;;  %v1263_v59 = vpack.c.bf16 %v1247_v6, %v1239_v8  ;;  %v7271_v28 = vld [vmem:[%s10507_s6 + $0x4e8] ss:$16 sps:$4 sm:$0xff]   ;;  %v7276_v29 = vld [vmem:[%s10507_s6 + $0x504] ss:$16 sps:$4 sm:$0xff]   ;;  %v7279_v32 = vld [vmem:[%s10507_s6 + $0x50c] ss:$16 sps:$4 sm:$0xff]  }
 0x172   :  { %2936 = vmatprep.subr.bf16.mxu0 %v7240_v63  ;;  %3148 = vmatprep.subr.bf16.mxu1 %v7243_v15  ;;  %v7274_v34 = vld [vmem:[%s10507_s6 + $0x500] ss:$16 sps:$4 sm:$0xff]   ;;  %v7277_v36 = vld [vmem:[%s10507_s6 + $0x508] ss:$16 sps:$4 sm:$0xff]   ;;  %v7282_v37 = vld [vmem:[%s10507_s6 + $0x524] ss:$16 sps:$4 sm:$0xff]  }
 0x173   :  { %2921 = vmatprep.mubr.bf16.mxu0 %v1263_v59  ;;  %3133 = vmatprep.mubr.bf16.mxu1 %v1263_v59  ;;  %v7285_v60 = vld [vmem:[%s10507_s6 + $0x52c] ss:$16 sps:$4 sm:$0xff]   ;;  %v7280_v39 = vld [vmem:[%s10507_s6 + $0x520] ss:$16 sps:$4 sm:$0xff]   ;;  %v7283_v17 = vld [vmem:[%s10507_s6 + $0x528] ss:$16 sps:$4 sm:$0xff]  }
 0x174   :  { %2922 = vmatmul.mubr.bf16.gmra.mrb[28].mxu0 %v1262_v16  ;;  %3134 = vmatmul.mubr.bf16.gmra.mrb[12].mxu1 %v1262_v16  ;;  %v7288_v40 = vld [vmem:[%s10507_s6 + $0x544] ss:$16 sps:$4 sm:$0xff]   ;;  %v7291_v41 = vld [vmem:[%s10507_s6 + $0x54c] ss:$16 sps:$4 sm:$0xff]   ;;  %v7286_v30 = vld [vmem:[%s10507_s6 + $0x540] ss:$16 sps:$4 sm:$0xff]  }
 0x175   :  { %2937 = vmatpush1.bf16.msra.mxu0 %v7238_v7  ;;  %3149 = vmatpush1.bf16.msra.mxu1 %v7241_v10  ;;  %v7289_v42 = vld [vmem:[%s10507_s6 + $0x548] ss:$16 sps:$4 sm:$0xff]   ;;  %v7294_v45 = vld [vmem:[%s10507_s6 + $0x564] ss:$16 sps:$4 sm:$0xff]   ;;  %v7297_v46 = vld [vmem:[%s10507_s6 + $0x56c] ss:$16 sps:$4 sm:$0xff]  }
 0x176   :  { %2938 = vmatprep.subr.bf16.mxu0 %v7246_v61  ;;  %3150 = vmatprep.subr.bf16.mxu1 %v7249_v11  ;;  %v7292_v48 = vld [vmem:[%s10507_s6 + $0x560] ss:$16 sps:$4 sm:$0xff]   ;;  %v7295_v49 = vld [vmem:[%s10507_s6 + $0x568] ss:$16 sps:$4 sm:$0xff]   ;;  %v7300_v55 = vld [vmem:[%s10507_s6 + $0x584] ss:$16 sps:$4 sm:$0xff]  }
 0x177   :  { %v7303_v56 = vld [vmem:[%s10507_s6 + $0x58c] ss:$16 sps:$4 sm:$0xff]   ;;  %v242_v44 = vsub.s32 4, %v8605_v50  ;;  %v7298_v54 = vld [vmem:[%s10507_s6 + $0x580] ss:$16 sps:$4 sm:$0xff]   ;;  %v246_v43 = vsub.s32 5, %v8605_v50 }
 0x178   :  { %v7301_v8 = vld [vmem:[%s10507_s6 + $0x588] ss:$16 sps:$4 sm:$0xff]   ;;  %v7306_v57 = vld [vmem:[%s10507_s6 + $0x5a4] ss:$16 sps:$4 sm:$0xff]   ;;  %v7309_v63 = vld [vmem:[%s10507_s6 + $0x5ac] ss:$16 sps:$4 sm:$0xff]  }
 0x179   :  { %2939 = vmatpush1.bf16.msra.mxu0 %v7244_v13  ;;  %3151 = vmatpush1.bf16.msra.mxu1 %v7247_v18  ;;  %v9081_v15 = vld [vmem:[%s10509_s2 + $0x20] sm:$0xff]  ;;  %v9086_v2 = vrot.slane %v8613_v52, %v242_v44  ;;  %v9091_v4 = vld [vmem:[%s10509_s2 + $0x28] sm:$0xff]  ;;  %v9100_v16 = vrot.slane %v8613_v52, %v246_v43 }
 0x17a   :  { %2940 = vmatprep.subr.bf16.mxu0 %v7252_v19  ;;  %3152 = vmatprep.subr.bf16.mxu1 %v7255_v0  ;;  %v7304_v31 = vld [vmem:[%s10507_s6 + $0x5a0] ss:$16 sps:$4 sm:$0xff]   ;;  %v7307_v6 = vld [vmem:[%s10507_s6 + $0x5a8] ss:$16 sps:$4 sm:$0xff]   ;;  %v1160_v58 = vunpack.c.0.s8 %v9081_v15  ;;  %v1168_v7 = vunpack.c.1.s8 %v9081_v15  ;;  %v7312_v10 = vld [vmem:[%s10507_s6 + $0x5c4] ss:$16 sps:$4 sm:$0xff]   ;;  %v1161_v11 = vunpack.c.0.s8 %v9091_v4  ;;  %v1169_v52 = vunpack.c.1.s8 %v9091_v4 }
 0x17b   :  { %v7315_v59 = vld [vmem:[%s10507_s6 + $0x5cc] ss:$16 sps:$4 sm:$0xff]   ;;  %v7325_v43 = vld [vmem:[%s10507_s6 + $0x608] ss:$16 sps:$4 sm:$0xff]  }
 0x17d   :  { %2941 = vmatpush1.bf16.msra.mxu0 %v7250_v20  ;;  %3153 = vmatpush1.bf16.msra.mxu1 %v7253_v21  ;;  %v7310_v20 = vld [vmem:[%s10507_s6 + $0x5c0] ss:$16 sps:$4 sm:$0xff]   ;;  %v7313_v21 = vld [vmem:[%s10507_s6 + $0x5c8] ss:$16 sps:$4 sm:$0xff]  }
 0x17e   :  { %2942 = vmatprep.subr.bf16.mxu0 %v7258_v22  ;;  %3154 = vmatprep.subr.bf16.mxu1 %v7261_v23  ;;  %v1192_v23 = vcvt.s32.f32 %v1160_v58 }
 0x181   :  { %2943 = vmatpush1.bf16.msra.mxu0 %v7256_v24  ;;  %3155 = vmatpush1.bf16.msra.mxu1 %v7259_v3  ;;  %v1200_v3 = vcvt.s32.f32 %v1168_v7 }
 0x182   :  { %2944 = vmatprep.subr.bf16.mxu0 %v7264_v9  ;;  %3156 = vmatprep.subr.bf16.mxu1 %v7267_v25  ;;  %v7318_v25 = vld [vmem:[%s10507_s6 + $0x5e4] ss:$16 sps:$4 sm:$0xff]  }
 0x185   :  { %2945 = vmatpush1.bf16.msra.mxu0 %v7262_v47  ;;  %3157 = vmatpush1.bf16.msra.mxu1 %v7265_v26  ;;  %v7321_v47 = vld [vmem:[%s10507_s6 + $0x5ec] ss:$16 sps:$4 sm:$0xff]  }
 0x186   :  { %2946 = vmatprep.subr.bf16.mxu0 %v7270_v1  ;;  %3158 = vmatprep.subr.bf16.mxu1 %v7273_v33  ;;  %v1193_v1 = vcvt.s32.f32 %v1161_v11 }
 0x189   :  { %2947 = vmatpush1.bf16.msra.mxu0 %v7268_v27  ;;  %3159 = vmatpush1.bf16.msra.mxu1 %v7271_v28  ;;  %v1201_v27 = vcvt.s32.f32 %v1169_v52 }
 0x18a   :  { %2948 = vmatprep.subr.bf16.mxu0 %v7276_v29  ;;  %3160 = vmatprep.subr.bf16.mxu1 %v7279_v32  ;;  %v1176_v29 = vunpack.c.2.s8 %v9081_v15 }
 0x18d   :  { %2949 = vmatpush1.bf16.msra.mxu0 %v7274_v34  ;;  %3161 = vmatpush1.bf16.msra.mxu1 %v7277_v36  ;;  %v7316_v34 = vld [vmem:[%s10507_s6 + $0x5e0] ss:$16 sps:$4 sm:$0xff]   ;;  %v7319_v36 = vld [vmem:[%s10507_s6 + $0x5e8] ss:$16 sps:$4 sm:$0xff]  }
 0x18e   :  { %2950 = vmatprep.subr.bf16.mxu0 %v7282_v37  ;;  %3162 = vmatprep.subr.bf16.mxu1 %v7285_v60  ;;  %v1177_v37 = vunpack.c.2.s8 %v9091_v4 }
 0x191   :  { %2951 = vmatpush1.bf16.msra.mxu0 %v7280_v39  ;;  %3163 = vmatpush1.bf16.msra.mxu1 %v7283_v17  ;;  %v7324_v17 = vld [vmem:[%s10507_s6 + $0x604] ss:$16 sps:$4 sm:$0xff]  }
 0x192   :  { %2952 = vmatprep.subr.bf16.mxu0 %v7288_v40  ;;  %3164 = vmatprep.subr.bf16.mxu1 %v7291_v41  ;;  %v7327_v40 = vld [vmem:[%s10507_s6 + $0x60c] ss:$16 sps:$4 sm:$0xff]   ;;  %v1184_v41 = vunpack.c.3.s8 %v9081_v15 }
 0x194   :  { %v1216_v7 = vcvt.s32.f32 %v1184_v41  ;;  %v7369_v41 = vld [vmem:[%s10507_s6 + $0x6ec] ss:$16 sps:$4 sm:$0xff]  }
 0x195   :  { %2953 = vmatpush1.bf16.msra.mxu0 %v7286_v30  ;;  %3165 = vmatpush1.bf16.msra.mxu1 %v7289_v42 }
 0x196   :  { %2954 = vmatprep.subr.bf16.mxu0 %v7294_v45  ;;  %3166 = vmatprep.subr.bf16.mxu1 %v7297_v46  ;;  %v1185_v46 = vunpack.c.3.s8 %v9091_v4  ;;  %v7330_v4 = vld [vmem:[%s10507_s6 + $0x624] ss:$16 sps:$4 sm:$0xff]  }
 0x198   :  { %v1217_v11 = vcvt.s32.f32 %v1185_v46  ;;  %v7375_v46 = vld [vmem:[%s10507_s6 + $0x70c] ss:$16 sps:$4 sm:$0xff]  }
 0x199   :  { %2955 = vmatpush1.bf16.msra.mxu0 %v7292_v48  ;;  %3167 = vmatpush1.bf16.msra.mxu1 %v7295_v49 }
 0x19a   :  { %2956 = vmatprep.subr.bf16.mxu0 %v7300_v55  ;;  %3168 = vmatprep.subr.bf16.mxu1 %v7303_v56  ;;  %v1208_v55 = vcvt.s32.f32 %v1176_v29  ;;  %v7349_v29 = vld [vmem:[%s10507_s6 + $0x688] ss:$16 sps:$4 sm:$0xff]  }
 0x19d   :  { %2957 = vmatpush1.bf16.msra.mxu0 %v7298_v54  ;;  %3169 = vmatpush1.bf16.msra.mxu1 %v7301_v8  ;;  %v7322_v8 = vld [vmem:[%s10507_s6 + $0x600] ss:$16 sps:$4 sm:$0xff]  }
 0x19e   :  { %2958 = vmatprep.subr.bf16.mxu0 %v7306_v57  ;;  %3170 = vmatprep.subr.bf16.mxu1 %v7309_v63  ;;  %v1209_v63 = vcvt.s32.f32 %v1177_v37  ;;  %v7360_v37 = vld [vmem:[%s10507_s6 + $0x6c4] ss:$16 sps:$4 sm:$0xff]  }
 0x19f   :  { %v1044_v61 = vpop.f32.mrb[16].mxu0 }
 0x1a0   :  { %v1045_v13 = vadd.f32 %v1044_v61, %v9086_v2  ;;  %v1046_v18 = vpop.f32.mrb[17].mxu0 }
 0x1a1   :  { %v1047_v19 = vadd.f32 %v1046_v18, %v9100_v16  ;;  %2959 = vmatpush1.bf16.msra.mxu0 %v7304_v31  ;;  %3171 = vmatpush1.bf16.msra.mxu1 %v7307_v6  ;;  %v1048_v0 = vpop.f32.mrb[18].mxu0  ;;  %v7333_v31 = vld [vmem:[%s10507_s6 + $0x62c] ss:$16 sps:$4 sm:$0xff]   ;;  %v7328_v18 = vld [vmem:[%s10507_s6 + $0x620] ss:$16 sps:$4 sm:$0xff]  }
 0x1a2   :  { %v1120_v22 = vmax.f32 %v1045_v13, 0.0  ;;  %v1049_v24 = vadd.f32 %v1048_v0, %v9086_v2  ;;  %v1050_v9 = vpop.f32.mrb[19].mxu0  ;;  %2960 = vmatprep.subr.bf16.mxu0 %v7312_v10  ;;  %3172 = vmatprep.subr.bf16.mxu1 %v7315_v59 }
 0x1a3   :  { %v1121_v26 = vmax.f32 %v1047_v19, 0.0  ;;  %v1051_v33 = vadd.f32 %v1050_v9, %v9100_v16 }
 0x1a4   :  { %v1128_v28 = vmax.f32 %v1049_v24, 0.0  ;;  %v1224_v60 = vmul.f32 %v1192_v23, %v1120_v22  ;;  %v7334_v24 = vld [vmem:[%s10507_s6 + $0x640] ss:$16 sps:$4 sm:$0xff]  }
 0x1a5   :  { %v1129_v32 = vmax.f32 %v1051_v33, 0.0  ;;  %2961 = vmatpush1.bf16.msra.mxu0 %v7310_v20  ;;  %3173 = vmatpush1.bf16.msra.mxu1 %v7313_v21  ;;  %v1225_v30 = vmul.f32 %v1193_v1, %v1121_v26  ;;  %v7339_v20 = vld [vmem:[%s10507_s6 + $0x64c] ss:$16 sps:$4 sm:$0xff]   ;;  %v7340_v26 = vld [vmem:[%s10507_s6 + $0x660] ss:$16 sps:$4 sm:$0xff]  }
 0x1a6   :  { %v1232_v39 = vmul.f32 %v1200_v3, %v1128_v28  ;;  %2962 = vmatprep.subr.bf16.mxu0 %v7318_v25  ;;  %3174 = vmatprep.subr.bf16.mxu1 %v7321_v47  ;;  %v7337_v3 = vld [vmem:[%s10507_s6 + $0x648] ss:$16 sps:$4 sm:$0xff]   ;;  %v7342_v25 = vld [vmem:[%s10507_s6 + $0x664] ss:$16 sps:$4 sm:$0xff]   ;;  %v7345_v47 = vld [vmem:[%s10507_s6 + $0x66c] ss:$16 sps:$4 sm:$0xff]  }
 0x1a7   :  { %v1233_v42 = vmul.f32 %v1201_v27, %v1129_v32  ;;  %v1054_v45 = vpop.f32.mrb[20].mxu0  ;;  %v7343_v1 = vld [vmem:[%s10507_s6 + $0x668] ss:$16 sps:$4 sm:$0xff]   ;;  %v7348_v33 = vld [vmem:[%s10507_s6 + $0x684] ss:$16 sps:$4 sm:$0xff]  }
 0x1a8   :  { %v1256_v48 = vpack.c.bf16 %v1232_v39, %v1224_v60  ;;  %v1055_v49 = vadd.f32 %v1054_v45, %v9086_v2  ;;  %v1056_v56 = vpop.f32.mrb[21].mxu0  ;;  %v7351_v27 = vld [vmem:[%s10507_s6 + $0x68c] ss:$16 sps:$4 sm:$0xff]   ;;  %v7346_v28 = vld [vmem:[%s10507_s6 + $0x680] ss:$16 sps:$4 sm:$0xff]  }
 0x1a9   :  { %2963 = vmatpush1.bf16.msra.mxu0 %v7316_v34  ;;  %3175 = vmatpush1.bf16.msra.mxu1 %v7319_v36  ;;  %v1257_v54 = vpack.c.bf16 %v1233_v42, %v1225_v30  ;;  %v1057_v57 = vadd.f32 %v1056_v56, %v9100_v16  ;;  %v1058_v15 = vpop.f32.mrb[22].mxu0  ;;  %v7354_v32 = vld [vmem:[%s10507_s6 + $0x6a4] ss:$16 sps:$4 sm:$0xff]   ;;  %v7352_v34 = vld [vmem:[%s10507_s6 + $0x6a0] ss:$16 sps:$4 sm:$0xff]  }
 0x1aa   :  { %2985 = vmatprep.subr.bf16.mxu0 %v7324_v17  ;;  %3197 = vmatprep.subr.bf16.mxu1 %v7327_v40  ;;  %v1136_v6 = vmax.f32 %v1055_v49, 0.0  ;;  %v1059_v58 = vadd.f32 %v1058_v15, %v9086_v2  ;;  %v1060_v10 = vpop.f32.mrb[23].mxu0  ;;  %v7331_v2 = vld [vmem:[%s10507_s6 + $0x628] ss:$16 sps:$4 sm:$0xff]   ;;  %v7363_v60 = vld [vmem:[%s10507_s6 + $0x6cc] ss:$16 sps:$4 sm:$0xff]  }
 0x1ab   :  { %2964 = vmatprep.mubr.bf16.mxu0 %v1257_v54  ;;  %3176 = vmatprep.mubr.bf16.mxu1 %v1257_v54  ;;  %v1137_v59 = vmax.f32 %v1057_v57, 0.0  ;;  %v1061_v61 = vadd.f32 %v1060_v10, %v9100_v16  ;;  %v7336_v16 = vld [vmem:[%s10507_s6 + $0x644] ss:$16 sps:$4 sm:$0xff]   ;;  %v7355_v36 = vld [vmem:[%s10507_s6 + $0x6a8] ss:$16 sps:$4 sm:$0xff]  }
 0x1ac   :  { %2965 = vmatmul.mubr.bf16.vlgmr.msra.gmra.mrb[24].mxu0 %v1256_v48  ;;  %3177 = vmatmul.mubr.bf16.vlgmr.msra.gmra.mrb[8].mxu1 %v1256_v48  ;;  %v1240_v52 = vmul.f32 %v1208_v55, %v1136_v6  ;;  %v1144_v13 = vmax.f32 %v1059_v58, 0.0  ;;  %v7358_v39 = vld [vmem:[%s10507_s6 + $0x6c0] ss:$16 sps:$4 sm:$0xff]   ;;  %v7361_v17 = vld [vmem:[%s10507_s6 + $0x6c8] ss:$16 sps:$4 sm:$0xff]  }
 0x1ad   :  { %2986 = vmatpush1.bf16.msra.mxu0 %v7322_v8  ;;  %3198 = vmatpush1.bf16.msra.mxu1 %v7325_v43  ;;  %v1241_v19 = vmul.f32 %v1209_v63, %v1137_v59  ;;  %v1145_v0 = vmax.f32 %v1061_v61, 0.0  ;;  %v7366_v40 = vld [vmem:[%s10507_s6 + $0x6e4] ss:$16 sps:$4 sm:$0xff]   ;;  %v7364_v30 = vld [vmem:[%s10507_s6 + $0x6e0] ss:$16 sps:$4 sm:$0xff]  }
 0x1ae   :  { %2987 = vmatprep.subr.bf16.mxu0 %v7330_v4  ;;  %3199 = vmatprep.subr.bf16.mxu1 %v7333_v31  ;;  %v1248_v21 = vmul.f32 %v1216_v7, %v1144_v13  ;;  %v7367_v42 = vld [vmem:[%s10507_s6 + $0x6e8] ss:$16 sps:$4 sm:$0xff]   ;;  %v7372_v45 = vld [vmem:[%s10507_s6 + $0x704] ss:$16 sps:$4 sm:$0xff]   ;;  %v7370_v48 = vld [vmem:[%s10507_s6 + $0x700] ss:$16 sps:$4 sm:$0xff]  }
 0x1af   :  { %v1249_v22 = vmul.f32 %v1217_v11, %v1145_v0  ;;  %v7373_v49 = vld [vmem:[%s10507_s6 + $0x708] ss:$16 sps:$4 sm:$0xff]   ;;  %v7378_v55 = vld [vmem:[%s10507_s6 + $0x724] ss:$16 sps:$4 sm:$0xff]   ;;  %v7381_v56 = vld [vmem:[%s10507_s6 + $0x72c] ss:$16 sps:$4 sm:$0xff]  }
 0x1b0   :  { %v1264_v23 = vpack.c.bf16 %v1248_v21, %v1240_v52  ;;  %v7376_v54 = vld [vmem:[%s10507_s6 + $0x720] ss:$16 sps:$4 sm:$0xff]   ;;  %v7379_v8 = vld [vmem:[%s10507_s6 + $0x728] ss:$16 sps:$4 sm:$0xff]   ;;  %v7384_v43 = vld [vmem:[%s10507_s6 + $0x744] ss:$16 sps:$4 sm:$0xff]  }
 0x1b1   :  { %2988 = vmatpush1.bf16.msra.mxu0 %v7328_v18  ;;  %3200 = vmatpush1.bf16.msra.mxu1 %v7331_v2  ;;  %v1265_v9 = vpack.c.bf16 %v1249_v22, %v1241_v19  ;;  %v7387_v57 = vld [vmem:[%s10507_s6 + $0x74c] ss:$16 sps:$4 sm:$0xff]   ;;  %v7382_v63 = vld [vmem:[%s10507_s6 + $0x740] ss:$16 sps:$4 sm:$0xff]   ;;  %v7385_v15 = vld [vmem:[%s10507_s6 + $0x748] ss:$16 sps:$4 sm:$0xff]  }
 0x1b2   :  { %2989 = vmatprep.subr.bf16.mxu0 %v7336_v16  ;;  %3201 = vmatprep.subr.bf16.mxu1 %v7339_v20  ;;  %v7390_v4 = vld [vmem:[%s10507_s6 + $0x764] ss:$16 sps:$4 sm:$0xff]   ;;  %v7393_v31 = vld [vmem:[%s10507_s6 + $0x76c] ss:$16 sps:$4 sm:$0xff]   ;;  %v7388_v6 = vld [vmem:[%s10507_s6 + $0x760] ss:$16 sps:$4 sm:$0xff]  }
 0x1b3   :  { %2974 = vmatprep.mubr.bf16.mxu0 %v1265_v9  ;;  %3186 = vmatprep.mubr.bf16.mxu1 %v1265_v9  ;;  %v7391_v58 = vld [vmem:[%s10507_s6 + $0x768] ss:$16 sps:$4 sm:$0xff]   ;;  %v7396_v7 = vld [vmem:[%s10507_s6 + $0x784] ss:$16 sps:$4 sm:$0xff]   ;;  %v7399_v10 = vld [vmem:[%s10507_s6 + $0x78c] ss:$16 sps:$4 sm:$0xff]  }
 0x1b4   :  { %2975 = vmatmul.mubr.bf16.gmra.mrb[28].mxu0 %v1264_v23  ;;  %3187 = vmatmul.mubr.bf16.gmra.mrb[12].mxu1 %v1264_v23  ;;  %v7394_v59 = vld [vmem:[%s10507_s6 + $0x780] ss:$16 sps:$4 sm:$0xff]   ;;  %v7397_v61 = vld [vmem:[%s10507_s6 + $0x788] ss:$16 sps:$4 sm:$0xff]   ;;  %v7402_v11 = vld [vmem:[%s10507_s6 + $0x7a4] ss:$16 sps:$4 sm:$0xff]  }
 0x1b5   :  { %2990 = vmatpush1.bf16.msra.mxu0 %v7334_v24  ;;  %3202 = vmatpush1.bf16.msra.mxu1 %v7337_v3  ;;  %v7405_v52 = vld [vmem:[%s10507_s6 + $0x7ac] ss:$16 sps:$4 sm:$0xff]   ;;  %v7400_v13 = vld [vmem:[%s10507_s6 + $0x7a0] ss:$16 sps:$4 sm:$0xff]   ;;  %v7403_v18 = vld [vmem:[%s10507_s6 + $0x7a8] ss:$16 sps:$4 sm:$0xff]  }
 0x1b6   :  { %2991 = vmatprep.subr.bf16.mxu0 %v7342_v25  ;;  %3203 = vmatprep.subr.bf16.mxu1 %v7345_v47  ;;  %v7408_v2 = vld [vmem:[%s10507_s6 + $0x7c4] ss:$16 sps:$4 sm:$0xff]   ;;  %v7411_v19 = vld [vmem:[%s10507_s6 + $0x7cc] ss:$16 sps:$4 sm:$0xff]   ;;  %v7406_v0 = vld [vmem:[%s10507_s6 + $0x7c0] ss:$16 sps:$4 sm:$0xff]  }
 0x1b7   :  { %3017 = vmatprep.mubr.bf16.mxu0 %v8901_v14  ;;  %3229 = vmatprep.mubr.bf16.mxu1 %v8901_v14  ;;  %v7357_v14 = vld [vmem:[%s10507_s6 + $0x6ac] ss:$16 sps:$4 sm:$0xff]   ;;  %v7409_v16 = vld [vmem:[%s10507_s6 + $0x7c8] ss:$16 sps:$4 sm:$0xff]   ;;  %v7414_v20 = vld [vmem:[%s10507_s6 + $0x7e4] ss:$16 sps:$4 sm:$0xff]  }
 0x1b8   :  { %v7417_v21 = vld [vmem:[%s10507_s6 + $0x7ec] ss:$16 sps:$4 sm:$0xff]   ;;  %v7412_v22 = vld [vmem:[%s10507_s6 + $0x7e0] ss:$16 sps:$4 sm:$0xff]   ;;  %v7415_v23 = vld [vmem:[%s10507_s6 + $0x7e8] ss:$16 sps:$4 sm:$0xff]  }
 0x1b9   :  { %2992 = vmatpush1.bf16.msra.mxu0 %v7340_v26  ;;  %3204 = vmatpush1.bf16.msra.mxu1 %v7343_v1  ;;  %v7420_v24 = vld [vmem:[%s10510_s8 + $0x4] ss:$8 sps:$4 sm:$0xff]   ;;  %v7418_v3 = vld [vmem:[%s10510_s8] ss:$8 sps:$4 sm:$0xff]   ;;  %v7423_v9 = vld [vmem:[%s10510_s8 + $0x14] ss:$8 sps:$4 sm:$0xff]  }
 0x1ba   :  { %2993 = vmatprep.subr.bf16.mxu0 %v7348_v33  ;;  %3205 = vmatprep.subr.bf16.mxu1 %v7351_v27  ;;  %v7421_v25 = vld [vmem:[%s10510_s8 + $0x10] ss:$8 sps:$4 sm:$0xff]   ;;  %v7426_v47 = vld [vmem:[%s10510_s8 + $0x24] ss:$8 sps:$4 sm:$0xff]   ;;  %v7424_v26 = vld [vmem:[%s10510_s8 + $0x20] ss:$8 sps:$4 sm:$0xff]  }
 0x1bb   :  { %v7432_v1 = vld [vmem:[%s10510_s8 + $0x44] ss:$8 sps:$4 sm:$0xff]   ;;  %v7430_v33 = vld [vmem:[%s10510_s8 + $0x40] ss:$8 sps:$4 sm:$0xff]   ;;  %v7433_v27 = vld [vmem:[%s10510_s8 + $0x50] ss:$8 sps:$4 sm:$0xff]  }
 0x1bd   :  { %2994 = vmatpush1.bf16.msra.mxu0 %v7346_v28  ;;  %3206 = vmatpush1.bf16.msra.mxu1 %v7349_v29  ;;  %v7438_v28 = vld [vmem:[%s10510_s8 + $0x64] ss:$8 sps:$4 sm:$0xff]   ;;  %v7436_v29 = vld [vmem:[%s10510_s8 + $0x60] ss:$8 sps:$4 sm:$0xff]  }
 0x1be   :  { %2995 = vmatprep.subr.bf16.mxu0 %v7354_v32  ;;  %3207 = vmatprep.subr.bf16.mxu1 %v7357_v14  ;;  %v7441_v32 = vld [vmem:[%s10510_s8 + $0x74] ss:$8 sps:$4 sm:$0xff]   ;;  %v7439_v14 = vld [vmem:[%s10510_s8 + $0x70] ss:$8 sps:$4 sm:$0xff]  }
 0x1c1   :  { %2996 = vmatpush1.bf16.msra.mxu0 %v7352_v34  ;;  %3208 = vmatpush1.bf16.msra.mxu1 %v7355_v36  ;;  %v7444_v34 = vld [vmem:[%s10510_s8 + $0x84] ss:$8 sps:$4 sm:$0xff]   ;;  %v7442_v36 = vld [vmem:[%s10510_s8 + $0x80] ss:$8 sps:$4 sm:$0xff]  }
 0x1c2   :  { %2997 = vmatprep.subr.bf16.mxu0 %v7360_v37  ;;  %3209 = vmatprep.subr.bf16.mxu1 %v7363_v60  ;;  %v7447_v37 = vld [vmem:[%s10510_s8 + $0x94] ss:$8 sps:$4 sm:$0xff]   ;;  %v7445_v60 = vld [vmem:[%s10510_s8 + $0x90] ss:$8 sps:$4 sm:$0xff]  }
 0x1c5   :  { %2998 = vmatpush1.bf16.msra.mxu0 %v7358_v39  ;;  %3210 = vmatpush1.bf16.msra.mxu1 %v7361_v17  ;;  %v7450_v39 = vld [vmem:[%s10510_s8 + $0xa4] ss:$8 sps:$4 sm:$0xff]   ;;  %v7448_v17 = vld [vmem:[%s10510_s8 + $0xa0] ss:$8 sps:$4 sm:$0xff]  }
 0x1c6   :  { %2999 = vmatprep.subr.bf16.mxu0 %v7366_v40  ;;  %3211 = vmatprep.subr.bf16.mxu1 %v7369_v41  ;;  %v7453_v40 = vld [vmem:[%s10510_s8 + $0xb4] ss:$8 sps:$4 sm:$0xff]   ;;  %v7451_v41 = vld [vmem:[%s10510_s8 + $0xb0] ss:$8 sps:$4 sm:$0xff]  }
 0x1c9   :  { %3000 = vmatpush1.bf16.msra.mxu0 %v7364_v30  ;;  %3212 = vmatpush1.bf16.msra.mxu1 %v7367_v42  ;;  %v7456_v30 = vld [vmem:[%s10510_s8 + $0xc4] ss:$8 sps:$4 sm:$0xff]   ;;  %v7454_v42 = vld [vmem:[%s10510_s8 + $0xc0] ss:$8 sps:$4 sm:$0xff]  }
 0x1ca   :  { %3001 = vmatprep.subr.bf16.mxu0 %v7372_v45  ;;  %3213 = vmatprep.subr.bf16.mxu1 %v7375_v46  ;;  %v7459_v45 = vld [vmem:[%s10510_s8 + $0xd4] ss:$8 sps:$4 sm:$0xff]   ;;  %v7457_v46 = vld [vmem:[%s10510_s8 + $0xd0] ss:$8 sps:$4 sm:$0xff]  }
 0x1cd   :  { %3002 = vmatpush1.bf16.msra.mxu0 %v7370_v48  ;;  %3214 = vmatpush1.bf16.msra.mxu1 %v7373_v49  ;;  %v7462_v48 = vld [vmem:[%s10510_s8 + $0xe4] ss:$8 sps:$4 sm:$0xff]   ;;  %v7460_v49 = vld [vmem:[%s10510_s8 + $0xe0] ss:$8 sps:$4 sm:$0xff]  }
 0x1ce   :  { %3003 = vmatprep.subr.bf16.mxu0 %v7378_v55  ;;  %3215 = vmatprep.subr.bf16.mxu1 %v7381_v56  ;;  %v7465_v55 = vld [vmem:[%s10510_s8 + $0xf4] ss:$8 sps:$4 sm:$0xff]   ;;  %v7463_v56 = vld [vmem:[%s10510_s8 + $0xf0] ss:$8 sps:$4 sm:$0xff]  }
 0x1d1   :  { %3004 = vmatpush1.bf16.msra.mxu0 %v7376_v54  ;;  %3216 = vmatpush1.bf16.msra.mxu1 %v7379_v8  ;;  %v7468_v54 = vld [vmem:[%s10510_s8 + $0x104] ss:$8 sps:$4 sm:$0xff]  }
 0x1d2   :  { %3005 = vmatprep.subr.bf16.mxu0 %v7384_v43  ;;  %3217 = vmatprep.subr.bf16.mxu1 %v7387_v57  ;;  %v7514_v8 = vld [vmem:[%s10511_s10] ss:$12 sps:$4 sm:$0xff]   ;;  %v7516_v43 = vld [vmem:[%s10511_s10 + $0x4] ss:$12 sps:$4 sm:$0xff]   ;;  %v7519_v57 = vld [vmem:[%s10511_s10 + $0x1c] ss:$12 sps:$4 sm:$0xff]  }
 0x1d5   :  { %3006 = vmatpush1.bf16.msra.mxu0 %v7382_v63  ;;  %3218 = vmatpush1.bf16.msra.mxu1 %v7385_v15  ;;  %v7517_v63 = vld [vmem:[%s10511_s10 + $0x18] ss:$12 sps:$4 sm:$0xff]   ;;  %v7522_v15 = vld [vmem:[%s10511_s10 + $0x34] ss:$12 sps:$4 sm:$0xff]  }
 0x1d6   :  { %3007 = vmatprep.subr.bf16.mxu0 %v7390_v4  ;;  %3219 = vmatprep.subr.bf16.mxu1 %v7393_v31  ;;  %v7520_v4 = vld [vmem:[%s10511_s10 + $0x30] ss:$12 sps:$4 sm:$0xff]   ;;  %v7525_v31 = vld [vmem:[%s10511_s10 + $0x4c] ss:$12 sps:$4 sm:$0xff]  }
 0x1d9   :  { %3008 = vmatpush1.bf16.msra.mxu0 %v7388_v6  ;;  %3220 = vmatpush1.bf16.msra.mxu1 %v7391_v58  ;;  %v7523_v6 = vld [vmem:[%s10511_s10 + $0x48] ss:$12 sps:$4 sm:$0xff]   ;;  %v7528_v58 = vld [vmem:[%s10511_s10 + $0x64] ss:$12 sps:$4 sm:$0xff]  }
 0x1da   :  { %3009 = vmatprep.subr.bf16.mxu0 %v7396_v7  ;;  %3221 = vmatprep.subr.bf16.mxu1 %v7399_v10  ;;  %v7526_v7 = vld [vmem:[%s10511_s10 + $0x60] ss:$12 sps:$4 sm:$0xff]   ;;  %v7531_v10 = vld [vmem:[%s10511_s10 + $0x7c] ss:$12 sps:$4 sm:$0xff]  }
 0x1dd   :  { %3010 = vmatpush1.bf16.msra.mxu0 %v7394_v59  ;;  %3222 = vmatpush1.bf16.msra.mxu1 %v7397_v61  ;;  %v7529_v59 = vld [vmem:[%s10511_s10 + $0x78] ss:$12 sps:$4 sm:$0xff]   ;;  %v7534_v61 = vld [vmem:[%s10511_s10 + $0x94] ss:$12 sps:$4 sm:$0xff]  }
 0x1de   :  { %3011 = vmatprep.subr.bf16.mxu0 %v7402_v11  ;;  %3223 = vmatprep.subr.bf16.mxu1 %v7405_v52  ;;  %v7532_v11 = vld [vmem:[%s10511_s10 + $0x90] ss:$12 sps:$4 sm:$0xff]   ;;  %v7537_v52 = vld [vmem:[%s10511_s10 + $0xac] ss:$12 sps:$4 sm:$0xff]  }
 0x1e1   :  { %3012 = vmatpush1.bf16.msra.mxu0 %v7400_v13  ;;  %3224 = vmatpush1.bf16.msra.mxu1 %v7403_v18  ;;  %v7535_v13 = vld [vmem:[%s10511_s10 + $0xa8] ss:$12 sps:$4 sm:$0xff]   ;;  %v7540_v18 = vld [vmem:[%s10511_s10 + $0xc4] ss:$12 sps:$4 sm:$0xff]  }
 0x1e2   :  { %3013 = vmatprep.subr.bf16.mxu0 %v7408_v2  ;;  %3225 = vmatprep.subr.bf16.mxu1 %v7411_v19  ;;  %v9495_v2 = vld [vmem:[%s10512_s3] sm:$0xff]  ;;  %v9500_v19 = vld [vmem:[%s10512_s3 + $0x10] sm:$0xff] }
 0x1e5   :  { %3014 = vmatpush1.bf16.msra.mxu0 %v7406_v0  ;;  %3226 = vmatpush1.bf16.msra.mxu1 %v7409_v16  ;;  %v7538_v0 = vld [vmem:[%s10511_s10 + $0xc0] ss:$12 sps:$4 sm:$0xff]  }
 0x1e6   :  { %3015 = vmatprep.subr.bf16.mxu0 %v7414_v20  ;;  %3227 = vmatprep.subr.bf16.mxu1 %v7417_v21  ;;  %v9508_v16 = vld [vmem:[%s10512_s3 + $0x8] sm:$0xff]  ;;  %v9513_v20 = vld [vmem:[%s10512_s3 + $0x18] sm:$0xff] }
 0x1e7   :  { %v7543_v21 = vld [vmem:[%s10511_s10 + $0xdc] ss:$12 sps:$4 sm:$0xff]  }
 0x1e9   :  { %3016 = vmatpush1.bf16.msra.mxu0 %v7412_v22  ;;  %3228 = vmatpush1.bf16.msra.mxu1 %v7415_v23  ;;  %v1524_v22 = vld [vmem:[%s10513_s7] sm:$0xf]  ;;  %v3270_v23 = vunpack.c.0.s8 %v9495_v2 }
 0x1ea   :  { %3722 = vmatprep.subr.bf16.mxu0 %v7420_v24  ;;  %4185 = vmatprep.subr.bf16.mxu1 %v7516_v43  ;;  %v3272_v24 = vunpack.c.0.s8 %v9500_v19 }
 0x1ec   :  { %3018 = vmatmul.mubr.bf16.vlgmr.msra.gmra.mrb[24].mxu0 %v8882_v62  ;;  %3230 = vmatmul.mubr.bf16.vlgmr.msra.gmra.mrb[8].mxu1 %v8882_v62  ;;  %v7429_v62 = vld [vmem:[%s10510_s8 + $0x34] ss:$8 sps:$4 sm:$0xff]  }
 0x1ed   :  { %3027 = vmatprep.mubr.bf16.mxu0 %v8954_v12  ;;  %3239 = vmatprep.mubr.bf16.mxu1 %v8954_v12  ;;  %v7427_v12 = vld [vmem:[%s10510_s8 + $0x30] ss:$8 sps:$4 sm:$0xff]  }
 0x1ee   :  { %3723 = vmatpush1.bf16.msra.mxu0 %v7418_v3  ;;  %4186 = vmatpush1.bf16.msra.mxu1 %v7514_v8  ;;  %v3271_v3 = vunpack.c.0.s8 %v9508_v16 }
 0x1ef   :  { %3724 = vmatprep.subr.bf16.mxu0 %v7423_v9  ;;  %4187 = vmatprep.subr.bf16.mxu1 %v7519_v57  ;;  %v3273_v9 = vunpack.c.0.s8 %v9513_v20 }
 0x1f2   :  { %3725 = vmatpush1.bf16.msra.mxu0 %v7421_v25  ;;  %4188 = vmatpush1.bf16.msra.mxu1 %v7517_v63  ;;  %v7541_v25 = vld [vmem:[%s10511_s10 + $0xd8] ss:$12 sps:$4 sm:$0xff]  }
 0x1f3   :  { %3726 = vmatprep.subr.bf16.mxu0 %v7426_v47  ;;  %4189 = vmatprep.subr.bf16.mxu1 %v7522_v15  ;;  %v3274_v47 = vunpack.c.1.s8 %v9495_v2 }
 0x1f4   :  { %3028 = vmatmul.mubr.bf16.gmra.mrb[28].mxu0 %v8940_v5  ;;  %3240 = vmatmul.mubr.bf16.gmra.mrb[12].mxu1 %v8940_v5  ;;  %v7435_v5 = vld [vmem:[%s10510_s8 + $0x54] ss:$8 sps:$4 sm:$0xff]  }
 0x1f6   :  { %3727 = vmatpush1.bf16.msra.mxu0 %v7424_v26  ;;  %4190 = vmatpush1.bf16.msra.mxu1 %v7520_v4  ;;  %v3276_v26 = vunpack.c.1.s8 %v9500_v19 }
 0x1f7   :  { %3728 = vmatprep.subr.bf16.mxu0 %v7429_v62  ;;  %4191 = vmatprep.subr.bf16.mxu1 %v7525_v31  ;;  %v3275_v62 = vunpack.c.1.s8 %v9508_v16 }
 0x1fa   :  { %3729 = vmatpush1.bf16.msra.mxu0 %v7427_v12  ;;  %4192 = vmatpush1.bf16.msra.mxu1 %v7523_v6  ;;  %v3277_v12 = vunpack.c.1.s8 %v9513_v20 }
 0x1fb   :  { %3730 = vmatprep.subr.bf16.mxu0 %v7432_v1  ;;  %4193 = vmatprep.subr.bf16.mxu1 %v7528_v58  ;;  %v7546_v1 = vld [vmem:[%s10511_s10 + $0xf4] ss:$12 sps:$4 sm:$0xff]  }
 0x1fe   :  { %3731 = vmatpush1.bf16.msra.mxu0 %v7430_v33  ;;  %4194 = vmatpush1.bf16.msra.mxu1 %v7526_v7  ;;  %v9536_v33 = vrot.slane %v1524_v22, %v8608_v51 }
 0x1ff   :  { %3732 = vmatprep.subr.bf16.mxu0 %v7435_v5  ;;  %4195 = vmatprep.subr.bf16.mxu1 %v7531_v10  ;;  %v9539_v5 = vrot.slane %v1524_v22, %v8777_v35  ;;  %v3283_v10 = vunpack.c.3.s8 %v9508_v16 }
 0x202   :  { %3733 = vmatpush1.bf16.msra.mxu0 %v7433_v27  ;;  %4196 = vmatpush1.bf16.msra.mxu1 %v7529_v59  ;;  %v3278_v27 = vunpack.c.2.s8 %v9495_v2  ;;  %v3285_v59 = vunpack.c.3.s8 %v9513_v20 }
 0x203   :  { %3734 = vmatprep.subr.bf16.mxu0 %v7438_v28  ;;  %4197 = vmatprep.subr.bf16.mxu1 %v7534_v61  ;;  %v3280_v28 = vunpack.c.2.s8 %v9500_v19  ;;  %v7547_v61 = vld [vmem:[%s10511_s10 + $0x108] ss:$12 sps:$4 sm:$0xff]  }
 0x206   :  { %3735 = vmatpush1.bf16.msra.mxu0 %v7436_v29  ;;  %4198 = vmatpush1.bf16.msra.mxu1 %v7532_v11  ;;  %v9544_v29 = vrot.slane %v1524_v22, %v8616_v53 }
 0x207   :  { %3736 = vmatprep.subr.bf16.mxu0 %v7441_v32  ;;  %4199 = vmatprep.subr.bf16.mxu1 %v7537_v52  ;;  %v9547_v32 = vrot.slane %v1524_v22, %v8786_v38 }
 0x20a   :  { %3737 = vmatpush1.bf16.msra.mxu0 %v7439_v14  ;;  %4200 = vmatpush1.bf16.msra.mxu1 %v7535_v13  ;;  %v3279_v14 = vunpack.c.2.s8 %v9508_v16 }
 0x20b   :  { %3738 = vmatprep.subr.bf16.mxu0 %v7444_v34  ;;  %4201 = vmatprep.subr.bf16.mxu1 %v7540_v18  ;;  %v3281_v34 = vunpack.c.2.s8 %v9513_v20 }
 0x20c   :  { %v9565_v15 = vcvt.s32.f32 %v3279_v14  ;;  %v3301_v14 = vcvt.s32.f32 %v3285_v59 }
 0x20d   :  { %v9567_v4 = vcvt.s32.f32 %v3281_v34  ;;  %v7555_v34 = vld [vmem:[%s10511_s10 + $0x13c] ss:$12 sps:$4 sm:$0xff]  }
 0x20e   :  { %3739 = vmatpush1.bf16.msra.mxu0 %v7442_v36  ;;  %4202 = vmatpush1.bf16.msra.mxu1 %v7538_v0  ;;  %v3286_v36 = vcvt.s32.f32 %v3270_v23  ;;  %v7552_v0 = vld [vmem:[%s10511_s10 + $0x124] ss:$12 sps:$4 sm:$0xff]  }
 0x20f   :  { %3740 = vmatprep.subr.bf16.mxu0 %v7447_v37  ;;  %4203 = vmatprep.subr.bf16.mxu1 %v7543_v21  ;;  %v3288_v37 = vcvt.s32.f32 %v3272_v24 }
 0x212   :  { %3741 = vmatpush1.bf16.msra.mxu0 %v7445_v60  ;;  %v3287_v60 = vcvt.s32.f32 %v3271_v3  ;;  %4204 = vmatpush1.bf16.msra.mxu1 %v7541_v25 }
 0x213   :  { %3742 = vmatprep.subr.bf16.mxu0 %v7450_v39  ;;  %v3289_v39 = vcvt.s32.f32 %v3273_v9  ;;  %4205 = vmatprep.subr.bf16.mxu1 %v7546_v1 }
 0x216   :  { %3743 = vmatpush1.bf16.msra.mxu0 %v7448_v17  ;;  %v7544_v17 = vld [vmem:[%s10511_s10 + $0xf0] ss:$12 sps:$4 sm:$0xff]  }
 0x217   :  { %3744 = vmatprep.subr.bf16.mxu0 %v7453_v40  ;;  %v3290_v40 = vcvt.s32.f32 %v3274_v47  ;;  %4206 = vmatpush1.bf16.msra.mxu1 %v7544_v17 }
 0x21a   :  { %3745 = vmatpush1.bf16.msra.mxu0 %v7451_v41  ;;  %v3292_v41 = vcvt.s32.f32 %v3276_v26 }
 0x21b   :  { %3746 = vmatprep.subr.bf16.mxu0 %v7456_v30  ;;  %v3291_v30 = vcvt.s32.f32 %v3275_v62  ;;  %v3299_v62 = vcvt.s32.f32 %v3283_v10 }
 0x21e   :  { %3747 = vmatpush1.bf16.msra.mxu0 %v7454_v42  ;;  %v3293_v42 = vcvt.s32.f32 %v3277_v12  ;;  %v7550_v12 = vld [vmem:[%s10511_s10 + $0x120] ss:$12 sps:$4 sm:$0xff]  }
 0x21f   :  { %3748 = vmatprep.subr.bf16.mxu0 %v7459_v45  ;;  %v7549_v45 = vld [vmem:[%s10511_s10 + $0x10c] ss:$12 sps:$4 sm:$0xff]  }
 0x220   :  { %4207 = vmatprep.subr.bf16.mxu1 %v7549_v45 }
 0x221   :  { %4208 = vmatpush1.bf16.msra.mxu1 %v7547_v61 }
 0x222   :  { %3749 = vmatpush1.bf16.msra.mxu0 %v7457_v46  ;;  %4209 = vmatprep.subr.bf16.mxu1 %v7552_v0 }
 0x223   :  { %3750 = vmatprep.subr.bf16.mxu0 %v7462_v48 }
 0x225   :  { %4210 = vmatpush1.bf16.msra.mxu1 %v7550_v12 }
 0x226   :  { %3751 = vmatpush1.bf16.msra.mxu0 %v7460_v49  ;;  %v9557_v49 = vcvt.s32.f32 %v3278_v27  ;;  %4211 = vmatprep.subr.bf16.mxu1 %v7555_v34  ;;  %v7481_v34 = vld [vmem:[%s10510_s8 + $0x150] ss:$8 sps:$4 sm:$0xff]  }
 0x227   :  { %3752 = vmatprep.subr.bf16.mxu0 %v7465_v55  ;;  %v9559_v55 = vcvt.s32.f32 %v3280_v28 }
 0x22a   :  { %3753 = vmatpush1.bf16.msra.mxu0 %v7463_v56  ;;  %v3282_v56 = vunpack.c.3.s8 %v9495_v2 }
 0x22b   :  { %3775 = vmatprep.subr.bf16.mxu0 %v7468_v54  ;;  %v3284_v54 = vunpack.c.3.s8 %v9500_v19 }
 0x22c   :  { %v3298_v9 = vcvt.s32.f32 %v3282_v56 }
 0x22d   :  { %v3300_v26 = vcvt.s32.f32 %v3284_v54 }
 0x2bf   :  { %v3019_v46 = vpop.f32.mrb[24].mxu0  ;;  %v3231_v48 = vpop.f32.mrb[8].mxu1 }
 0x2c0   :  { %v6897_v8 = vadd.f32 %v3019_v46, %v9536_v33  ;;  %v6905_v43 = vadd.f32 %v3231_v48, %v9539_v5  ;;  %v3021_v57 = vpop.f32.mrb[25].mxu0  ;;  %v3233_v63 = vpop.f32.mrb[9].mxu1 }
 0x2c1   :  { %v6898_v31 = vadd.f32 %v3021_v57, %v9544_v29  ;;  %v6906_v6 = vadd.f32 %v3233_v63, %v9547_v32  ;;  %v3023_v58 = vpop.f32.mrb[26].mxu0  ;;  %v3235_v7 = vpop.f32.mrb[10].mxu1 }
 0x2c2   :  { %v3250_v11 = vmax.f32 %v6897_v8, 0.0  ;;  %v3252_v52 = vmax.f32 %v6905_v43, 0.0  ;;  %v6899_v13 = vadd.f32 %v3023_v58, %v9536_v33  ;;  %v6907_v18 = vadd.f32 %v3235_v7, %v9539_v5  ;;  %v3025_v2 = vpop.f32.mrb[27].mxu0  ;;  %v3237_v19 = vpop.f32.mrb[11].mxu1 }
 0x2c3   :  { %v3251_v16 = vmax.f32 %v6898_v31, 0.0  ;;  %v3253_v20 = vmax.f32 %v6906_v6, 0.0  ;;  %v6900_v21 = vadd.f32 %v3025_v2, %v9544_v29  ;;  %v6908_v22 = vadd.f32 %v3237_v19, %v9547_v32  ;;  %v7553_v6 = vld [vmem:[%s10511_s10 + $0x138] ss:$12 sps:$4 sm:$0xff]  }
 0x2c4   :  { %v9583_v23 = vmul.f32 %v3288_v37, %v3252_v52  ;;  %v3254_v24 = vmax.f32 %v6899_v13, 0.0  ;;  %v3256_v3 = vmax.f32 %v6907_v18, 0.0  ;;  %v3302_v1 = vmul.f32 %v3286_v36, %v3250_v11  ;;  %v7471_v52 = vld [vmem:[%s10510_s8 + $0x114] ss:$8 sps:$4 sm:$0xff]   ;;  %4212 = vmatpush1.bf16.msra.mxu1 %v7553_v6 }
 0x2c5   :  { %v3255_v25 = vmax.f32 %v6900_v21, 0.0  ;;  %v3257_v47 = vmax.f32 %v6908_v22, 0.0  ;;  %v3303_v37 = vmul.f32 %v3287_v60, %v3251_v16  ;;  %v3305_v17 = vmul.f32 %v3289_v39, %v3253_v20  ;;  %v7469_v21 = vld [vmem:[%s10510_s8 + $0x110] ss:$8 sps:$4 sm:$0xff]   ;;  %v7513_v6 = vld [vmem:[%s10510_s8 + $0x1f4] ss:$8 sps:$4 sm:$0xff]  }
 0x2c6   :  { %v3306_v27 = vmul.f32 %v3290_v40, %v3254_v24  ;;  %v9588_v28 = vmul.f32 %v3292_v41, %v3256_v3 }
 0x2c7   :  { %v3307_v45 = vmul.f32 %v3291_v30, %v3255_v25  ;;  %v3309_v46 = vmul.f32 %v3293_v42, %v3257_v47  ;;  %v3029_v48 = vpop.f32.mrb[28].mxu0  ;;  %v3241_v56 = vpop.f32.mrb[12].mxu1  ;;  %v7466_v42 = vld [vmem:[%s10510_s8 + $0x100] ss:$8 sps:$4 sm:$0xff]  }
 0x2c8   :  { %v3318_v54 = vpack.c.bf16 %v3306_v27, %v3302_v1  ;;  %v3320_v8 = vpack.c.bf16 %v9588_v28, %v9583_v23  ;;  %v6901_v36 = vadd.f32 %v3029_v48, %v9536_v33  ;;  %v6909_v40 = vadd.f32 %v3241_v56, %v9539_v5  ;;  %v3031_v41 = vpop.f32.mrb[29].mxu0  ;;  %v3243_v43 = vpop.f32.mrb[13].mxu1  ;;  %v7478_v27 = vld [vmem:[%s10510_s8 + $0x140] ss:$8 sps:$4 sm:$0xff]   ;;  %v7492_v48 = vld [vmem:[%s10510_s8 + $0x184] ss:$8 sps:$4 sm:$0xff]  }
 0x2c9   :  { %v6902_v57 = vadd.f32 %v3031_v41, %v9544_v29  ;;  %v6910_v63 = vadd.f32 %v3243_v43, %v9547_v32  ;;  %v3033_v60 = vpop.f32.mrb[30].mxu0  ;;  %v3245_v39 = vpop.f32.mrb[14].mxu1  ;;  %v3319_v30 = vpack.c.bf16 %v3307_v45, %v3303_v37  ;;  %v3321_v31 = vpack.c.bf16 %v3309_v46, %v3305_v17  ;;  %v7486_v37 = vld [vmem:[%s10510_s8 + $0x164] ss:$8 sps:$4 sm:$0xff]   ;;  %v7484_v17 = vld [vmem:[%s10510_s8 + $0x160] ss:$8 sps:$4 sm:$0xff]  }
 0x2ca   :  { %v3258_v58 = vmax.f32 %v6901_v36, 0.0  ;;  %v3260_v7 = vmax.f32 %v6909_v40, 0.0  ;;  %v6903_v10 = vadd.f32 %v3033_v60, %v9536_v33  ;;  %v6911_v59 = vadd.f32 %v3245_v39, %v9539_v5  ;;  %v3035_v61 = vpop.f32.mrb[31].mxu0  ;;  %v3247_v11 = vpop.f32.mrb[15].mxu1  ;;  %v7489_v45 = vld [vmem:[%s10510_s8 + $0x174] ss:$8 sps:$4 sm:$0xff]  }
 0x2cb   :  { %v3259_v13 = vmax.f32 %v6902_v57, 0.0  ;;  %v3261_v18 = vmax.f32 %v6910_v63, 0.0  ;;  %v6904_v2 = vadd.f32 %v3035_v61, %v9544_v29  ;;  %v6912_v19 = vadd.f32 %v3247_v11, %v9547_v32  ;;  %3754 = vmatprep.mubr.bf16.mxu0 %v3319_v30  ;;  %v7474_v32 = vld [vmem:[%s10510_s8 + $0x124] ss:$8 sps:$4 sm:$0xff]   ;;  %v7487_v46 = vld [vmem:[%s10510_s8 + $0x170] ss:$8 sps:$4 sm:$0xff]  }
 0x2cc   :  { %v9613_v0 = vmul.f32 %v9559_v55, %v3260_v7  ;;  %v3262_v33 = vmax.f32 %v6903_v10, 0.0  ;;  %v3264_v16 = vmax.f32 %v6911_v59, 0.0  ;;  %3755 = vmatmul.mubr.bf16.vlgmr.msra.gmra.mrb[32].mxu0 %v3318_v54  ;;  %v3310_v22 = vmul.f32 %v9557_v49, %v3258_v58  ;;  %v7490_v56 = vld [vmem:[%s10510_s8 + $0x180] ss:$8 sps:$4 sm:$0xff]   ;;  %v7495_v54 = vld [vmem:[%s10510_s8 + $0x194] ss:$8 sps:$4 sm:$0xff]  }
 0x2cd   :  { %v3263_v5 = vmax.f32 %v6904_v2, 0.0  ;;  %v3265_v20 = vmax.f32 %v6912_v19, 0.0  ;;  %3776 = vmatpush1.bf16.msra.mxu0 %v7466_v42  ;;  %v3311_v55 = vmul.f32 %v9565_v15, %v3259_v13  ;;  %v9626_v3 = vmul.f32 %v9567_v4, %v3261_v18  ;;  %v7477_v15 = vld [vmem:[%s10510_s8 + $0x134] ss:$8 sps:$4 sm:$0xff]   ;;  %v7475_v4 = vld [vmem:[%s10510_s8 + $0x130] ss:$8 sps:$4 sm:$0xff]  }
 0x2ce   :  { %v3314_v29 = vmul.f32 %v3298_v9, %v3262_v33  ;;  %v9619_v24 = vmul.f32 %v3300_v26, %v3264_v16  ;;  %3777 = vmatprep.subr.bf16.mxu0 %v7471_v52  ;;  %v7472_v26 = vld [vmem:[%s10510_s8 + $0x120] ss:$8 sps:$4 sm:$0xff]   ;;  %v7493_v36 = vld [vmem:[%s10510_s8 + $0x190] ss:$8 sps:$4 sm:$0xff]   ;;  %v7498_v40 = vld [vmem:[%s10510_s8 + $0x1a4] ss:$8 sps:$4 sm:$0xff]  }
 0x2cf   :  { %v3315_v25 = vmul.f32 %v3299_v62, %v3263_v5  ;;  %v9628_v47 = vmul.f32 %v3301_v14, %v3265_v20  ;;  %v7480_v62 = vld [vmem:[%s10510_s8 + $0x144] ss:$8 sps:$4 sm:$0xff]   ;;  %v7483_v14 = vld [vmem:[%s10510_s8 + $0x154] ss:$8 sps:$4 sm:$0xff]   ;;  %v7496_v41 = vld [vmem:[%s10510_s8 + $0x1a0] ss:$8 sps:$4 sm:$0xff]  }
 0x2d0   :  { %v3322_v12 = vpack.c.bf16 %v3314_v29, %v3310_v22  ;;  %v3324_v49 = vpack.c.bf16 %v9619_v24, %v9613_v0  ;;  %v7501_v43 = vld [vmem:[%s10510_s8 + $0x1b4] ss:$8 sps:$4 sm:$0xff]   ;;  %v7499_v57 = vld [vmem:[%s10510_s8 + $0x1b0] ss:$8 sps:$4 sm:$0xff]   ;;  %v7504_v63 = vld [vmem:[%s10510_s8 + $0x1c4] ss:$8 sps:$4 sm:$0xff]  }
 0x2d1   :  { %3778 = vmatpush1.bf16.msra.mxu0 %v7469_v21  ;;  %v3323_v9 = vpack.c.bf16 %v3315_v25, %v3311_v55  ;;  %v3325_v1 = vpack.c.bf16 %v9628_v47, %v9626_v3  ;;  %v7502_v60 = vld [vmem:[%s10510_s8 + $0x1c0] ss:$8 sps:$4 sm:$0xff]   ;;  %v7507_v39 = vld [vmem:[%s10510_s8 + $0x1d4] ss:$8 sps:$4 sm:$0xff]   ;;  %v7505_v30 = vld [vmem:[%s10510_s8 + $0x1d0] ss:$8 sps:$4 sm:$0xff]  }
 0x2d2   :  { %3779 = vmatprep.subr.bf16.mxu0 %v7474_v32  ;;  %v7510_v42 = vld [vmem:[%s10510_s8 + $0x1e4] ss:$8 sps:$4 sm:$0xff]   ;;  %v7511_v58 = vld [vmem:[%s10510_s8 + $0x1f0] ss:$8 sps:$4 sm:$0xff]   ;;  %v7558_v7 = vld [vmem:[%s10511_s10 + $0x154] ss:$12 sps:$4 sm:$0xff]  }
 0x2d3   :  { %3764 = vmatprep.mubr.bf16.mxu0 %v3323_v9  ;;  %v7556_v10 = vld [vmem:[%s10511_s10 + $0x150] ss:$12 sps:$4 sm:$0xff]   ;;  %4213 = vmatprep.subr.bf16.mxu1 %v7558_v7  ;;  %v7561_v23 = vld [vmem:[%s10511_s10 + $0x16c] ss:$12 sps:$4 sm:$0xff]   ;;  %v7559_v28 = vld [vmem:[%s10511_s10 + $0x168] ss:$12 sps:$4 sm:$0xff]  }
 0x2d4   :  { %3765 = vmatmul.mubr.bf16.gmra.mrb[36].mxu0 %v3322_v12  ;;  %4214 = vmatpush1.bf16.msra.mxu1 %v7556_v10  ;;  %v7581_v59 = vld [vmem:[%s10514_s12 + $0x8] ss:$20 sps:$4 sm:$0xff]   ;;  %v7583_v61 = vld [vmem:[%s10514_s12 + $0xc] ss:$20 sps:$4 sm:$0xff]   ;;  %v7587_v11 = vld [vmem:[%s10514_s12 + $0x30] ss:$20 sps:$4 sm:$0xff]  }
 0x2d5   :  { %3780 = vmatpush1.bf16.msra.mxu0 %v7472_v26  ;;  %3807 = vmatprep.mubr.bf16.mxu0 %v3321_v31  ;;  %v7508_v31 = vld [vmem:[%s10510_s8 + $0x1e0] ss:$8 sps:$4 sm:$0xff]   ;;  %v7595_v13 = vld [vmem:[%s10514_s12 + $0x5c] ss:$20 sps:$4 sm:$0xff]   ;;  %v7593_v18 = vld [vmem:[%s10514_s12 + $0x58] ss:$20 sps:$4 sm:$0xff]  }
 0x2d6   :  { %3781 = vmatprep.subr.bf16.mxu0 %v7477_v15  ;;  %4215 = vmatprep.subr.bf16.mxu1 %v7561_v23  ;;  %v7589_v52 = vld [vmem:[%s10514_s12 + $0x34] ss:$20 sps:$4 sm:$0xff]   ;;  %v7601_v2 = vld [vmem:[%s10514_s12 + $0x84] ss:$20 sps:$4 sm:$0xff]   ;;  %v7607_v0 = vld [vmem:[%s10514_s12 + $0xac] ss:$20 sps:$4 sm:$0xff]  }
 0x2d7   :  { %v7599_v19 = vld [vmem:[%s10514_s12 + $0x80] ss:$20 sps:$4 sm:$0xff]   ;;  %v7605_v33 = vld [vmem:[%s10514_s12 + $0xa8] ss:$20 sps:$4 sm:$0xff]   ;;  %v7611_v5 = vld [vmem:[%s10514_s12 + $0xd0] ss:$20 sps:$4 sm:$0xff]  }
 0x2d8   :  { %4216 = vmatpush1.bf16.msra.mxu1 %v7559_v28  ;;  %v7613_v16 = vld [vmem:[%s10514_s12 + $0xd4] ss:$20 sps:$4 sm:$0xff]   ;;  %v7619_v20 = vld [vmem:[%s10514_s12 + $0xfc] ss:$20 sps:$4 sm:$0xff]   ;;  %v7617_v21 = vld [vmem:[%s10514_s12 + $0xf8] ss:$20 sps:$4 sm:$0xff]  }
 0x2d9   :  { %3782 = vmatpush1.bf16.msra.mxu0 %v7475_v4  ;;  %v7625_v22 = vld [vmem:[%s10514_s12 + $0x124] ss:$20 sps:$4 sm:$0xff]   ;;  %v7623_v29 = vld [vmem:[%s10514_s12 + $0x120] ss:$20 sps:$4 sm:$0xff]   ;;  %v7629_v32 = vld [vmem:[%s10514_s12 + $0x148] ss:$20 sps:$4 sm:$0xff]  }
 0x2da   :  { %3783 = vmatprep.subr.bf16.mxu0 %v7480_v62  ;;  %v7631_v24 = vld [vmem:[%s10514_s12 + $0x14c] ss:$20 sps:$4 sm:$0xff]   ;;  %v7637_v55 = vld [vmem:[%s10514_s12 + $0x174] ss:$20 sps:$4 sm:$0xff]   ;;  %v7635_v3 = vld [vmem:[%s10514_s12 + $0x170] ss:$20 sps:$4 sm:$0xff]  }
 0x2db   :  { %v7643_v25 = vld [vmem:[%s10514_s12 + $0x19c] ss:$20 sps:$4 sm:$0xff]   ;;  %v7641_v47 = vld [vmem:[%s10514_s12 + $0x198] ss:$20 sps:$4 sm:$0xff]   ;;  %v3390_v4 = vld [vmem:[%s10515_s9] sm:$0x3] }
 0x2dc   :  { %v7649_v12 = vld [vmem:[%s10514_s12 + $0x1c4] ss:$20 sps:$4 sm:$0xff]   ;;  %v7655_v9 = vld [vmem:[%s10514_s12 + $0x1ec] ss:$20 sps:$4 sm:$0xff]   ;;  %v7653_v26 = vld [vmem:[%s10514_s12 + $0x1e8] ss:$20 sps:$4 sm:$0xff]   ;;  %v3395_v62 = vrot.slane %v3390_v4, %v8608_v51 }
 0x2dd   :  { %3784 = vmatpush1.bf16.msra.mxu0 %v7478_v27  ;;  %v7659_v15 = vld [vmem:[%s10514_s12 + $0x210] ss:$20 sps:$4 sm:$0xff]   ;;  %v3399_v27 = vrot.slane %v3390_v4, %v8616_v53  ;;  %v7616_v4 = vld [vmem:[%s10514_s12 + $0xf4] ss:$20 sps:$4 sm:$0xff]  }
 0x2de   :  { %3785 = vmatprep.subr.bf16.mxu0 %v7483_v14 }
 0x2e1   :  { %3786 = vmatpush1.bf16.msra.mxu0 %v7481_v34 }
 0x2e2   :  { %3787 = vmatprep.subr.bf16.mxu0 %v7486_v37 }
 0x2e5   :  { %3788 = vmatpush1.bf16.msra.mxu0 %v7484_v17 }
 0x2e6   :  { %3789 = vmatprep.subr.bf16.mxu0 %v7489_v45 }
 0x2e9   :  { %3790 = vmatpush1.bf16.msra.mxu0 %v7487_v46 }
 0x2ea   :  { %3791 = vmatprep.subr.bf16.mxu0 %v7492_v48 }
 0x2ed   :  { %3792 = vmatpush1.bf16.msra.mxu0 %v7490_v56 }
 0x2ee   :  { %3793 = vmatprep.subr.bf16.mxu0 %v7495_v54 }
 0x2f1   :  { %3794 = vmatpush1.bf16.msra.mxu0 %v7493_v36 }
 0x2f2   :  { %3795 = vmatprep.subr.bf16.mxu0 %v7498_v40 }
 0x2f5   :  { %3796 = vmatpush1.bf16.msra.mxu0 %v7496_v41 }
 0x2f6   :  { %3797 = vmatprep.subr.bf16.mxu0 %v7501_v43 }
 0x2f9   :  { %3798 = vmatpush1.bf16.msra.mxu0 %v7499_v57 }
 0x2fa   :  { %3799 = vmatprep.subr.bf16.mxu0 %v7504_v63 }
 0x2fd   :  { %3800 = vmatpush1.bf16.msra.mxu0 %v7502_v60  ;;  %v7563_v60 = vld [vmem:[%s10511_s10 + $0x8] ss:$12 sps:$4 sm:$0xff]  }
 0x2fe   :  { %3801 = vmatprep.subr.bf16.mxu0 %v7507_v39 }
 0x301   :  { %3802 = vmatpush1.bf16.msra.mxu0 %v7505_v30 }
 0x302   :  { %3803 = vmatprep.subr.bf16.mxu0 %v7510_v42  ;;  %v7564_v42 = vld [vmem:[%s10511_s10 + $0xe0] ss:$12 sps:$4 sm:$0xff]  }
 0x305   :  { %3804 = vmatpush1.bf16.msra.mxu0 %v7508_v31 }
 0x306   :  { %3805 = vmatprep.subr.bf16.mxu0 %v7513_v6 }
 0x309   :  { %3806 = vmatpush1.bf16.msra.mxu0 %v7511_v58 }
 0x30a   :  { %5206 = vmatprep.subr.bf16.mxu0 %v7583_v61  ;;  %v7566_v61 = vld [vmem:[%s10511_s10 + $0xf8] ss:$12 sps:$4 sm:$0xff]  }
 0x30c   :  { %3808 = vmatmul.mubr.bf16.vlgmr.msra.gmra.mrb[32].mxu0 %v3320_v8  ;;  %v7562_v8 = vld [vmem:[%s10511_s10 + $0xc8] ss:$12 sps:$4 sm:$0xff]  }
 0x30d   :  { %3817 = vmatprep.mubr.bf16.mxu0 %v3325_v1  ;;  %6811 = vmatprep.subr.bf16.mxu1 %v7562_v8  ;;  %v7661_v1 = vld [vmem:[%s10514_s12 + $0x214] ss:$20 sps:$4 sm:$0xff]   ;;  %v7565_v8 = vld [vmem:[%s10511_s10 + $0x20] ss:$12 sps:$4 sm:$0xff]  }
 0x30e   :  { %5207 = vmatpush1.bf16.msra.mxu0 %v7581_v59 }
 0x30f   :  { %5208 = vmatprep.subr.bf16.mxu0 %v7589_v52 }
 0x312   :  { %5209 = vmatpush1.bf16.msra.mxu0 %v7587_v11 }
 0x313   :  { %5210 = vmatprep.subr.bf16.mxu0 %v7595_v13 }
 0x314   :  { %3818 = vmatmul.mubr.bf16.gmra.mrb[36].mxu0 %v3324_v49  ;;  %v7647_v49 = vld [vmem:[%s10514_s12 + $0x1c0] ss:$20 sps:$4 sm:$0xff]  }
 0x316   :  { %5211 = vmatpush1.bf16.msra.mxu0 %v7593_v18  ;;  %v7567_v18 = vld [vmem:[%s10511_s10 + $0x38] ss:$12 sps:$4 sm:$0xff]  }
 0x317   :  { %5212 = vmatprep.subr.bf16.mxu0 %v7601_v2  ;;  %v7568_v2 = vld [vmem:[%s10511_s10 + $0x110] ss:$12 sps:$4 sm:$0xff]  }
 0x31a   :  { %5213 = vmatpush1.bf16.msra.mxu0 %v7599_v19  ;;  %v7569_v19 = vld [vmem:[%s10511_s10 + $0x50] ss:$12 sps:$4 sm:$0xff]  }
 0x31b   :  { %5214 = vmatprep.subr.bf16.mxu0 %v7607_v0  ;;  %v7570_v0 = vld [vmem:[%s10511_s10 + $0x128] ss:$12 sps:$4 sm:$0xff]  }
 0x31e   :  { %5215 = vmatpush1.bf16.msra.mxu0 %v7605_v33  ;;  %v7571_v33 = vld [vmem:[%s10511_s10 + $0x68] ss:$12 sps:$4 sm:$0xff]  }
 0x31f   :  { %5216 = vmatprep.subr.bf16.mxu0 %v7613_v16  ;;  %v7572_v16 = vld [vmem:[%s10511_s10 + $0x140] ss:$12 sps:$4 sm:$0xff]  }
 0x322   :  { %5217 = vmatpush1.bf16.msra.mxu0 %v7611_v5  ;;  %v7573_v5 = vld [vmem:[%s10511_s10 + $0x80] ss:$12 sps:$4 sm:$0xff]  }
 0x323   :  { %5218 = vmatprep.subr.bf16.mxu0 %v7619_v20  ;;  %v7574_v20 = vld [vmem:[%s10511_s10 + $0x158] ss:$12 sps:$4 sm:$0xff]  }
 0x326   :  { %5219 = vmatpush1.bf16.msra.mxu0 %v7617_v21  ;;  %v7575_v21 = vld [vmem:[%s10511_s10 + $0x98] ss:$12 sps:$4 sm:$0xff]  }
 0x327   :  { %5220 = vmatprep.subr.bf16.mxu0 %v7625_v22  ;;  %v7576_v22 = vld [vmem:[%s10511_s10 + $0x170] ss:$12 sps:$4 sm:$0xff]  }
 0x32a   :  { %5221 = vmatpush1.bf16.msra.mxu0 %v7623_v29  ;;  %v7577_v29 = vld [vmem:[%s10511_s10 + $0xb0] ss:$12 sps:$4 sm:$0xff]  }
 0x32b   :  { %5222 = vmatprep.subr.bf16.mxu0 %v7631_v24  ;;  %v7580_v24 = vld [vmem:[%s10514_s12 + $0x4] ss:$20 sps:$4 sm:$0xff]  }
 0x32e   :  { %5223 = vmatpush1.bf16.msra.mxu0 %v7629_v32  ;;  %v7578_v32 = vld [vmem:[%s10514_s12] ss:$20 sps:$4 sm:$0xff]  }
 0x32f   :  { %5224 = vmatprep.subr.bf16.mxu0 %v7637_v55  ;;  %v7586_v55 = vld [vmem:[%s10514_s12 + $0x2c] ss:$20 sps:$4 sm:$0xff]  }
 0x332   :  { %5225 = vmatpush1.bf16.msra.mxu0 %v7635_v3  ;;  %v7584_v3 = vld [vmem:[%s10514_s12 + $0x28] ss:$20 sps:$4 sm:$0xff]  }
 0x333   :  { %5226 = vmatprep.subr.bf16.mxu0 %v7643_v25  ;;  %v7592_v25 = vld [vmem:[%s10514_s12 + $0x54] ss:$20 sps:$4 sm:$0xff]  }
 0x336   :  { %5227 = vmatpush1.bf16.msra.mxu0 %v7641_v47  ;;  %v7590_v47 = vld [vmem:[%s10514_s12 + $0x50] ss:$20 sps:$4 sm:$0xff]  }
 0x337   :  { %5228 = vmatprep.subr.bf16.mxu0 %v7649_v12  ;;  %v7598_v12 = vld [vmem:[%s10514_s12 + $0x7c] ss:$20 sps:$4 sm:$0xff]  }
 0x33a   :  { %5229 = vmatpush1.bf16.msra.mxu0 %v7647_v49  ;;  %v7596_v49 = vld [vmem:[%s10514_s12 + $0x78] ss:$20 sps:$4 sm:$0xff]  }
 0x33b   :  { %5230 = vmatprep.subr.bf16.mxu0 %v7655_v9  ;;  %v7604_v9 = vld [vmem:[%s10514_s12 + $0xa4] ss:$20 sps:$4 sm:$0xff]  }
 0x33e   :  { %5231 = vmatpush1.bf16.msra.mxu0 %v7653_v26  ;;  %v7602_v26 = vld [vmem:[%s10514_s12 + $0xa0] ss:$20 sps:$4 sm:$0xff]  }
 0x33f   :  { %5232 = vmatprep.subr.bf16.mxu0 %v7661_v1  ;;  %v7610_v1 = vld [vmem:[%s10514_s12 + $0xcc] ss:$20 sps:$4 sm:$0xff]  }
 0x342   :  { %5233 = vmatpush1.bf16.msra.mxu0 %v7659_v15  ;;  %v7608_v15 = vld [vmem:[%s10514_s12 + $0xc8] ss:$20 sps:$4 sm:$0xff]  }
 0x3df   :  { %v3809_v14 = vpop.f32.mrb[32].mxu0 }
 0x3e0   :  { %v6913_v34 = vadd.f32 %v3809_v14, %v3395_v62  ;;  %v3811_v37 = vpop.f32.mrb[33].mxu0  ;;  %v7620_v14 = vld [vmem:[%s10514_s12 + $0x118] ss:$20 sps:$4 sm:$0xff]  }
 0x3e1   :  { %v6914_v17 = vadd.f32 %v3811_v37, %v3399_v27  ;;  %v3813_v45 = vpop.f32.mrb[34].mxu0  ;;  %v7626_v37 = vld [vmem:[%s10514_s12 + $0x140] ss:$20 sps:$4 sm:$0xff]  }
 0x3e2   :  { %v3828_v46 = vmax.f32 %v6913_v34, 0.0  ;;  %v6915_v48 = vadd.f32 %v3813_v45, %v3395_v62  ;;  %v3815_v56 = vpop.f32.mrb[35].mxu0  ;;  %v7628_v34 = vld [vmem:[%s10514_s12 + $0x144] ss:$20 sps:$4 sm:$0xff]   ;;  %v7632_v45 = vld [vmem:[%s10514_s12 + $0x168] ss:$20 sps:$4 sm:$0xff]  }
 0x3e3   :  { %v3829_v54 = vmax.f32 %v6914_v17, 0.0  ;;  %v6916_v36 = vadd.f32 %v3815_v56, %v3399_v27  ;;  %v7634_v17 = vld [vmem:[%s10514_s12 + $0x16c] ss:$20 sps:$4 sm:$0xff]   ;;  %v7646_v56 = vld [vmem:[%s10514_s12 + $0x1bc] ss:$20 sps:$4 sm:$0xff]  }
 0x3e4   :  { %3836 = vst [vmem:[%s10516_s16] sm:$0xff] %v3828_v46  ;;  %v3830_v40 = vmax.f32 %v6915_v48, 0.0  ;;  %v7638_v48 = vld [vmem:[%s10514_s12 + $0x190] ss:$20 sps:$4 sm:$0xff]  }
 0x3e5   :  { %3837 = vst [vmem:[%s10516_s16 + $0x8] sm:$0xff] %v3829_v54  ;;  %v3831_v41 = vmax.f32 %v6916_v36, 0.0  ;;  %v7652_v36 = vld [vmem:[%s10514_s12 + $0x1e4] ss:$20 sps:$4 sm:$0xff]  }
 0x3e6   :  { %3838 = vst [vmem:[%s10516_s16 + $0x10] sm:$0xff] %v3830_v40  ;;  %v3844_v43 = vpack.c.bf16 %v3830_v40, %v3828_v46  ;;  %v7640_v46 = vld [vmem:[%s10514_s12 + $0x194] ss:$20 sps:$4 sm:$0xff]  }
 0x3e7   :  { %3839 = vst [vmem:[%s10516_s16 + $0x18] sm:$0xff] %v3831_v41  ;;  %v3845_v57 = vpack.c.bf16 %v3831_v41, %v3829_v54  ;;  %v3819_v63 = vpop.f32.mrb[36].mxu0  ;;  %v7644_v54 = vld [vmem:[%s10514_s12 + $0x1b8] ss:$20 sps:$4 sm:$0xff]   ;;  %v7650_v40 = vld [vmem:[%s10514_s12 + $0x1e0] ss:$20 sps:$4 sm:$0xff]  }
 0x3e8   :  { %v6917_v39 = vadd.f32 %v3819_v63, %v3395_v62  ;;  %v3821_v30 = vpop.f32.mrb[37].mxu0  ;;  %v7658_v41 = vld [vmem:[%s10514_s12 + $0x20c] ss:$20 sps:$4 sm:$0xff]   ;;  %v7667_v63 = vld [vmem:[%s10514_s12 + $0x23c] ss:$20 sps:$4 sm:$0xff]  }
 0x3e9   :  { %v6918_v31 = vadd.f32 %v3821_v30, %v3399_v27  ;;  %v3823_v6 = vpop.f32.mrb[38].mxu0  ;;  %4217 = vmatprep.mubr.bf16.mxu1 %v3845_v57  ;;  %5234 = vmatprep.subr.bf16.mxu0 %v7667_v63  ;;  %v7670_v30 = vld [vmem:[%s10514_s12 + $0x25c] ss:$20 sps:$4 sm:$0xff]  }
 0x3ea   :  { %v3832_v58 = vmax.f32 %v6917_v39, 0.0  ;;  %v6919_v7 = vadd.f32 %v3823_v6, %v3395_v62  ;;  %v3825_v10 = vpop.f32.mrb[39].mxu0  ;;  %4218 = vmatmul.mubr.bf16.vlgmr.msra.gmra.mrb[16].mxu1 %v3844_v43  ;;  %v7614_v62 = vld [vmem:[%s10514_s12 + $0xf0] ss:$20 sps:$4 sm:$0xff]   ;;  %v7665_v39 = vld [vmem:[%s10514_s12 + $0x238] ss:$20 sps:$4 sm:$0xff]  }
 0x3eb   :  { %v3833_v23 = vmax.f32 %v6918_v31, 0.0  ;;  %v6920_v28 = vadd.f32 %v3825_v10, %v3399_v27  ;;  %6812 = vmatpush3.bf16.msra.mxu1 %v7563_v60  ;;  %v7622_v27 = vld [vmem:[%s10514_s12 + $0x11c] ss:$20 sps:$4 sm:$0xff]   ;;  %5235 = vmatpush1.bf16.msra.mxu0 %v7665_v39  ;;  %v7668_v31 = vld [vmem:[%s10514_s12 + $0x258] ss:$20 sps:$4 sm:$0xff]  }
 0x3ec   :  { %3840 = vst [vmem:[%s10516_s16 + $0x20] sm:$0xff] %v3832_v58  ;;  %v3834_v59 = vmax.f32 %v6919_v7, 0.0  ;;  %6813 = vmatprep.subr.bf16.mxu1 %v7564_v42  ;;  %v7662_v60 = vld [vmem:[%s10514_s12 + $0x230] ss:$20 sps:$4 sm:$0xff]   ;;  %v7671_v6 = vld [vmem:[%s10514_s12 + $0x260] ss:$20 sps:$4 sm:$0xff]  }
 0x3ed   :  { %3841 = vst [vmem:[%s10516_s16 + $0x28] sm:$0xff] %v3833_v23  ;;  %v3835_v11 = vmax.f32 %v6920_v28, 0.0  ;;  %v7673_v42 = vld [vmem:[%s10514_s12 + $0x264] ss:$20 sps:$4 sm:$0xff]   ;;  %v7679_v7 = vld [vmem:[%s10514_s12 + $0x28c] ss:$20 sps:$4 sm:$0xff]  }
 0x3ee   :  { %3842 = vst [vmem:[%s10516_s16 + $0x30] sm:$0xff] %v3834_v59  ;;  %v3846_v52 = vpack.c.bf16 %v3834_v59, %v3832_v58  ;;  %5236 = vmatprep.subr.bf16.mxu0 %v7673_v42  ;;  %v7676_v58 = vld [vmem:[%s10514_s12 + $0x284] ss:$20 sps:$4 sm:$0xff]   ;;  %v10011_v10 = vld [vmem:[%s10518_s11] sm:$0x7] }
 0x3ef   :  { %3843 = vst [vmem:[%s10516_s16 + $0x38] sm:$0xff] %v3835_v11  ;;  %v3847_v13 = vpack.c.bf16 %v3835_v11, %v3833_v23  ;;  %6814 = vmatpush3.bf16.msra.mxu1 %v7565_v8  ;;  %5237 = vmatpush1.bf16.msra.mxu0 %v7671_v6  ;;  %v3917_v23 = vrot.slane %v10011_v10, %v8608_v51  ;;  %v7701_v63 = vld [vmem:[%s10514_s12 + $0x328] ss:$20 sps:$4 sm:$0xff]   ;;  %v7707_v42 = vld [vmem:[%s10514_s12 + $0x350] ss:$20 sps:$4 sm:$0xff]  }
 0x3f0   :  { %6815 = vmatprep.subr.bf16.mxu1 %v7566_v61  ;;  %5259 = vmatprep.subr.bf16.mxu0 %v7679_v7  ;;  %v3921_v28 = vrot.slane %v10011_v10, %v8616_v53  ;;  %v7709_v39 = vld [vmem:[%s10514_s12 + $0x354] ss:$20 sps:$4 sm:$0xff]   ;;  %v7715_v6 = vld [vmem:[%s10514_s12 + $0x37c] ss:$20 sps:$4 sm:$0xff]   ;;  %v3925_v7 = vrot.slane %v10011_v10, %v8777_v35 }
 0x3f1   :  { %4227 = vmatprep.mubr.bf16.mxu1 %v3847_v13 }
 0x3f2   :  { %4228 = vmatmul.mubr.bf16.gmra.mrb[20].mxu1 %v3846_v52 }
 0x3f3   :  { %6816 = vmatpush3.bf16.msra.mxu1 %v7567_v18  ;;  %4270 = vmatprep.mubr.bf16.mxu1 %v3845_v57  ;;  %v7664_v57 = vld [vmem:[%s10514_s12 + $0x234] ss:$20 sps:$4 sm:$0xff]  }
 0x3f4   :  { %6817 = vmatprep.subr.bf16.mxu1 %v7568_v2 }
 0x3f7   :  { %6818 = vmatpush3.bf16.msra.mxu1 %v7569_v19 }
 0x3f8   :  { %6819 = vmatprep.subr.bf16.mxu1 %v7570_v0 }
 0x3fb   :  { %6820 = vmatpush3.bf16.msra.mxu1 %v7571_v33 }
 0x3fc   :  { %6821 = vmatprep.subr.bf16.mxu1 %v7572_v16 }
 0x3ff   :  { %6822 = vmatpush3.bf16.msra.mxu1 %v7573_v5 }
 0x400   :  { %6823 = vmatprep.subr.bf16.mxu1 %v7574_v20 }
 0x403   :  { %6824 = vmatpush3.bf16.msra.mxu1 %v7575_v21 }
 0x404   :  { %6825 = vmatprep.subr.bf16.mxu1 %v7576_v22  ;;  %v7674_v22 = vld [vmem:[%s10514_s12 + $0x280] ss:$20 sps:$4 sm:$0xff]  }
 0x407   :  { %6826 = vmatpush3.bf16.msra.mxu1 %v7577_v29  ;;  %v7677_v29 = vld [vmem:[%s10514_s12 + $0x288] ss:$20 sps:$4 sm:$0xff]  }
 0x408   :  { %5100 = vmatprep.subr.bf16.mxu1 %v7580_v24 }
 0x40a   :  { %4271 = vmatmul.mubr.bf16.vlgmr.msra.gmra.mrb[24].mxu1 %v3844_v43  ;;  %v7656_v43 = vld [vmem:[%s10514_s12 + $0x208] ss:$20 sps:$4 sm:$0xff]  }
 0x40b   :  { %4278 = vmatprep.mubr.bf16.mxu1 %v3847_v13  ;;  %5101 = vmatpush1.bf16.msra.mxu1 %v7578_v32 }
 0x40c   :  { %5102 = vmatprep.subr.bf16.mxu1 %v7586_v55  ;;  %v7682_v55 = vld [vmem:[%s10514_s12 + $0x2ac] ss:$20 sps:$4 sm:$0xff]  }
 0x40f   :  { %5103 = vmatpush1.bf16.msra.mxu1 %v7584_v3  ;;  %v7685_v3 = vld [vmem:[%s10514_s12 + $0x2b4] ss:$20 sps:$4 sm:$0xff]  }
 0x410   :  { %5104 = vmatprep.subr.bf16.mxu1 %v7592_v25 }
 0x412   :  { %4279 = vmatmul.mubr.bf16.gmra.mrb[28].mxu1 %v3846_v52 }
 0x413   :  { %5105 = vmatpush1.bf16.msra.mxu1 %v7590_v47 }
 0x414   :  { %5106 = vmatprep.subr.bf16.mxu1 %v7598_v12 }
 0x417   :  { %5107 = vmatpush1.bf16.msra.mxu1 %v7596_v49 }
 0x418   :  { %5108 = vmatprep.subr.bf16.mxu1 %v7604_v9 }
 0x41b   :  { %5109 = vmatpush1.bf16.msra.mxu1 %v7602_v26  ;;  %v7680_v26 = vld [vmem:[%s10514_s12 + $0x2a8] ss:$20 sps:$4 sm:$0xff]  }
 0x41c   :  { %5110 = vmatprep.subr.bf16.mxu1 %v7610_v1  ;;  %v7683_v1 = vld [vmem:[%s10514_s12 + $0x2b0] ss:$20 sps:$4 sm:$0xff]  }
 0x41f   :  { %5111 = vmatpush1.bf16.msra.mxu1 %v7608_v15 }
 0x420   :  { %5112 = vmatprep.subr.bf16.mxu1 %v7616_v4 }
 0x423   :  { %5113 = vmatpush1.bf16.msra.mxu1 %v7614_v62  ;;  %v7688_v62 = vld [vmem:[%s10514_s12 + $0x2d4] ss:$20 sps:$4 sm:$0xff]  }
 0x424   :  { %5114 = vmatprep.subr.bf16.mxu1 %v7622_v27  ;;  %v7691_v27 = vld [vmem:[%s10514_s12 + $0x2dc] ss:$20 sps:$4 sm:$0xff]  }
 0x427   :  { %5115 = vmatpush1.bf16.msra.mxu1 %v7620_v14 }
 0x428   :  { %5116 = vmatprep.subr.bf16.mxu1 %v7628_v34 }
 0x42b   :  { %5117 = vmatpush1.bf16.msra.mxu1 %v7626_v37 }
 0x42c   :  { %5118 = vmatprep.subr.bf16.mxu1 %v7634_v17 }
 0x42f   :  { %5119 = vmatpush1.bf16.msra.mxu1 %v7632_v45  ;;  %v7686_v45 = vld [vmem:[%s10514_s12 + $0x2d0] ss:$20 sps:$4 sm:$0xff]  }
 0x430   :  { %5120 = vmatprep.subr.bf16.mxu1 %v7640_v46  ;;  %v7689_v46 = vld [vmem:[%s10514_s12 + $0x2d8] ss:$20 sps:$4 sm:$0xff]  }
 0x433   :  { %5121 = vmatpush1.bf16.msra.mxu1 %v7638_v48  ;;  %v7694_v48 = vld [vmem:[%s10514_s12 + $0x2fc] ss:$20 sps:$4 sm:$0xff]  }
 0x434   :  { %5122 = vmatprep.subr.bf16.mxu1 %v7646_v56  ;;  %v7697_v56 = vld [vmem:[%s10514_s12 + $0x304] ss:$20 sps:$4 sm:$0xff]  }
 0x437   :  { %5123 = vmatpush1.bf16.msra.mxu1 %v7644_v54  ;;  %v7692_v54 = vld [vmem:[%s10514_s12 + $0x2f8] ss:$20 sps:$4 sm:$0xff]  }
 0x438   :  { %5124 = vmatprep.subr.bf16.mxu1 %v7652_v36  ;;  %v7695_v36 = vld [vmem:[%s10514_s12 + $0x300] ss:$20 sps:$4 sm:$0xff]  }
 0x43b   :  { %5125 = vmatpush1.bf16.msra.mxu1 %v7650_v40  ;;  %v7700_v40 = vld [vmem:[%s10514_s12 + $0x324] ss:$20 sps:$4 sm:$0xff]  }
 0x43c   :  { %5126 = vmatprep.subr.bf16.mxu1 %v7658_v41  ;;  %v7703_v41 = vld [vmem:[%s10514_s12 + $0x32c] ss:$20 sps:$4 sm:$0xff]  }
 0x43f   :  { %5127 = vmatpush1.bf16.msra.mxu1 %v7656_v43  ;;  %v7866_v43 = vmov 0  }
 0x440   :  { %5128 = vmatprep.subr.bf16.mxu1 %v7664_v57  ;;  %v7698_v57 = vld [vmem:[%s10514_s12 + $0x320] ss:$20 sps:$4 sm:$0xff]  }
 0x443   :  { %5129 = vmatpush1.bf16.msra.mxu1 %v7662_v60  ;;  %v7706_v60 = vld [vmem:[%s10514_s12 + $0x34c] ss:$20 sps:$4 sm:$0xff]  }
 0x444   :  { %5130 = vmatprep.subr.bf16.mxu1 %v7670_v30  ;;  %v7704_v30 = vld [vmem:[%s10514_s12 + $0x348] ss:$20 sps:$4 sm:$0xff]  }
 0x447   :  { %5131 = vmatpush1.bf16.msra.mxu1 %v7668_v31  ;;  %v7712_v31 = vld [vmem:[%s10514_s12 + $0x374] ss:$20 sps:$4 sm:$0xff]  }
 0x448   :  { %5153 = vmatprep.subr.bf16.mxu1 %v7676_v58 }
 0x4bd   :  { %v4219_v8 = vpop.f32.mrb[16].mxu1 }
 0x4be   :  { %v4220_v59 = vadd.f32 %v4219_v8, %v3917_v23  ;;  %v4221_v61 = vpop.f32.mrb[17].mxu1 }
 0x4bf   :  { %v4222_v11 = vadd.f32 %v4221_v61, %v3921_v28  ;;  %v4223_v52 = vpop.f32.mrb[18].mxu1  ;;  %v7721_v61 = vld [vmem:[%s10514_s12 + $0x3a4] ss:$20 sps:$4 sm:$0xff]  }
 0x4c0   :  { %v4224_v13 = vadd.f32 %v4223_v52, %v3917_v23  ;;  %v4225_v18 = vpop.f32.mrb[19].mxu1  ;;  %v4287_v19 = vmax.f32 %v4220_v59, 0.0  ;;  %v7718_v59 = vld [vmem:[%s10514_s12 + $0x39c] ss:$20 sps:$4 sm:$0xff]  }
 0x4c1   :  { %v4226_v2 = vadd.f32 %v4225_v18, %v3921_v28  ;;  %v4288_v33 = vmax.f32 %v4222_v11, 0.0 }
 0x4c2   :  { %v4290_v0 = vmax.f32 %v4224_v13, 0.0 }
 0x4c3   :  { %v4291_v16 = vmax.f32 %v4226_v2, 0.0  ;;  %v7716_v2 = vld [vmem:[%s10514_s12 + $0x398] ss:$20 sps:$4 sm:$0xff]  }
 0x4c4   :  { %v10017_v5 = vpack.c.bf16 %v4290_v0, %v4287_v19  ;;  %v7719_v19 = vld [vmem:[%s10514_s12 + $0x3a0] ss:$20 sps:$4 sm:$0xff]   ;;  %v7722_v0 = vld [vmem:[%s10514_s12 + $0x150] ss:$20 sps:$4 sm:$0xff]  }
 0x4c5   :  { %v10019_v20 = vpack.c.bf16 %v4291_v16, %v4288_v33  ;;  %v4229_v21 = vpop.f32.mrb[20].mxu1  ;;  %v7723_v33 = vld [vmem:[%s10514_s12 + $0x290] ss:$20 sps:$4 sm:$0xff]  }
 0x4c6   :  { %v4230_v24 = vadd.f32 %v4229_v21, %v3917_v23  ;;  %v4231_v32 = vpop.f32.mrb[21].mxu1 }
 0x4c7   :  { %v4232_v25 = vadd.f32 %v4231_v32, %v3921_v28  ;;  %v4233_v47 = vpop.f32.mrb[22].mxu1  ;;  %5132 = vmatprep.mubr.bf16.mxu1 %v10019_v20  ;;  %5238 = vmatprep.mubr.bf16.mxu0 %v10019_v20  ;;  %v7724_v32 = vld [vmem:[%s10514_s12 + $0x10] ss:$20 sps:$4 sm:$0xff]  }
 0x4c8   :  { %v4234_v12 = vadd.f32 %v4233_v47, %v3917_v23  ;;  %v4235_v49 = vpop.f32.mrb[23].mxu1  ;;  %5133 = vmatmul.mubr.bf16.vlgmr.msra.gmra.mrb[32].mxu1 %v10017_v5  ;;  %5239 = vmatmul.mubr.bf16.vlgmr.msra.gmra.mrb[40].mxu0 %v10017_v5  ;;  %v4293_v15 = vmax.f32 %v4230_v24, 0.0  ;;  %v7710_v23 = vld [vmem:[%s10514_s12 + $0x370] ss:$20 sps:$4 sm:$0xff]   ;;  %v7725_v47 = vld [vmem:[%s10514_s12 + $0x178] ss:$20 sps:$4 sm:$0xff]  }
 0x4c9   :  { %v4236_v9 = vadd.f32 %v4235_v49, %v3921_v28  ;;  %5154 = vmatpush1.bf16.msra.mxu1 %v7674_v22  ;;  %5260 = vmatpush1.bf16.msra.mxu0 %v7677_v29  ;;  %v4294_v14 = vmax.f32 %v4232_v25, 0.0  ;;  %v7713_v28 = vld [vmem:[%s10514_s12 + $0x378] ss:$20 sps:$4 sm:$0xff]  }
 0x4ca   :  { %v4296_v4 = vmax.f32 %v4234_v12, 0.0  ;;  %5155 = vmatprep.subr.bf16.mxu1 %v7682_v55  ;;  %5261 = vmatprep.subr.bf16.mxu0 %v7685_v3  ;;  %v7726_v12 = vld [vmem:[%s10514_s12 + $0x2b8] ss:$20 sps:$4 sm:$0xff]  }
 0x4cb   :  { %v4297_v34 = vmax.f32 %v4236_v9, 0.0 }
 0x4cc   :  { %v10049_v37 = vpack.c.bf16 %v4296_v4, %v4293_v15  ;;  %v7728_v4 = vld [vmem:[%s10514_s12 + $0x1a0] ss:$20 sps:$4 sm:$0xff]  }
 0x4cd   :  { %v10051_v17 = vpack.c.bf16 %v4297_v34, %v4294_v14  ;;  %5156 = vmatpush1.bf16.msra.mxu1 %v7680_v26  ;;  %5262 = vmatpush1.bf16.msra.mxu0 %v7683_v1  ;;  %v7727_v1 = vld [vmem:[%s10514_s12 + $0x38] ss:$20 sps:$4 sm:$0xff]   ;;  %v7730_v34 = vld [vmem:[%s10514_s12 + $0x60] ss:$20 sps:$4 sm:$0xff]  }
 0x4ce   :  { %5157 = vmatprep.subr.bf16.mxu1 %v7688_v62  ;;  %5263 = vmatprep.subr.bf16.mxu0 %v7691_v27  ;;  %v7729_v62 = vld [vmem:[%s10514_s12 + $0x2e0] ss:$20 sps:$4 sm:$0xff]  }
 0x4cf   :  { %5142 = vmatprep.mubr.bf16.mxu1 %v10051_v17  ;;  %5248 = vmatprep.mubr.bf16.mxu0 %v10051_v17 }
 0x4d0   :  { %5143 = vmatmul.mubr.bf16.gmra.mrb[36].mxu1 %v10049_v37  ;;  %5249 = vmatmul.mubr.bf16.gmra.mrb[44].mxu0 %v10049_v37 }
 0x4d1   :  { %5158 = vmatpush1.bf16.msra.mxu1 %v7686_v45  ;;  %5264 = vmatpush1.bf16.msra.mxu0 %v7689_v46  ;;  %v7731_v46 = vld [vmem:[%s10514_s12 + $0x1c8] ss:$20 sps:$4 sm:$0xff]  }
 0x4d2   :  { %5159 = vmatprep.subr.bf16.mxu1 %v7694_v48  ;;  %5265 = vmatprep.subr.bf16.mxu0 %v7697_v56  ;;  %v7732_v48 = vld [vmem:[%s10514_s12 + $0x308] ss:$20 sps:$4 sm:$0xff]  }
 0x4d3   :  { %5185 = vmatprep.mubr.bf16.mxu1 %v7866_v43  ;;  %5291 = vmatprep.mubr.bf16.mxu0 %v7866_v43  ;;  %v7733_v56 = vld [vmem:[%s10514_s12 + $0x88] ss:$20 sps:$4 sm:$0xff]  }
 0x4d5   :  { %5160 = vmatpush1.bf16.msra.mxu1 %v7692_v54  ;;  %5266 = vmatpush1.bf16.msra.mxu0 %v7695_v36  ;;  %v7734_v54 = vld [vmem:[%s10514_s12 + $0x1f0] ss:$20 sps:$4 sm:$0xff]  }
 0x4d6   :  { %5161 = vmatprep.subr.bf16.mxu1 %v7700_v40  ;;  %5267 = vmatprep.subr.bf16.mxu0 %v7703_v41  ;;  %v7735_v36 = vld [vmem:[%s10514_s12 + $0x330] ss:$20 sps:$4 sm:$0xff]   ;;  %v7738_v41 = vld [vmem:[%s10514_s12 + $0x358] ss:$20 sps:$4 sm:$0xff]  }
 0x4d7   :  { %v7736_v40 = vld [vmem:[%s10514_s12 + $0xb0] ss:$20 sps:$4 sm:$0xff]  }
 0x4d9   :  { %5162 = vmatpush1.bf16.msra.mxu1 %v7698_v57  ;;  %5268 = vmatpush1.bf16.msra.mxu0 %v7701_v63  ;;  %v7739_v57 = vld [vmem:[%s10514_s12 + $0xd8] ss:$20 sps:$4 sm:$0xff]   ;;  %v7740_v63 = vld [vmem:[%s10514_s12 + $0x240] ss:$20 sps:$4 sm:$0xff]  }
 0x4da   :  { %5163 = vmatprep.subr.bf16.mxu1 %v7706_v60  ;;  %5269 = vmatprep.subr.bf16.mxu0 %v7709_v39  ;;  %v7741_v60 = vld [vmem:[%s10514_s12 + $0x380] ss:$20 sps:$4 sm:$0xff]  }
 0x4db   :  { %v7742_v39 = vld [vmem:[%s10514_s12 + $0x100] ss:$20 sps:$4 sm:$0xff]  }
 0x4dd   :  { %v6827_v58 = vpop.f32.mrb[24].mxu1  ;;  %5164 = vmatpush1.bf16.msra.mxu1 %v7704_v30  ;;  %5270 = vmatpush1.bf16.msra.mxu0 %v7707_v42  ;;  %v7743_v30 = vld [vmem:[%s10514_s12 + $0x268] ss:$20 sps:$4 sm:$0xff]  }
 0x4de   :  { %v6828_v8 = vpop.f32.mrb[25].mxu1  ;;  %5165 = vmatprep.subr.bf16.mxu1 %v7712_v31  ;;  %5271 = vmatprep.subr.bf16.mxu0 %v7715_v6  ;;  %v7744_v42 = vld [vmem:[%s10514_s12 + $0x3a8] ss:$20 sps:$4 sm:$0xff]   ;;  %v7748_v6 = vld [vmem:[%s10517_s14 + $0x4] ss:$8 sps:$4 sm:$0xff]  }
 0x4df   :  { %v6829_v10 = vadd.f32 %v6828_v8, %v6827_v58  ;;  %v6830_v11 = vpop.f32.mrb[26].mxu1  ;;  %v7745_v31 = vld [vmem:[%s10514_s12 + $0x128] ss:$20 sps:$4 sm:$0xff]  }
 0x4e0   :  { %v6831_v52 = vpop.f32.mrb[27].mxu1  ;;  %v7746_v58 = vld [vmem:[%s10517_s14] ss:$8 sps:$4 sm:$0xff]  }
 0x4e1   :  { %v4273_v13 = vadd.f32 %v6829_v10, %v3925_v7  ;;  %v6832_v18 = vadd.f32 %v6831_v52, %v6830_v11  ;;  %5166 = vmatpush1.bf16.msra.mxu1 %v7710_v23  ;;  %5272 = vmatpush1.bf16.msra.mxu0 %v7713_v28  ;;  %v7749_v23 = vld [vmem:[%s10517_s14 + $0x10] ss:$8 sps:$4 sm:$0xff]   ;;  %v7754_v28 = vld [vmem:[%s10517_s14 + $0x24] ss:$8 sps:$4 sm:$0xff]   ;;  %v7752_v8 = vld [vmem:[%s10517_s14 + $0x20] ss:$8 sps:$4 sm:$0xff]  }
 0x4e2   :  { %5167 = vmatprep.subr.bf16.mxu1 %v7718_v59  ;;  %5273 = vmatprep.subr.bf16.mxu0 %v7721_v61  ;;  %v7760_v59 = vld [vmem:[%s10517_s14 + $0x44] ss:$8 sps:$4 sm:$0xff]   ;;  %v7758_v61 = vld [vmem:[%s10517_s14 + $0x40] ss:$8 sps:$4 sm:$0xff]   ;;  %v7761_v10 = vld [vmem:[%s10517_s14 + $0x50] ss:$8 sps:$4 sm:$0xff]  }
 0x4e3   :  { %v4276_v16 = vadd.f32 %v6832_v18, %v3925_v7  ;;  %v4289_v21 = vmax.f32 %v4273_v13, 0.0  ;;  %v7766_v11 = vld [vmem:[%s10517_s14 + $0x64] ss:$8 sps:$4 sm:$0xff]   ;;  %v7764_v52 = vld [vmem:[%s10517_s14 + $0x60] ss:$8 sps:$4 sm:$0xff]  }
 0x4e4   :  { %v7769_v13 = vld [vmem:[%s10517_s14 + $0x74] ss:$8 sps:$4 sm:$0xff]   ;;  %v7767_v18 = vld [vmem:[%s10517_s14 + $0x70] ss:$8 sps:$4 sm:$0xff]  }
 0x4e5   :  { %v4292_v22 = vmax.f32 %v4276_v16, 0.0  ;;  %v6833_v29 = vpop.f32.mrb[28].mxu1  ;;  %5168 = vmatpush1.bf16.msra.mxu1 %v7716_v2  ;;  %5274 = vmatpush1.bf16.msra.mxu0 %v7719_v19  ;;  %v7772_v2 = vld [vmem:[%s10517_s14 + $0x84] ss:$8 sps:$4 sm:$0xff]   ;;  %v7770_v19 = vld [vmem:[%s10517_s14 + $0x80] ss:$8 sps:$4 sm:$0xff]  }
 0x4e6   :  { %v6834_v24 = vpop.f32.mrb[29].mxu1  ;;  %6839 = vmatprep.subr.bf16.mxu1 %v7722_v0  ;;  %6877 = vmatprep.subr.bf16.mxu0 %v7723_v33  ;;  %v7775_v0 = vld [vmem:[%s10517_s14 + $0x94] ss:$8 sps:$4 sm:$0xff]   ;;  %v7778_v16 = vld [vmem:[%s10517_s14 + $0xa4] ss:$8 sps:$4 sm:$0xff]  }
 0x4e7   :  { %v4301_v55 = vpack.c.bf16 %v4292_v22, %v4289_v21  ;;  %v6835_v3 = vadd.f32 %v6834_v24, %v6833_v29  ;;  %v6836_v25 = vpop.f32.mrb[30].mxu1  ;;  %v7776_v21 = vld [vmem:[%s10517_s14 + $0xa0] ss:$8 sps:$4 sm:$0xff]   ;;  %v7781_v22 = vld [vmem:[%s10517_s14 + $0xb4] ss:$8 sps:$4 sm:$0xff]  }
 0x4e8   :  { %v6837_v49 = vpop.f32.mrb[31].mxu1  ;;  %v7779_v29 = vld [vmem:[%s10517_s14 + $0xb0] ss:$8 sps:$4 sm:$0xff]   ;;  %v7784_v24 = vld [vmem:[%s10517_s14 + $0xc4] ss:$8 sps:$4 sm:$0xff]  }
 0x4e9   :  { %v4281_v9 = vadd.f32 %v6835_v3, %v3925_v7  ;;  %v6838_v26 = vadd.f32 %v6837_v49, %v6836_v25  ;;  %5186 = vmatmul.mubr.bf16.vlgmr.msra.gmra.mrb[32].mxu1 %v4301_v55  ;;  %5292 = vmatmul.mubr.bf16.vlgmr.msra.gmra.mrb[40].mxu0 %v4301_v55  ;;  %v7785_v3 = vld [vmem:[%s10517_s14 + $0xd0] ss:$8 sps:$4 sm:$0xff]   ;;  %v7790_v25 = vld [vmem:[%s10517_s14 + $0xe4] ss:$8 sps:$4 sm:$0xff]  }
 0x4ea   :  { %6840 = vmatpush3.bf16.msra.mxu1 %v7724_v32  ;;  %6878 = vmatpush3.bf16.msra.mxu0 %v7723_v33  ;;  %v7773_v33 = vld [vmem:[%s10517_s14 + $0x90] ss:$8 sps:$4 sm:$0xff]   ;;  %v7782_v32 = vld [vmem:[%s10517_s14 + $0xc0] ss:$8 sps:$4 sm:$0xff]  }
 0x4eb   :  { %v4284_v15 = vadd.f32 %v6838_v26, %v3925_v7  ;;  %6841 = vmatprep.subr.bf16.mxu1 %v7725_v47  ;;  %6879 = vmatprep.subr.bf16.mxu0 %v7726_v12  ;;  %v4295_v27 = vmax.f32 %v4281_v9, 0.0  ;;  %v7751_v7 = vld [vmem:[%s10517_s14 + $0x14] ss:$8 sps:$4 sm:$0xff]   ;;  %v7788_v47 = vld [vmem:[%s10517_s14 + $0xe0] ss:$8 sps:$4 sm:$0xff]  }
 0x4ec   :  { %5195 = vmatprep.mubr.bf16.mxu1 %v7866_v43  ;;  %5301 = vmatprep.mubr.bf16.mxu0 %v7866_v43  ;;  %v7791_v49 = vld [vmem:[%s10517_s14 + $0xf0] ss:$8 sps:$4 sm:$0xff]   ;;  %v7796_v9 = vld [vmem:[%s10517_s14 + $0x104] ss:$8 sps:$4 sm:$0xff]  }
 0x4ed   :  { %v4298_v14 = vmax.f32 %v4284_v15, 0.0  ;;  %v10307_v26 = vld [vmem:[%s10519_s13] sm:$0x1f] }
 0x4ee   :  { %6842 = vmatpush3.bf16.msra.mxu1 %v7727_v1  ;;  %6880 = vmatpush3.bf16.msra.mxu0 %v7726_v12  ;;  %v7793_v12 = vld [vmem:[%s10517_s14 + $0xf4] ss:$8 sps:$4 sm:$0xff]   ;;  %v4454_v1 = vrot.slane %v10307_v26, %v8608_v51  ;;  %v4462_v15 = vrot.slane %v10307_v26, %v8777_v35 }
 0x4ef   :  { %6843 = vmatprep.subr.bf16.mxu1 %v7728_v4  ;;  %6881 = vmatprep.subr.bf16.mxu0 %v7729_v62  ;;  %v4304_v45 = vpack.c.bf16 %v4298_v14, %v4295_v27  ;;  %v4458_v4 = vrot.slane %v10307_v26, %v8616_v53 }
 0x4f1   :  { %5196 = vmatmul.mubr.bf16.gmra.mrb[36].mxu1 %v4304_v45  ;;  %5302 = vmatmul.mubr.bf16.gmra.mrb[44].mxu0 %v4304_v45 }
 0x4f2   :  { %6844 = vmatpush3.bf16.msra.mxu1 %v7730_v34  ;;  %6882 = vmatpush3.bf16.msra.mxu0 %v7729_v62  ;;  %v4466_v62 = vrot.slane %v10307_v26, %v8786_v38 }
 0x4f3   :  { %5344 = vmatprep.mubr.bf16.mxu1 %v10019_v20  ;;  %6893 = vmatprep.mubr.bf16.mxu0 %v4301_v55  ;;  %v7737_v20 = vld [vmem:[%s10514_s12 + $0x218] ss:$20 sps:$4 sm:$0xff]   ;;  %v7787_v55 = vld [vmem:[%s10517_s14 + $0xd4] ss:$8 sps:$4 sm:$0xff]  }
 0x4f4   :  { %6845 = vmatprep.subr.bf16.mxu1 %v7731_v46  ;;  %6883 = vmatprep.subr.bf16.mxu0 %v7732_v48 }
 0x4f6   :  { %6846 = vmatpush3.bf16.msra.mxu1 %v7733_v56  ;;  %6884 = vmatpush3.bf16.msra.mxu0 %v7732_v48 }
 0x4f7   :  { %6847 = vmatprep.subr.bf16.mxu1 %v7734_v54  ;;  %6885 = vmatprep.subr.bf16.mxu0 %v7735_v36 }
 0x4fa   :  { %6848 = vmatpush3.bf16.msra.mxu1 %v7736_v40  ;;  %6886 = vmatpush3.bf16.msra.mxu0 %v7735_v36 }
 0x4fb   :  { %6849 = vmatprep.subr.bf16.mxu1 %v7737_v20  ;;  %6887 = vmatprep.subr.bf16.mxu0 %v7738_v41 }
 0x4fe   :  { %6850 = vmatpush3.bf16.msra.mxu1 %v7739_v57  ;;  %6888 = vmatpush3.bf16.msra.mxu0 %v7738_v41 }
 0x4ff   :  { %6851 = vmatprep.subr.bf16.mxu1 %v7740_v63  ;;  %6889 = vmatprep.subr.bf16.mxu0 %v7741_v60 }
 0x502   :  { %6852 = vmatpush3.bf16.msra.mxu1 %v7742_v39  ;;  %6890 = vmatpush3.bf16.msra.mxu0 %v7741_v60 }
 0x503   :  { %6853 = vmatprep.subr.bf16.mxu1 %v7743_v30  ;;  %6891 = vmatprep.subr.bf16.mxu0 %v7744_v42 }
 0x506   :  { %6854 = vmatpush3.bf16.msra.mxu1 %v7745_v31  ;;  %6892 = vmatpush3.bf16.msra.mxu0 %v7744_v42 }
 0x507   :  { %5932 = vmatprep.subr.bf16.mxu1 %v7748_v6 }
 0x509   :  { %5345 = vmatmul.mubr.bf16.vlgmr.msra.gmra.mrb[40].mxu1 %v10017_v5  ;;  %6894 = vmatmul.mubr.bf16.vlgmr.msra.gmra.mrb[48].mxu0 %v4304_v45  ;;  %v7757_v5 = vld [vmem:[%s10517_s14 + $0x34] ss:$8 sps:$4 sm:$0xff]  }
 0x50a   :  { %5352 = vmatprep.mubr.bf16.mxu1 %v10051_v17  ;;  %5933 = vmatpush1.bf16.msra.mxu1 %v7746_v58  ;;  %v7755_v17 = vld [vmem:[%s10517_s14 + $0x30] ss:$8 sps:$4 sm:$0xff]  }
 0x50b   :  { %5934 = vmatprep.subr.bf16.mxu1 %v7751_v7 }
 0x50e   :  { %5935 = vmatpush1.bf16.msra.mxu1 %v7749_v23 }
 0x50f   :  { %5936 = vmatprep.subr.bf16.mxu1 %v7754_v28 }
 0x511   :  { %5353 = vmatmul.mubr.bf16.gmra.mrb[44].mxu1 %v10049_v37  ;;  %v7763_v37 = vld [vmem:[%s10517_s14 + $0x54] ss:$8 sps:$4 sm:$0xff]  }
 0x512   :  { %5937 = vmatpush1.bf16.msra.mxu1 %v7752_v8 }
 0x513   :  { %5938 = vmatprep.subr.bf16.mxu1 %v7757_v5 }
 0x516   :  { %5939 = vmatpush1.bf16.msra.mxu1 %v7755_v17 }
 0x517   :  { %5940 = vmatprep.subr.bf16.mxu1 %v7760_v59 }
 0x51a   :  { %5941 = vmatpush1.bf16.msra.mxu1 %v7758_v61  ;;  %v7794_v61 = vld [vmem:[%s10517_s14 + $0x100] ss:$8 sps:$4 sm:$0xff]  }
 0x51b   :  { %5942 = vmatprep.subr.bf16.mxu1 %v7763_v37 }
 0x51e   :  { %5943 = vmatpush1.bf16.msra.mxu1 %v7761_v10 }
 0x51f   :  { %5944 = vmatprep.subr.bf16.mxu1 %v7766_v11 }
 0x522   :  { %5945 = vmatpush1.bf16.msra.mxu1 %v7764_v52 }
 0x523   :  { %5946 = vmatprep.subr.bf16.mxu1 %v7769_v13  ;;  %v7799_v13 = vld [vmem:[%s10517_s14 + $0x114] ss:$8 sps:$4 sm:$0xff]  }
 0x526   :  { %5947 = vmatpush1.bf16.msra.mxu1 %v7767_v18 }
 0x527   :  { %5948 = vmatprep.subr.bf16.mxu1 %v7772_v2 }
 0x52a   :  { %5949 = vmatpush1.bf16.msra.mxu1 %v7770_v19 }
 0x52b   :  { %5950 = vmatprep.subr.bf16.mxu1 %v7775_v0 }
 0x52e   :  { %5951 = vmatpush1.bf16.msra.mxu1 %v7773_v33 }
 0x52f   :  { %5952 = vmatprep.subr.bf16.mxu1 %v7778_v16 }
 0x532   :  { %5953 = vmatpush1.bf16.msra.mxu1 %v7776_v21 }
 0x533   :  { %5954 = vmatprep.subr.bf16.mxu1 %v7781_v22 }
 0x536   :  { %5955 = vmatpush1.bf16.msra.mxu1 %v7779_v29 }
 0x537   :  { %5956 = vmatprep.subr.bf16.mxu1 %v7784_v24 }
 0x53a   :  { %5957 = vmatpush1.bf16.msra.mxu1 %v7782_v32  ;;  %v7797_v32 = vld [vmem:[%s10517_s14 + $0x110] ss:$8 sps:$4 sm:$0xff]  }
 0x53b   :  { %5958 = vmatprep.subr.bf16.mxu1 %v7787_v55 }
 0x53e   :  { %5959 = vmatpush1.bf16.msra.mxu1 %v7785_v3 }
 0x53f   :  { %5960 = vmatprep.subr.bf16.mxu1 %v7790_v25 }
 0x542   :  { %5961 = vmatpush1.bf16.msra.mxu1 %v7788_v47 }
 0x543   :  { %5962 = vmatprep.subr.bf16.mxu1 %v7793_v12  ;;  %v7802_v12 = vld [vmem:[%s10517_s14 + $0x124] ss:$8 sps:$4 sm:$0xff]  }
 0x546   :  { %5963 = vmatpush1.bf16.msra.mxu1 %v7791_v49 }
 0x547   :  { %5985 = vmatprep.subr.bf16.mxu1 %v7796_v9 }
 0x5bc   :  { %v5187_v27 = vpop.f32.mrb[32].mxu1  ;;  %v5293_v14 = vpop.f32.mrb[40].mxu0 }
 0x5bd   :  { %v6921_v34 = vadd.f32 %v5187_v27, %v4454_v1  ;;  %v6929_v45 = vadd.f32 %v5293_v14, %v4462_v15  ;;  %v5189_v46 = vpop.f32.mrb[33].mxu1  ;;  %v5295_v48 = vpop.f32.mrb[41].mxu0 }
 0x5be   :  { %v6922_v56 = vadd.f32 %v5189_v46, %v4458_v4  ;;  %v6930_v54 = vadd.f32 %v5295_v48, %v4466_v62  ;;  %v5191_v36 = vpop.f32.mrb[34].mxu1  ;;  %v5297_v40 = vpop.f32.mrb[42].mxu0  ;;  %v7803_v46 = vld [vmem:[%s10517_s14 + $0x130] ss:$8 sps:$4 sm:$0xff]   ;;  %v7808_v48 = vld [vmem:[%s10517_s14 + $0x144] ss:$8 sps:$4 sm:$0xff]  }
 0x5bf   :  { %v6923_v20 = vadd.f32 %v5191_v36, %v4454_v1  ;;  %v6931_v41 = vadd.f32 %v5297_v40, %v4462_v15  ;;  %v5193_v57 = vpop.f32.mrb[35].mxu1  ;;  %v5299_v35 = vpop.f32.mrb[43].mxu0  ;;  %v5410_v39 = vmax.f32 %v6921_v34, 0.0  ;;  %v5412_v30 = vmax.f32 %v6929_v45, 0.0  ;;  %v7800_v34 = vld [vmem:[%s10517_s14 + $0x120] ss:$8 sps:$4 sm:$0xff]  }
 0x5c0   :  { %v6924_v63 = vadd.f32 %v5193_v57, %v4458_v4  ;;  %v6932_v60 = vadd.f32 %v5299_v35, %v4466_v62  ;;  %v5411_v31 = vmax.f32 %v6922_v56, 0.0  ;;  %v5413_v6 = vmax.f32 %v6930_v54, 0.0  ;;  %v7805_v45 = vld [vmem:[%s10517_s14 + $0x134] ss:$8 sps:$4 sm:$0xff]   ;;  %v7806_v56 = vld [vmem:[%s10517_s14 + $0x140] ss:$8 sps:$4 sm:$0xff]  }
 0x5c1   :  { %v5415_v42 = vmax.f32 %v6923_v20, 0.0  ;;  %v5417_v38 = vmax.f32 %v6931_v41, 0.0  ;;  %v7811_v54 = vld [vmem:[%s10517_s14 + $0x154] ss:$8 sps:$4 sm:$0xff]   ;;  %v7809_v36 = vld [vmem:[%s10517_s14 + $0x150] ss:$8 sps:$4 sm:$0xff]   ;;  %v4470_v57 = vrot.slane %v10307_v26, %v242_v44 }
 0x5c2   :  { %v5416_v58 = vmax.f32 %v6924_v63, 0.0  ;;  %v5418_v7 = vmax.f32 %v6932_v60, 0.0  ;;  %v7814_v40 = vld [vmem:[%s10517_s14 + $0x164] ss:$8 sps:$4 sm:$0xff]   ;;  %v7812_v35 = vld [vmem:[%s10517_s14 + $0x160] ss:$8 sps:$4 sm:$0xff]  }
 0x5c3   :  { %v5430_v23 = vpack.c.bf16 %v5415_v42, %v5410_v39  ;;  %v10317_v28 = vpack.c.bf16 %v5417_v38, %v5412_v30  ;;  %v7817_v39 = vld [vmem:[%s10517_s14 + $0x174] ss:$8 sps:$4 sm:$0xff]   ;;  %v7815_v44 = vld [vmem:[%s10517_s14 + $0x170] ss:$8 sps:$4 sm:$0xff]   ;;  %v7820_v26 = vld [vmem:[%s10517_s14 + $0x184] ss:$8 sps:$4 sm:$0xff]  }
 0x5c4   :  { %v5431_v8 = vpack.c.bf16 %v5416_v58, %v5411_v31  ;;  %v5433_v5 = vpack.c.bf16 %v5418_v7, %v5413_v6  ;;  %v5197_v17 = vpop.f32.mrb[36].mxu1  ;;  %v5303_v59 = vpop.f32.mrb[44].mxu0 }
 0x5c5   :  { %v6925_v37 = vadd.f32 %v5197_v17, %v4454_v1  ;;  %v6933_v10 = vadd.f32 %v5303_v59, %v4462_v15  ;;  %v5199_v11 = vpop.f32.mrb[37].mxu1  ;;  %v5305_v52 = vpop.f32.mrb[45].mxu0  ;;  %v7818_v17 = vld [vmem:[%s10517_s14 + $0x180] ss:$8 sps:$4 sm:$0xff]  }
 0x5c6   :  { %v6926_v18 = vadd.f32 %v5199_v11, %v4458_v4  ;;  %v6934_v2 = vadd.f32 %v5305_v52, %v4466_v62  ;;  %v5201_v19 = vpop.f32.mrb[38].mxu1  ;;  %v5307_v0 = vpop.f32.mrb[46].mxu0  ;;  %5964 = vmatprep.mubr.bf16.mxu1 %v5431_v8 }
 0x5c7   :  { %v6927_v33 = vadd.f32 %v5201_v19, %v4454_v1  ;;  %v6935_v16 = vadd.f32 %v5307_v0, %v4462_v15  ;;  %v5203_v21 = vpop.f32.mrb[39].mxu1  ;;  %v5309_v22 = vpop.f32.mrb[47].mxu0  ;;  %5965 = vmatmul.mubr.bf16.vlgmr.msra.gmra.mrb[48].mxu1 %v5430_v23  ;;  %v5420_v55 = vmax.f32 %v6925_v37, 0.0  ;;  %v5422_v3 = vmax.f32 %v6933_v10, 0.0  ;;  %v7821_v0 = vld [vmem:[%s10517_s14 + $0x190] ss:$8 sps:$4 sm:$0xff]  }
 0x5c8   :  { %v6928_v29 = vadd.f32 %v5203_v21, %v4458_v4  ;;  %v6936_v24 = vadd.f32 %v5309_v22, %v4466_v62  ;;  %5986 = vmatpush1.bf16.msra.mxu1 %v7794_v61  ;;  %v5421_v49 = vmax.f32 %v6926_v18, 0.0  ;;  %v5423_v9 = vmax.f32 %v6934_v2, 0.0  ;;  %v7823_v61 = vld [vmem:[%s10517_s14 + $0x194] ss:$8 sps:$4 sm:$0xff]  }
 0x5c9   :  { %v5425_v25 = vmax.f32 %v6927_v33, 0.0  ;;  %v5427_v47 = vmax.f32 %v6935_v16, 0.0  ;;  %5987 = vmatprep.subr.bf16.mxu1 %v7799_v13  ;;  %v7826_v33 = vld [vmem:[%s10517_s14 + $0x1a4] ss:$8 sps:$4 sm:$0xff]  }
 0x5ca   :  { %v5426_v1 = vmax.f32 %v6928_v29, 0.0  ;;  %v5428_v15 = vmax.f32 %v6936_v24, 0.0  ;;  %v7824_v29 = vld [vmem:[%s10517_s14 + $0x1a0] ss:$8 sps:$4 sm:$0xff]   ;;  %v7829_v24 = vld [vmem:[%s10517_s14 + $0x1b4] ss:$8 sps:$4 sm:$0xff]  }
 0x5cb   :  { %v5435_v4 = vpack.c.bf16 %v5425_v25, %v5420_v55  ;;  %v10331_v62 = vpack.c.bf16 %v5427_v47, %v5422_v3  ;;  %v7827_v3 = vld [vmem:[%s10517_s14 + $0x1b0] ss:$8 sps:$4 sm:$0xff]   ;;  %v7832_v47 = vld [vmem:[%s10517_s14 + $0x1c4] ss:$8 sps:$4 sm:$0xff]  }
 0x5cc   :  { %v5436_v27 = vpack.c.bf16 %v5426_v1, %v5421_v49  ;;  %v10333_v14 = vpack.c.bf16 %v5428_v15, %v5423_v9  ;;  %5988 = vmatpush1.bf16.msra.mxu1 %v7797_v32  ;;  %v7835_v49 = vld [vmem:[%s10517_s14 + $0x1d4] ss:$8 sps:$4 sm:$0xff]   ;;  %v7833_v9 = vld [vmem:[%s10517_s14 + $0x1d0] ss:$8 sps:$4 sm:$0xff]   ;;  %v7838_v1 = vld [vmem:[%s10517_s14 + $0x1e4] ss:$8 sps:$4 sm:$0xff]  }
 0x5cd   :  { %5989 = vmatprep.subr.bf16.mxu1 %v7802_v12  ;;  %v7830_v12 = vld [vmem:[%s10517_s14 + $0x1c0] ss:$8 sps:$4 sm:$0xff]  }
 0x5ce   :  { %5974 = vmatprep.mubr.bf16.mxu1 %v5436_v27  ;;  %v7836_v15 = vld [vmem:[%s10517_s14 + $0x1e0] ss:$8 sps:$4 sm:$0xff]   ;;  %v7839_v27 = vld [vmem:[%s10517_s14 + $0x1f0] ss:$8 sps:$4 sm:$0xff]  }
 0x5cf   :  { %5975 = vmatmul.mubr.bf16.gmra.mrb[52].mxu1 %v5435_v4  ;;  %v7841_v4 = vld [vmem:[%s10517_s14 + $0x1f4] ss:$8 sps:$4 sm:$0xff]  }
 0x5d0   :  { %5990 = vmatpush1.bf16.msra.mxu1 %v7800_v34  ;;  %6017 = vmatprep.mubr.bf16.mxu1 %v5433_v5  ;;  %v7844_v34 = vld [vmem:[%s10517_s14 + $0x204] ss:$8 sps:$4 sm:$0xff]  }
 0x5d1   :  { %5991 = vmatprep.subr.bf16.mxu1 %v7805_v45  ;;  %v7842_v45 = vld [vmem:[%s10517_s14 + $0x200] ss:$8 sps:$4 sm:$0xff]  }
 0x5d4   :  { %5992 = vmatpush1.bf16.msra.mxu1 %v7803_v46  ;;  %v7847_v46 = vld [vmem:[%s10517_s14 + $0x214] ss:$8 sps:$4 sm:$0xff]  }
 0x5d5   :  { %5993 = vmatprep.subr.bf16.mxu1 %v7808_v48  ;;  %v7845_v48 = vld [vmem:[%s10517_s14 + $0x210] ss:$8 sps:$4 sm:$0xff]  }
 0x5d8   :  { %5994 = vmatpush1.bf16.msra.mxu1 %v7806_v56  ;;  %v7850_v56 = vld [vmem:[%s10517_s14 + $0x224] ss:$8 sps:$4 sm:$0xff]  }
 0x5d9   :  { %5995 = vmatprep.subr.bf16.mxu1 %v7811_v54  ;;  %v7848_v54 = vld [vmem:[%s10517_s14 + $0x220] ss:$8 sps:$4 sm:$0xff]  }
 0x5dc   :  { %v6855_v20 = vpop.f32.mrb[40].mxu1  ;;  %v6895_v41 = vpop.f32.mrb[48].mxu0  ;;  %5996 = vmatpush1.bf16.msra.mxu1 %v7809_v36  ;;  %v7856_v36 = vld [vmem:[%s10517_s14 + $0x244] ss:$8 sps:$4 sm:$0xff]  }
 0x5dd   :  { %v6856_v63 = vpop.f32.mrb[41].mxu1  ;;  %v5395_v60 = vpop.f32.mrb[49].mxu0  ;;  %5997 = vmatprep.subr.bf16.mxu1 %v7814_v40  ;;  %v7854_v40 = vld [vmem:[%s10517_s14 + $0x240] ss:$8 sps:$4 sm:$0xff]  }
 0x5de   :  { %v6857_v30 = vadd.f32 %v6856_v63, %v6855_v20  ;;  %v6858_v42 = vpop.f32.mrb[42].mxu1  ;;  %v6896_v38 = vpop.f32.mrb[50].mxu0  ;;  %v7857_v20 = vld [vmem:[%s10517_s14 + $0x250] ss:$8 sps:$4 sm:$0xff]  }
 0x5df   :  { %v6859_v31 = vpop.f32.mrb[43].mxu1  ;;  %v5398_v6 = vpop.f32.mrb[51].mxu0  ;;  %v7863_v63 = vld [vmem:[%s10517_s14 + $0x270] ss:$8 sps:$4 sm:$0xff]  }
 0x5e0   :  { %v5347_v58 = vadd.f32 %v6857_v30, %v4470_v57  ;;  %v6860_v50 = vadd.f32 %v6859_v31, %v6858_v42  ;;  %5998 = vmatpush1.bf16.msra.mxu1 %v7812_v35  ;;  %v7865_v35 = vld [vmem:[%s10517_s14 + $0x274] ss:$8 sps:$4 sm:$0xff]  }
 0x5e1   :  { %5999 = vmatprep.subr.bf16.mxu1 %v7817_v39 }
 0x5e2   :  { %v5396_v7 = vadd.f32 %v5395_v60, %v5347_v58  ;;  %v5350_v23 = vadd.f32 %v6860_v50, %v4470_v57  ;;  %v5520_v60 = vld [vmem:[%s10520_s15] sm:$0x3] }
 0x5e3   :  { %v5525_v39 = vrot.slane %v5520_v60, %v8608_v51  ;;  %v5529_v30 = vrot.slane %v5520_v60, %v8616_v53 }
 0x5e4   :  { %v5399_v8 = vadd.f32 %v5398_v6, %v5350_v23  ;;  %v6861_v5 = vpop.f32.mrb[44].mxu1  ;;  %6000 = vmatpush1.bf16.msra.mxu1 %v7815_v44  ;;  %v5414_v37 = vmax.f32 %v5396_v7, 0.0 }
 0x5e5   :  { %v6862_v59 = vpop.f32.mrb[45].mxu1  ;;  %6001 = vmatprep.subr.bf16.mxu1 %v7820_v26 }
 0x5e6   :  { %v5419_v10 = vmax.f32 %v5399_v8, 0.0  ;;  %v6863_v11 = vadd.f32 %v6862_v59, %v6861_v5  ;;  %v6864_v52 = vpop.f32.mrb[46].mxu1 }
 0x5e7   :  { %v6865_v13 = vpop.f32.mrb[47].mxu1 }
 0x5e8   :  { %v10380_v18 = vpack.c.bf16 %v5419_v10, %v5414_v37  ;;  %v5355_v2 = vadd.f32 %v6863_v11, %v4470_v57  ;;  %v6866_v19 = vadd.f32 %v6865_v13, %v6864_v52  ;;  %6002 = vmatpush1.bf16.msra.mxu1 %v7818_v17 }
 0x5e9   :  { %6003 = vmatprep.subr.bf16.mxu1 %v7823_v61 }
 0x5ea   :  { %v5404_v16 = vadd.f32 %v6895_v41, %v5355_v2  ;;  %v5358_v21 = vadd.f32 %v6866_v19, %v4470_v57  ;;  %v7862_v41 = vld [vmem:[%s10517_s14 + $0x264] ss:$8 sps:$4 sm:$0xff]   ;;  %v7860_v57 = vld [vmem:[%s10517_s14 + $0x260] ss:$8 sps:$4 sm:$0xff]  }
 0x5ec   :  { %v5407_v22 = vadd.f32 %v6896_v38, %v5358_v21  ;;  %6004 = vmatpush1.bf16.msra.mxu1 %v7821_v0  ;;  %v5424_v32 = vmax.f32 %v5404_v16, 0.0 }
 0x5ed   :  { %6005 = vmatprep.subr.bf16.mxu1 %v7826_v33 }
 0x5ee   :  { %v5429_v55 = vmax.f32 %v5407_v22, 0.0 }
 0x5f0   :  { %6006 = vmatpush1.bf16.msra.mxu1 %v7824_v29  ;;  %v5439_v25 = vpack.c.bf16 %v5429_v55, %v5424_v32 }
 0x5f1   :  { %6007 = vmatprep.subr.bf16.mxu1 %v7829_v24 }
 0x5f4   :  { %6008 = vmatpush1.bf16.msra.mxu1 %v7827_v3 }
 0x5f5   :  { %6009 = vmatprep.subr.bf16.mxu1 %v7832_v47 }
 0x5f8   :  { %6010 = vmatpush1.bf16.msra.mxu1 %v7830_v12 }
 0x5f9   :  { %6011 = vmatprep.subr.bf16.mxu1 %v7835_v49 }
 0x5fc   :  { %6012 = vmatpush1.bf16.msra.mxu1 %v7833_v9 }
 0x5fd   :  { %6013 = vmatprep.subr.bf16.mxu1 %v7838_v1 }
 0x600   :  { %6014 = vmatpush1.bf16.msra.mxu1 %v7836_v15 }
 0x601   :  { %6015 = vmatprep.subr.bf16.mxu1 %v7841_v4 }
 0x604   :  { %6016 = vmatpush1.bf16.msra.mxu1 %v7839_v27 }
 0x605   :  { %6038 = vmatprep.subr.bf16.mxu1 %v7844_v34 }
 0x607   :  { %6018 = vmatmul.mubr.bf16.vlgmr.msra.gmra.mrb[48].mxu1 %v10317_v28  ;;  %v7853_v28 = vld [vmem:[%s10517_s14 + $0x234] ss:$8 sps:$4 sm:$0xff]  }
 0x608   :  { %6027 = vmatprep.mubr.bf16.mxu1 %v10333_v14  ;;  %6039 = vmatpush1.bf16.msra.mxu1 %v7842_v45  ;;  %v7851_v14 = vld [vmem:[%s10517_s14 + $0x230] ss:$8 sps:$4 sm:$0xff]  }
 0x609   :  { %6040 = vmatprep.subr.bf16.mxu1 %v7847_v46 }
 0x60c   :  { %6041 = vmatpush1.bf16.msra.mxu1 %v7845_v48 }
 0x60d   :  { %6042 = vmatprep.subr.bf16.mxu1 %v7850_v56 }
 0x60f   :  { %6028 = vmatmul.mubr.bf16.gmra.mrb[52].mxu1 %v10331_v62  ;;  %v7859_v62 = vld [vmem:[%s10517_s14 + $0x254] ss:$8 sps:$4 sm:$0xff]  }
 0x610   :  { %6043 = vmatpush1.bf16.msra.mxu1 %v7848_v54  ;;  %6070 = vmatprep.mubr.bf16.mxu1 %v7866_v43 }
 0x611   :  { %6044 = vmatprep.subr.bf16.mxu1 %v7853_v28 }
 0x614   :  { %6045 = vmatpush1.bf16.msra.mxu1 %v7851_v14 }
 0x615   :  { %6046 = vmatprep.subr.bf16.mxu1 %v7856_v36 }
 0x618   :  { %6047 = vmatpush1.bf16.msra.mxu1 %v7854_v40 }
 0x619   :  { %6048 = vmatprep.subr.bf16.mxu1 %v7859_v62 }
 0x61c   :  { %6049 = vmatpush1.bf16.msra.mxu1 %v7857_v20 }
 0x61d   :  { %6050 = vmatprep.subr.bf16.mxu1 %v7862_v41 }
 0x620   :  { %6051 = vmatpush1.bf16.msra.mxu1 %v7860_v57 }
 0x621   :  { %6052 = vmatprep.subr.bf16.mxu1 %v7865_v35 }
 0x624   :  { %6053 = vmatpush1.bf16.msra.mxu1 %v7863_v63 }
 0x627   :  { %6071 = vmatmul.mubr.bf16.vlgmr.msra.gmra.mrb[48].mxu1 %v10380_v18 }
 0x628   :  { %6080 = vmatprep.mubr.bf16.mxu1 %v7866_v43 }
 0x62f   :  { %6081 = vmatmul.mubr.bf16.gmra.mrb[52].mxu1 %v5439_v25 }
 0x6fa   :  { %v6072_v42 = vpop.f32.mrb[48].mxu1 }
 0x6fb   :  { %v6937_v38 = vadd.f32 %v6072_v42, %v5525_v39  ;;  %v6074_v31 = vpop.f32.mrb[49].mxu1 }
 0x6fc   :  { %v6938_v6 = vadd.f32 %v6074_v31, %v5529_v30  ;;  %v6076_v58 = vpop.f32.mrb[50].mxu1 }
 0x6fd   :  { %v6091_v50 = vmax.f32 %v6937_v38, 0.0  ;;  %v6939_v44 = vadd.f32 %v6076_v58, %v5525_v39  ;;  %v6078_v26 = vpop.f32.mrb[51].mxu1 }
 0x6fe   :  { %v6092_v7 = vmax.f32 %v6938_v6, 0.0  ;;  %v6940_v23 = vadd.f32 %v6078_v26, %v5529_v30 }
 0x6ff   :  { %6099 = vst [vmem:[%s10521_s17] sm:$0xff] %v6091_v50  ;;  %v6093_v43 = vmax.f32 %v6939_v44, 0.0 }
 0x700   :  { %6100 = vst [vmem:[%s10521_s17 + $0x8] sm:$0xff] %v6092_v7  ;;  %v6094_v51 = vmax.f32 %v6940_v23, 0.0 }
 0x701   :  { %6101 = vst [vmem:[%s10521_s17 + $0x10] sm:$0xff] %v6093_v43 }
 0x702   :  { %6102 = vst [vmem:[%s10521_s17 + $0x18] sm:$0xff] %v6094_v51  ;;  %v6082_v53 = vpop.f32.mrb[52].mxu1 }
 0x703   :  { %v6941_v8 = vadd.f32 %v6082_v53, %v5525_v39  ;;  %v6084_v5 = vpop.f32.mrb[53].mxu1 }
 0x704   :  { %v6942_v17 = vadd.f32 %v6084_v5, %v5529_v30  ;;  %v6086_v59 = vpop.f32.mrb[54].mxu1 }
 0x705   :  { %v6095_v61 = vmax.f32 %v6941_v8, 0.0  ;;  %v6943_v37 = vadd.f32 %v6086_v59, %v5525_v39  ;;  %v6088_v10 = vpop.f32.mrb[55].mxu1 }
 0x706   :  { %v6096_v11 = vmax.f32 %v6942_v17, 0.0  ;;  %v6944_v52 = vadd.f32 %v6088_v10, %v5529_v30 }
 0x707   :  { %6103 = vst [vmem:[%s10521_s17 + $0x20] sm:$0xff] %v6095_v61  ;;  %v6097_v13 = vmax.f32 %v6943_v37, 0.0 }
 0x708   :  { %6104 = vst [vmem:[%s10521_s17 + $0x28] sm:$0xff] %v6096_v11  ;;  %v6098_v18 = vmax.f32 %v6944_v52, 0.0 }
 0x709   :  { %6105 = vst [vmem:[%s10521_s17 + $0x30] sm:$0xff] %v6097_v13 }
 0x70a   :  { %6106 = vst [vmem:[%s10521_s17 + $0x38] sm:$0xff] %v6098_v18 }

</bundles_post_ra>
